<compile_context>
chip_gen: v5e
topology: v5e:2x2
jax: 0.10.0
libtpu: 0.0.40
codegen_flags: <defaults>
</compile_context>

<pallas_src>
from functools import partial

import jax
import jax.numpy as jnp
import numpy as np
from jax.experimental import pallas as pl
from jax.experimental.pallas import tpu as pltpu


# ---------------------------------------------------------------------------
# Fused Pallas kernel (one row tile of one image per grid step)
# ---------------------------------------------------------------------------

def _bottleneck_kernel(x_ref, w1_ref, w2_ref, w3_ref,
                       b1_ref, b2_ref, b3_ref, o_ref):
    """Grid = (N, H // th).

    x_ref : (1, H, W, Cin)    bf16  full image, resident across the row axis
    w1_ref: (Cin, width)      bf16  BN1 scale folded in
    w2_ref: (9*width, width)  bf16  3x3 taps packed along K, BN2 folded in
    w3_ref: (width, Cout)     bf16  BN3 folded in
    b*_ref: (1, C)            f32   folded BN biases
    o_ref : (1, th, W, Cout)  bf16  one row tile of the output
    """
    _, H, W, Cin = x_ref.shape
    th = o_ref.shape[1]
    width = w1_ref.shape[1]
    Cout = w3_ref.shape[1]

    i = pl.program_id(1)
    n_row = pl.num_programs(1)
    row0 = i * th

    def conv1(rows_bf16):                      # (r, W, Cin) -> (r*W, width) f32
        r = rows_bf16.shape[0]
        y = jnp.dot(rows_bf16.reshape(r * W, Cin), w1_ref[...],
                    preferred_element_type=jnp.float32)
        return jnp.maximum(y + b1_ref[...], 0.0)

    # ---- conv1 (1x1) + bias + ReLU on the th interior rows and the two halo
    #      rows (recomputed per tile; zeroed when outside the image) ----
    y1_mid = conv1(x_ref[0, pl.ds(row0, th)])                        # (th*W, width)
    y1_top = conv1(x_ref[0, pl.ds(jnp.maximum(row0 - 1, 0), 1)])     # (W, width)
    y1_bot = conv1(x_ref[0, pl.ds(jnp.minimum(row0 + th, H - 1), 1)])
    y1 = jnp.concatenate(
        [jnp.where(i > 0, y1_top, 0.0).reshape(1, W, width),
         y1_mid.reshape(th, W, width),
         jnp.where(i + 1 < n_row, y1_bot, 0.0).reshape(1, W, width)],
        axis=0)                                                      # (th+2, W, width) f32

    # ---- conv2 (3x3, stride 1, pad 1): single matmul with K = 9*width ----
    zcol = jnp.zeros((th + 2, 1, width), jnp.float32)
    y1p = jnp.concatenate([zcol, y1, zcol], axis=1)                  # zero W halo
    cols = [y1p[kh:kh + th, kw:kw + W, :]                            # (th, W, width)
            for kh in range(3) for kw in range(3)]                   # (kh, kw) order
    x_cat = jnp.concatenate(cols, axis=-1).reshape(th * W, 9 * width)
    y2 = jnp.dot(x_cat.astype(jnp.bfloat16), w2_ref[...],
                 preferred_element_type=jnp.float32)
    y2 = jnp.maximum(y2 + b2_ref[...], 0.0)                          # (th*W, width)

    # ---- conv3 (1x1) + bias + residual add + ReLU (f32 epilogue) ----
    y3 = jnp.dot(y2.astype(jnp.bfloat16), w3_ref[...],
                 preferred_element_type=jnp.float32) + b3_ref[...]
    res = x_ref[0, pl.ds(row0, th)].reshape(th * W, Cin).astype(jnp.float32)
    o_ref[0] = jnp.maximum(y3 + res, 0.0).reshape(th, W, Cout).astype(o_ref.dtype)


# ---------------------------------------------------------------------------
# Wrappers
# ---------------------------------------------------------------------------

def _pick_row_tile(h, target=16):
    for t in range(min(h, target), 0, -1):
        if h % t == 0:
            return t
    return h


def _vmem_limit_bytes():
    cap = 64 * 1024 * 1024                      # conservative fallback = v7x physical
    try:
        cap = int(getattr(pltpu.get_tpu_info(), "vmem_capacity_bytes", cap)) or cap
    except Exception:
        pass
    return cap - cap // 8                       # ~56 MiB on v7x, ~112 MiB on v5e/v6e


def bottleneck_forward_nhwc(x_nhwc, p, row_tile=None):
    """Fused Bottleneck (stride=1, groups=1, dilation=1, downsample=None).

    NHWC in / NHWC out, bf16 activations — the transpose-free fast path.
    """
    N, H, W, Cin = x_nhwc.shape
    width = p["w1"].shape[1]
    Cout = p["w3"].shape[1]
    assert Cout == Cin, "downsample=None requires inplanes == planes*expansion"

    th = _pick_row_tile(H) if row_tile is None else row_tile
    assert H % th == 0, "row_tile must divide H"
    n_row = H // th

    # bf16 activations; BN scales folded into bf16 weights (scaled in f32, then cast).
    x = x_nhwc.astype(jnp.bfloat16)
    w1 = (p["w1"] * p["s1"]).astype(jnp.bfloat16)                    # (Cin, width)
    w2 = (p["w2"] * p["s2"][0]).reshape(9 * width, width).astype(jnp.bfloat16)
    w3 = (p["w3"] * p["s3"]).astype(jnp.bfloat16)                    # (width, Cout)
    b1, b2, b3 = p["b1"], p["b2"], p["b3"]                           # (1, C) f32

    flops = 2 * N * H * W * (Cin * width + 9 * width * width + width * Cout)
    bytes_accessed = int(x.size * 2 + N * H * W * Cout * 2
                         + (w1.size + w2.size + w3.size) * 2
                         + (b1.size + b2.size + b3.size) * 4)

    return pl.pallas_call(
        _bottleneck_kernel,
        out_shape=jax.ShapeDtypeStruct((N, H, W, Cout), jnp.bfloat16),
        grid=(N, n_row),
        in_specs=[
            # Full image, resident across the row-tile axis (one HBM read per image).
            pl.BlockSpec((1, H, W, Cin), lambda n, i: (n, 0, 0, 0)),
            pl.BlockSpec((Cin, width), lambda n, i: (0, 0)),
            pl.BlockSpec((9 * width, width), lambda n, i: (0, 0)),
            pl.BlockSpec((width, Cout), lambda n, i: (0, 0)),
            pl.BlockSpec((1, width), lambda n, i: (0, 0)),
            pl.BlockSpec((1, width), lambda n, i: (0, 0)),
            pl.BlockSpec((1, Cout), lambda n, i: (0, 0)),
        ],
        out_specs=pl.BlockSpec((1, th, W, Cout), lambda n, i: (n, i, 0, 0)),
        compiler_params=pltpu.CompilerParams(
            dimension_semantics=("parallel", "arbitrary"),
            vmem_limit_bytes=_vmem_limit_bytes()),
        cost_estimate=pl.CostEstimate(
            flops=flops, transcendentals=0, bytes_accessed=bytes_accessed),
    )(x, w1, w2, w3, b1, b2, b3)


@partial(jax.jit, static_argnames=("row_tile",))
def bottleneck_forward(x_nchw, p, row_tile=None):
    """NCHW adapter matching the PyTorch module's layout.

    Prefer `bottleneck_forward_nhwc` end-to-end; under jit these transposes are
    pure layout ops that XLA can fold into neighbouring computation.
    """
    x = jnp.transpose(x_nchw, (0, 2, 3, 1))                          # NCHW -> NHWC
    out = bottleneck_forward_nhwc(x, p, row_tile=row_tile)
    return jnp.transpose(out, (0, 3, 1, 2))                          # NHWC -> NCHW


# ---------------------------------------------------------------------------
# Parameters (inference-folded BatchNorm)
# ---------------------------------------------------------------------------

def fold_bn(gamma, beta, running_mean, running_var, eps=1e-5):
    scale = gamma / jnp.sqrt(running_var + eps)
    bias = beta - running_mean * scale
    return scale[None, :], bias[None, :]


def init_params(key, inplanes, planes, groups=1, base_width=64):
    width = int(planes * (base_width / 64.0)) * groups
    out_ch = planes * 4                                              # expansion = 4
    ks = jax.random.split(key, 6)

    def w_init(k, shape):
        return jax.random.normal(k, shape, jnp.float32) * 0.1

    def bn_init(k, c):
        k1, k2, k3 = jax.random.split(k, 3)
        gamma = 1.0 + 0.1 * jax.random.normal(k1, (c,), jnp.float32)
        beta = 0.1 * jax.random.normal(k2, (c,), jnp.float32)
        rmean = 0.1 * jax.random.normal(k3, (c,), jnp.float32)
        rvar = jnp.ones((c,), jnp.float32)
        return fold_bn(gamma, beta, rmean, rvar)

    p = {}
    p["w1"] = w_init(ks[0], (inplanes, width))                       # 1x1, (Cin, Cout)
    p["s1"], p["b1"] = bn_init(ks[1], width)
    p["w2"] = w_init(ks[2], (3, 3, width, width))                    # 3x3, HWIO
    p["s2"], p["b2"] = bn_init(ks[3], width)
    p["w3"] = w_init(ks[4], (width, out_ch))                         # 1x1, (Cin, Cout)
    p["s3"], p["b3"] = bn_init(ks[5], out_ch)
    return p


# ---------------------------------------------------------------------------
# Pure-JAX reference for validation
# ---------------------------------------------------------------------------

def bottleneck_reference(x_nchw, p):
    x = jnp.transpose(x_nchw, (0, 2, 3, 1))
    dn = jax.lax.conv_dimension_numbers(x.shape, (1, 1, 1, 1),
                                        ("NHWC", "HWIO", "NHWC"))

    def conv(inp, w_hwio, pad):
        return jax.lax.conv_general_dilated(inp, w_hwio, (1, 1), pad,
                                            dimension_numbers=dn)

    o = conv(x, p["w1"][None, None], "VALID")
    o = jnp.maximum(o * p["s1"][0] + p["b1"][0], 0.0)
    o = conv(o, p["w2"], "SAME")
    o = jnp.maximum(o * p["s2"][0] + p["b2"][0], 0.0)
    o = conv(o, p["w3"][None, None], "VALID")
    o = o * p["s3"][0] + p["b3"][0] + x
    o = jnp.maximum(o, 0.0)
    return jnp.transpose(o, (0, 3, 1, 2))


if __name__ == "__main__":
    # inplanes == planes * expansion so the residual add is valid without a
    # downsample branch. H=W=24 with row_tile=8 -> grid (2, 3): exercises the
    # top-edge, interior and bottom-edge row-tile code paths.
    N, inplanes, H, W = 2, 256, 24, 24
    planes = 64                                   # width=64, out=256

    key = jax.random.PRNGKey(0)
    k_x, k_p = jax.random.split(key)
    x = jax.random.normal(k_x, (N, inplanes, H, W), jnp.float32)
    params = init_params(k_p, inplanes, planes)

    out = jax.block_until_ready(bottleneck_forward(x, params, row_tile=8))
    assert out.shape == (N, planes * 4, H, W)

    # Reference run on the bf16-rounded input (the data the kernel actually
    # sees); bf16 MXU inputs / bf16 output -> relaxed tolerance.
    xq = x.astype(jnp.bfloat16).astype(jnp.float32)
    ref = jax.block_until_ready(bottleneck_reference(xq, params))
    np.testing.assert_allclose(np.asarray(out.astype(jnp.float32)),
                               np.asarray(ref), rtol=5e-2, atol=1.5e-1)
    print("KERNEL_OK")
</pallas_src>

<mosaic_0001>
module attributes {stable_mosaic.version = 11 : i64} {
  func.func @_bottleneck_kernel(%arg0: i32, %arg1: i32, %arg2: memref<1x24x24x256xbf16, #tpu.memory_space<vmem>>, %arg3: memref<256x64xbf16, #tpu.memory_space<vmem>>, %arg4: memref<576x64xbf16, #tpu.memory_space<vmem>>, %arg5: memref<64x256xbf16, #tpu.memory_space<vmem>>, %arg6: memref<1x64xf32, #tpu.memory_space<vmem>>, %arg7: memref<1x64xf32, #tpu.memory_space<vmem>>, %arg8: memref<1x256xf32, #tpu.memory_space<vmem>>, %arg9: memref<1x8x24x256xbf16, #tpu.memory_space<vmem>>) attributes {dimension_semantics = [#tpu.dimension_semantics<parallel>, #tpu.dimension_semantics<arbitrary>], iteration_bounds = array<i64: 2, 3>, scalar_prefetch = 0 : i64, scratch_operands = 0 : i64, tpu.core_type = #tpu.core_type<tc>, window_params = [{transform_indices = @transform_0, window_bounds = array<i64: 1, 24, 24, 256>}, {pipeline_mode = #tpu.pipeline_mode<synchronous>, transform_indices = @transform_1, window_bounds = array<i64: 256, 64>}, {pipeline_mode = #tpu.pipeline_mode<synchronous>, transform_indices = @transform_2, window_bounds = array<i64: 576, 64>}, {pipeline_mode = #tpu.pipeline_mode<synchronous>, transform_indices = @transform_3, window_bounds = array<i64: 64, 256>}, {pipeline_mode = #tpu.pipeline_mode<synchronous>, transform_indices = @transform_4, window_bounds = array<i64: 1, 64>}, {pipeline_mode = #tpu.pipeline_mode<synchronous>, transform_indices = @transform_5, window_bounds = array<i64: 1, 64>}, {pipeline_mode = #tpu.pipeline_mode<synchronous>, transform_indices = @transform_6, window_bounds = array<i64: 1, 256>}, {transform_indices = @transform_7, window_bounds = array<i64: 1, 8, 24, 256>}]} {
    %c8_i32 = arith.constant 8 : i32
    %0 = arith.muli %arg1, %c8_i32 : i32
    %c0 = arith.constant 0 : index
    %1 = arith.index_cast %0 : i32 to index
    %c0_0 = arith.constant 0 : index
    %c0_1 = arith.constant 0 : index
    %2 = vector.load %arg2[%c0, %1, %c0_0, %c0_1] : memref<1x24x24x256xbf16, #tpu.memory_space<vmem>>, vector<1x8x24x256xbf16>
    %3 = vector.shape_cast %2 : vector<1x8x24x256xbf16> to vector<8x24x256xbf16>
    %4 = vector.shape_cast %3 : vector<8x24x256xbf16> to vector<192x256xbf16>
    %c0_2 = arith.constant 0 : index
    %c0_3 = arith.constant 0 : index
    %5 = vector.load %arg3[%c0_2, %c0_3] : memref<256x64xbf16, #tpu.memory_space<vmem>>, vector<256x64xbf16>
    %cst = arith.constant dense<0.000000e+00> : vector<192x64xf32>
    %6 = tpu.matmul %4, %5, %cst {dimension_numbers = #tpu.dot_dimension_numbers<[1], [0], [0], [1], [0, 0, 1, 1], [], []>} : vector<192x256xbf16>, vector<256x64xbf16>, vector<192x64xf32> -> vector<192x64xf32>
    %c0_4 = arith.constant 0 : index
    %c0_5 = arith.constant 0 : index
    %7 = vector.load %arg6[%c0_4, %c0_5] : memref<1x64xf32, #tpu.memory_space<vmem>>, vector<1x64xf32>
    %8 = vector.broadcast %7 : vector<1x64xf32> to vector<192x64xf32>
    %9 = arith.addf %6, %8 : vector<192x64xf32>
    %cst_6 = arith.constant 0.000000e+00 : f32
    %10 = vector.broadcast %cst_6 : f32 to vector<192x64xf32>
    %11 = arith.maximumf %9, %10 : vector<192x64xf32>
    %c1_i32 = arith.constant 1 : i32
    %12 = arith.subi %0, %c1_i32 : i32
    %c0_i32 = arith.constant 0 : i32
    %13 = arith.maxsi %12, %c0_i32 : i32
    %c0_7 = arith.constant 0 : index
    %14 = arith.index_cast %13 : i32 to index
    %c0_8 = arith.constant 0 : index
    %c0_9 = arith.constant 0 : index
    %15 = vector.load %arg2[%c0_7, %14, %c0_8, %c0_9] : memref<1x24x24x256xbf16, #tpu.memory_space<vmem>>, vector<1x1x24x256xbf16>
    %16 = vector.shape_cast %15 : vector<1x1x24x256xbf16> to vector<1x24x256xbf16>
    %17 = vector.shape_cast %16 : vector<1x24x256xbf16> to vector<24x256xbf16>
    %c0_10 = arith.constant 0 : index
    %c0_11 = arith.constant 0 : index
    %18 = vector.load %arg3[%c0_10, %c0_11] : memref<256x64xbf16, #tpu.memory_space<vmem>>, vector<256x64xbf16>
    %cst_12 = arith.constant dense<0.000000e+00> : vector<24x64xf32>
    %19 = tpu.matmul %17, %18, %cst_12 {dimension_numbers = #tpu.dot_dimension_numbers<[1], [0], [0], [1], [0, 0, 1, 1], [], []>} : vector<24x256xbf16>, vector<256x64xbf16>, vector<24x64xf32> -> vector<24x64xf32>
    %c0_13 = arith.constant 0 : index
    %c0_14 = arith.constant 0 : index
    %20 = vector.load %arg6[%c0_13, %c0_14] : memref<1x64xf32, #tpu.memory_space<vmem>>, vector<1x64xf32>
    %21 = vector.broadcast %20 : vector<1x64xf32> to vector<24x64xf32>
    %22 = arith.addf %19, %21 : vector<24x64xf32>
    %cst_15 = arith.constant 0.000000e+00 : f32
    %23 = vector.broadcast %cst_15 : f32 to vector<24x64xf32>
    %24 = arith.maximumf %22, %23 : vector<24x64xf32>
    %c8_i32_16 = arith.constant 8 : i32
    %25 = arith.addi %0, %c8_i32_16 : i32
    %c23_i32 = arith.constant 23 : i32
    %26 = arith.minsi %25, %c23_i32 : i32
    %c0_17 = arith.constant 0 : index
    %27 = arith.index_cast %26 : i32 to index
    %c0_18 = arith.constant 0 : index
    %c0_19 = arith.constant 0 : index
    %28 = vector.load %arg2[%c0_17, %27, %c0_18, %c0_19] : memref<1x24x24x256xbf16, #tpu.memory_space<vmem>>, vector<1x1x24x256xbf16>
    %29 = vector.shape_cast %28 : vector<1x1x24x256xbf16> to vector<1x24x256xbf16>
    %30 = vector.shape_cast %29 : vector<1x24x256xbf16> to vector<24x256xbf16>
    %c0_20 = arith.constant 0 : index
    %c0_21 = arith.constant 0 : index
    %31 = vector.load %arg3[%c0_20, %c0_21] : memref<256x64xbf16, #tpu.memory_space<vmem>>, vector<256x64xbf16>
    %cst_22 = arith.constant dense<0.000000e+00> : vector<24x64xf32>
    %32 = tpu.matmul %30, %31, %cst_22 {dimension_numbers = #tpu.dot_dimension_numbers<[1], [0], [0], [1], [0, 0, 1, 1], [], []>} : vector<24x256xbf16>, vector<256x64xbf16>, vector<24x64xf32> -> vector<24x64xf32>
    %c0_23 = arith.constant 0 : index
    %c0_24 = arith.constant 0 : index
    %33 = vector.load %arg6[%c0_23, %c0_24] : memref<1x64xf32, #tpu.memory_space<vmem>>, vector<1x64xf32>
    %34 = vector.broadcast %33 : vector<1x64xf32> to vector<24x64xf32>
    %35 = arith.addf %32, %34 : vector<24x64xf32>
    %cst_25 = arith.constant 0.000000e+00 : f32
    %36 = vector.broadcast %cst_25 : f32 to vector<24x64xf32>
    %37 = arith.maximumf %35, %36 : vector<24x64xf32>
    %c0_i32_26 = arith.constant 0 : i32
    %38 = arith.cmpi sgt, %arg1, %c0_i32_26 : i32
    %cst_27 = arith.constant 0.000000e+00 : f32
    %39 = vector.broadcast %cst_27 : f32 to vector<24x64xf32>
    %40 = arith.select %38, %24, %39 : vector<24x64xf32>
    %41 = vector.shape_cast %40 : vector<24x64xf32> to vector<1x24x64xf32>
    %42 = vector.shape_cast %11 : vector<192x64xf32> to vector<8x24x64xf32>
    %c1_i32_28 = arith.constant 1 : i32
    %43 = arith.addi %arg1, %c1_i32_28 : i32
    %c3_i32 = arith.constant 3 : i32
    %44 = arith.cmpi slt, %43, %c3_i32 : i32
    %cst_29 = arith.constant 0.000000e+00 : f32
    %45 = vector.broadcast %cst_29 : f32 to vector<24x64xf32>
    %46 = arith.select %44, %37, %45 : vector<24x64xf32>
    %47 = vector.shape_cast %46 : vector<24x64xf32> to vector<1x24x64xf32>
    %48 = tpu.concatenate %41, %42, %47 in 0 : vector<1x24x64xf32>, vector<8x24x64xf32>, vector<1x24x64xf32> -> vector<10x24x64xf32>
    %cst_30 = arith.constant 0.000000e+00 : f32
    %49 = vector.broadcast %cst_30 : f32 to vector<10x1x64xf32>
    %50 = tpu.concatenate %49, %48, %49 in 1 : vector<10x1x64xf32>, vector<10x24x64xf32>, vector<10x1x64xf32> -> vector<10x26x64xf32>
    %51 = vector.extract_strided_slice %50 {offsets = [0, 0, 0], sizes = [8, 24, 64], strides = [1, 1, 1]} : vector<10x26x64xf32> to vector<8x24x64xf32>
    %52 = vector.extract_strided_slice %50 {offsets = [0, 1, 0], sizes = [8, 24, 64], strides = [1, 1, 1]} : vector<10x26x64xf32> to vector<8x24x64xf32>
    %53 = vector.extract_strided_slice %50 {offsets = [0, 2, 0], sizes = [8, 24, 64], strides = [1, 1, 1]} : vector<10x26x64xf32> to vector<8x24x64xf32>
    %54 = vector.extract_strided_slice %50 {offsets = [1, 0, 0], sizes = [8, 24, 64], strides = [1, 1, 1]} : vector<10x26x64xf32> to vector<8x24x64xf32>
    %55 = vector.extract_strided_slice %50 {offsets = [1, 1, 0], sizes = [8, 24, 64], strides = [1, 1, 1]} : vector<10x26x64xf32> to vector<8x24x64xf32>
    %56 = vector.extract_strided_slice %50 {offsets = [1, 2, 0], sizes = [8, 24, 64], strides = [1, 1, 1]} : vector<10x26x64xf32> to vector<8x24x64xf32>
    %57 = vector.extract_strided_slice %50 {offsets = [2, 0, 0], sizes = [8, 24, 64], strides = [1, 1, 1]} : vector<10x26x64xf32> to vector<8x24x64xf32>
    %58 = vector.extract_strided_slice %50 {offsets = [2, 1, 0], sizes = [8, 24, 64], strides = [1, 1, 1]} : vector<10x26x64xf32> to vector<8x24x64xf32>
    %59 = vector.extract_strided_slice %50 {offsets = [2, 2, 0], sizes = [8, 24, 64], strides = [1, 1, 1]} : vector<10x26x64xf32> to vector<8x24x64xf32>
    %60 = tpu.concatenate %51, %52, %53, %54, %55, %56, %57, %58, %59 in 2 : vector<8x24x64xf32>, vector<8x24x64xf32>, vector<8x24x64xf32>, vector<8x24x64xf32>, vector<8x24x64xf32>, vector<8x24x64xf32>, vector<8x24x64xf32>, vector<8x24x64xf32>, vector<8x24x64xf32> -> vector<8x24x576xf32>
    %61 = vector.shape_cast %60 : vector<8x24x576xf32> to vector<192x576xf32>
    %62 = arith.truncf %61 : vector<192x576xf32> to vector<192x576xbf16>
    %c0_31 = arith.constant 0 : index
    %c0_32 = arith.constant 0 : index
    %63 = vector.load %arg4[%c0_31, %c0_32] : memref<576x64xbf16, #tpu.memory_space<vmem>>, vector<576x64xbf16>
    %cst_33 = arith.constant dense<0.000000e+00> : vector<192x64xf32>
    %64 = tpu.matmul %62, %63, %cst_33 {dimension_numbers = #tpu.dot_dimension_numbers<[1], [0], [0], [1], [0, 0, 1, 1], [], []>} : vector<192x576xbf16>, vector<576x64xbf16>, vector<192x64xf32> -> vector<192x64xf32>
    %c0_34 = arith.constant 0 : index
    %c0_35 = arith.constant 0 : index
    %65 = vector.load %arg7[%c0_34, %c0_35] : memref<1x64xf32, #tpu.memory_space<vmem>>, vector<1x64xf32>
    %66 = vector.broadcast %65 : vector<1x64xf32> to vector<192x64xf32>
    %67 = arith.addf %64, %66 : vector<192x64xf32>
    %cst_36 = arith.constant 0.000000e+00 : f32
    %68 = vector.broadcast %cst_36 : f32 to vector<192x64xf32>
    %69 = arith.maximumf %67, %68 : vector<192x64xf32>
    %70 = arith.truncf %69 : vector<192x64xf32> to vector<192x64xbf16>
    %c0_37 = arith.constant 0 : index
    %c0_38 = arith.constant 0 : index
    %71 = vector.load %arg5[%c0_37, %c0_38] : memref<64x256xbf16, #tpu.memory_space<vmem>>, vector<64x256xbf16>
    %cst_39 = arith.constant dense<0.000000e+00> : vector<192x256xf32>
    %72 = tpu.matmul %70, %71, %cst_39 {dimension_numbers = #tpu.dot_dimension_numbers<[1], [0], [0], [1], [0, 0, 1, 1], [], []>} : vector<192x64xbf16>, vector<64x256xbf16>, vector<192x256xf32> -> vector<192x256xf32>
    %c0_40 = arith.constant 0 : index
    %c0_41 = arith.constant 0 : index
    %73 = vector.load %arg8[%c0_40, %c0_41] : memref<1x256xf32, #tpu.memory_space<vmem>>, vector<1x256xf32>
    %74 = vector.broadcast %73 : vector<1x256xf32> to vector<192x256xf32>
    %75 = arith.addf %72, %74 : vector<192x256xf32>
    %c0_42 = arith.constant 0 : index
    %76 = arith.index_cast %0 : i32 to index
    %c0_43 = arith.constant 0 : index
    %c0_44 = arith.constant 0 : index
    %77 = vector.load %arg2[%c0_42, %76, %c0_43, %c0_44] : memref<1x24x24x256xbf16, #tpu.memory_space<vmem>>, vector<1x8x24x256xbf16>
    %78 = vector.shape_cast %77 : vector<1x8x24x256xbf16> to vector<8x24x256xbf16>
    %79 = vector.shape_cast %78 : vector<8x24x256xbf16> to vector<192x256xbf16>
    %80 = arith.extf %79 : vector<192x256xbf16> to vector<192x256xf32>
    %81 = arith.addf %75, %80 : vector<192x256xf32>
    %cst_45 = arith.constant 0.000000e+00 : f32
    %82 = vector.broadcast %cst_45 : f32 to vector<192x256xf32>
    %83 = arith.maximumf %81, %82 : vector<192x256xf32>
    %84 = vector.shape_cast %83 : vector<192x256xf32> to vector<8x24x256xf32>
    %85 = arith.truncf %84 : vector<8x24x256xf32> to vector<8x24x256xbf16>
    %c0_46 = arith.constant 0 : index
    %c0_47 = arith.constant 0 : index
    %c0_48 = arith.constant 0 : index
    %c0_49 = arith.constant 0 : index
    %86 = vector.load %arg9[%c0_46, %c0_47, %c0_48, %c0_49] : memref<1x8x24x256xbf16, #tpu.memory_space<vmem>>, vector<1x8x24x256xbf16>
    %87 = vector.shape_cast %86 : vector<1x8x24x256xbf16> to vector<8x24x256xbf16>
    %88 = vector.shape_cast %85 : vector<8x24x256xbf16> to vector<1x8x24x256xbf16>
    tpu.vector_store %arg9[%c0_46, %c0_47, %c0_48, %c0_49], %88 {strides = array<i32>} : memref<1x8x24x256xbf16, #tpu.memory_space<vmem>>, vector<1x8x24x256xbf16>,
    return
  }
  func.func @transform_0(%arg0: i32, %arg1: i32) -> (i32, i32, i32, i32) {
    %c0_i32 = arith.constant 0 : i32
    %c0_i32_0 = arith.constant 0 : i32
    %c0_i32_1 = arith.constant 0 : i32
    %c0_i32_2 = arith.constant 0 : i32
    return %arg0, %c0_i32, %c0_i32_0, %c0_i32_1 : i32, i32, i32, i32
  }
  func.func @transform_1(%arg0: i32, %arg1: i32) -> (i32, i32) {
    %c0_i32 = arith.constant 0 : i32
    %c0_i32_0 = arith.constant 0 : i32
    %c0_i32_1 = arith.constant 0 : i32
    return %c0_i32, %c0_i32_0 : i32, i32
  }
  func.func @transform_2(%arg0: i32, %arg1: i32) -> (i32, i32) {
    %c0_i32 = arith.constant 0 : i32
    %c0_i32_0 = arith.constant 0 : i32
    %c0_i32_1 = arith.constant 0 : i32
    return %c0_i32, %c0_i32_0 : i32, i32
  }
  func.func @transform_3(%arg0: i32, %arg1: i32) -> (i32, i32) {
    %c0_i32 = arith.constant 0 : i32
    %c0_i32_0 = arith.constant 0 : i32
    %c0_i32_1 = arith.constant 0 : i32
    return %c0_i32, %c0_i32_0 : i32, i32
  }
  func.func @transform_4(%arg0: i32, %arg1: i32) -> (i32, i32) {
    %c0_i32 = arith.constant 0 : i32
    %c0_i32_0 = arith.constant 0 : i32
    %c0_i32_1 = arith.constant 0 : i32
    return %c0_i32, %c0_i32_0 : i32, i32
  }
  func.func @transform_5(%arg0: i32, %arg1: i32) -> (i32, i32) {
    %c0_i32 = arith.constant 0 : i32
    %c0_i32_0 = arith.constant 0 : i32
    %c0_i32_1 = arith.constant 0 : i32
    return %c0_i32, %c0_i32_0 : i32, i32
  }
  func.func @transform_6(%arg0: i32, %arg1: i32) -> (i32, i32) {
    %c0_i32 = arith.constant 0 : i32
    %c0_i32_0 = arith.constant 0 : i32
    %c0_i32_1 = arith.constant 0 : i32
    return %c0_i32, %c0_i32_0 : i32, i32
  }
  func.func @transform_7(%arg0: i32, %arg1: i32) -> (i32, i32, i32, i32) {
    %c0_i32 = arith.constant 0 : i32
    %c0_i32_0 = arith.constant 0 : i32
    %c0_i32_1 = arith.constant 0 : i32
    return %arg0, %arg1, %c0_i32, %c0_i32_0 : i32, i32, i32, i32
  }
}

</mosaic_0001>

<bundles_post_ra>
// kernel: bottleneck_forward.1
= control target key start
LH: loop header
LB: loop body
LE: loop exit
PB: predicated region body
PF: predicated region fallthrough
CT: control target
= control target key end

     0   :  { %12 = vsyncpa [#allocation3], 0  ;;  %s5531_s0 = inlined_call_operand.vmem [shape: bf16[2,24,24,256], index: 0, kind: input, shape index: {}]   ;;  %s5532_s1 = inlined_call_operand.vmem [shape: bf16[256,64], index: 1, kind: input, shape index: {}]   ;;  %s5533_s2 = inlined_call_operand.vmem [shape: bf16[576,64], index: 2, kind: input, shape index: {}]   ;;  %s5534_s3 = inlined_call_operand.vmem [shape: bf16[64,256], index: 3, kind: input, shape index: {}]   ;;  %s5535_s4 = inlined_call_operand.vmem [shape: f32[1,64], index: 4, kind: input, shape index: {}]   ;;  %s5536_s5 = inlined_call_operand.vmem [shape: f32[1,64], index: 5, kind: input, shape index: {}]   ;;  %s5537_s6 = inlined_call_operand.vmem [shape: f32[1,256], index: 6, kind: input, shape index: {}]   ;;  %s5538_s7 = inlined_call_operand.hbm [shape: bf16[2,24,24,256], index: 7, kind: output, shape index: {}]  }
   0x1   :  { %14 = vsyncpa [#allocation3 + $0x1], 0  ;;  %s3761_s24 = smov 0   ;;  %s3763_s25 = smov 0  }
   0x2   :  { %s3765_s26 = smov 0   ;;  %s3767_s27 = smov 0  }
   0x3   :  { %s3769_s28 = smov 0   ;;  %s3771_s29 = smov 0  }
   0x4   :  { %s3773_s30 = smov 0   ;;  %s3775_s8 = smov 0  }
   0x5 LB: > { %s2831_s9 = sadd.s32 4294967295, %s3716_s8   ;;  %s2832_s10 = sadd.s32 4294967294, %s3716_s8   ;;  %s3716_s8 = sphi %s3775_s8, %s20_s8   ;;  %s3712_s30 = sphi %s3773_s30, %s5661_s30   ;;  %s3708_s29 = sphi %s3771_s29, %s5660_s29   ;;  %s3704_s28 = sphi %s3769_s28, %s5659_s28   ;;  %s3700_s27 = sphi %s3767_s27, %s5658_s27   ;;  %s3696_s26 = sphi %s3765_s26, %s5657_s26   ;;  %s3692_s25 = sphi %s3763_s25, %s5656_s25   ;;  %s3688_s24 = sphi %s3761_s24, %s5655_s24  }
   0x6   : > { %s29_s11 = sadd.s32 1, %s3708_s29  ;;  %s32_s12 = sadd.s32 1, %s3712_s30 }
   0x7   : > { %p30_p0 = scmp.ge.s32.totalorder %s29_s11, 3  ;;  %p203_p1 = scmp.ne.s32.totalorder %s3696_s26, %s3692_s25 }
   0x8   : > { %p204_p2 = scmp.eq.s32.totalorder %s2831_s9, 5  ;;  %p209_p5 = scmp.ne.s32.totalorder %s3692_s25, %s3688_s24 }
   0x9   : > { %s5663_s11 = smov (%p30_p0, %s29_s11), 0  ;;  %s5665_s12 = smov (!%p30_p0, %s32_s12), %s3712_s30 }
   0xa   : > { %s189_s13 = ssub.s32 %s3708_s29, %s5663_s11  ;;  %p3812_p3 = por %p204_p2, %p203_p1 }
   0xb   : > { %p34_p4 = scmp.ge.s32.totalorder %s5665_s12, 2  ;;  %p210_p6 = scmp.eq.s32.totalorder %s2832_s10, 5 }
   0xc   : > { %p2835_p7 = scmp.ge.s32.totalorder %s3716_s8, 1  ;;  %p254_p9 = scmp.lt.s32.totalorder %s3716_s8, 7 }
   0xd   : > { %s5667_s12 = smov (%p34_p4, %s5665_s12), 0  ;;  %p3821_p8 = por %p210_p6, %p209_p5 }
   0xe   : > { %5580 = sst [smem:[#allocation5_spill]] %s5667_s12  ;;  %s188_s16 = ssub.s32 %s3712_s30, %s5667_s12 }
   0xf   : > { %s193_s17 = sadd.s32 1, %s3696_s26  ;;  %s190_s18 = sor.u32 %s189_s13, %s188_s16 }
  0x10   : > { %p255_p10 = pnand %p2835_p7, %p254_p9  ;;  %p191_p11 = scmp.eq.s32.totalorder %s190_s18, 0 }
  0x12   : > { %s3830_s19 = scalar_select %p191_p11, %s3696_s26, %s193_s17  }
  0x13   : > { %258 = sbr.rel (%p255_p10) target bundleno = 1053 (0x41d), region = 48 }
  0x18   : > { %v3835_v0 = vld [vmem:[%s5532_s1 + $0x38] sm:$0xff]  ;;  %v3842_v1 = vld [vmem:[%s5532_s1 + $0x30] sm:$0xff]  ;;  %v3861_v4 = vld [vmem:[%s5532_s1 + $0x28] sm:$0xff]  ;;  %p286_p12 = scmp.lt.s32.totalorder %s3704_s28, 1  ;;  %s2837_s16 = sshll.u32 %s3700_s27, 3  ;;  %vm910_vm1 = vcmask 1040384  }
  0x19   : > { %3327 = vmatpush.bf16.msra.mxu1 %v3835_v0  ;;  %3328 = vmatpush.bf16.msra.mxu2 %v3835_v0  ;;  %v3847_v2 = vld [vmem:[%s5532_s1 + $0x78] sm:$0xff]  ;;  %v3854_v3 = vld [vmem:[%s5532_s1 + $0x70] sm:$0xff]  ;;  %v3869_v5 = vld [vmem:[%s5532_s1 + $0x68] sm:$0xff]  ;;  %s3000_s21 = sadd.s32 4294967295, %s2837_s16  ;;  %p865_p0 = scmp.gt.s32.totalorder %s3700_s27, 0  ;;  %vm1037_vm2 = vcmask 1046528  }
  0x1a   : > { %573 = vmatpush.bf16.msra.mxu0 %v3835_v0  ;;  %779 = vmatpush.bf16.msra.mxu3 %v3847_v2  ;;  %v3876_v6 = vld [vmem:[%s5532_s1 + $0x20] sm:$0xff]  ;;  %s287_s9 = scalar_select %p286_p12, %s3704_s28, 1  ;;  %v3892_v8 = vld [vmem:[%s5532_s1 + $0x18] sm:$0xff]  ;;  %v3908_v10 = vld [vmem:[%s5532_s1 + $0x10] sm:$0xff]  ;;  %vm1471_vm3 = vcmask 523264   ;;  %vm1166_vm4 = vcmask 1045504  }
  0x1b   : > { %v3884_v7 = vld [vmem:[%s5532_s1 + $0x60] sm:$0xff]  ;;  %v3901_v9 = vld [vmem:[%s5532_s1 + $0x58] sm:$0xff]  ;;  %p736_p13 = scmp.gt.s32.totalorder %s3000_s21, 0  ;;  %v3271_v11 = vld [vmem:[%s5532_s1 + $0x50] sm:$0xff]  ;;  %s800_s23 = sadd.s32 8, %s2837_s16 }
  0x1c   : > { %s3348_s20 = smul.u32 576, %s287_s9  ;;  %v3926_v12 = vld [vmem:[%s5532_s1 + $0x8] sm:$0xff]  ;;  %v3938_v14 = vld [vmem:[%s5532_s1] sm:$0xff]  ;;  %p801_p1 = scmp.lt.s32.totalorder %s800_s23, 23 }
  0x1d   : > { %3329 = vmatpush.bf16.msra.mxu1 %v3842_v1  ;;  %3330 = vmatpush.bf16.msra.mxu2 %v3842_v1  ;;  %s3236_s9 = smul.u32 192, %s3700_s27  ;;  %s5669_s21 = smov (!%p736_p13, %s3000_s21), 0  ;;  %v3270_v13 = vld [vmem:[%s5532_s1 + $0x48] sm:$0xff]  ;;  %v3269_v19 = vld [vmem:[%s5532_s1 + $0x40] sm:$0xff] }
  0x1e   : > { %574 = vmatpush.bf16.msra.mxu0 %v3842_v1  ;;  %780 = vmatpush.bf16.msra.mxu3 %v3854_v3  ;;  %s3914_s12 = scalar_lea.vmem %s5531_s0, %s3348_s20  ;;  %s5671_s23 = smov (!%p801_p1, %s800_s23), 23 }
  0x1f   : > { %s3929_s20 = scalar_lea.vmem %s3914_s12, %s3236_s9  ;;  %s3277_s9 = smul.u32 24, %s5669_s21 }
  0x20   : > { %v2882_v15 = vld [vmem:[%s3929_s20 + $0x50] sm:$0xf]  ;;  %v3248_v16 = vld [vmem:[%s3929_s20 + $0x54] sm:$0xf0]  ;;  %v2922_v17 = vld [vmem:[%s3929_s20 + $0xa0] sm:$0xf] }
  0x21   : > { %3331 = vmatpush.bf16.msra.mxu1 %v3861_v4  ;;  %3332 = vmatpush.bf16.msra.mxu2 %v3861_v4  ;;  %v3258_v18 = vld [vmem:[%s3929_s20 + $0xa4] sm:$0xf0]  ;;  %v2883_v20 = vor.u32 %v3248_v16, %v2882_v15  ;;  %s3955_s17 = scalar_lea.vmem %s3914_s12, %s3277_s9  ;;  %v2890_v25 = vld [vmem:[%s3929_s20 + $0x60] sm:$0xf]  ;;  %v2930_v27 = vld [vmem:[%s3929_s20 + $0xb0] sm:$0xf] }
  0x22   : > { %575 = vmatpush.bf16.msra.mxu0 %v3861_v4  ;;  %781 = vmatpush.bf16.msra.mxu3 %v3869_v5  ;;  %v2923_v21 = vor.u32 %v3258_v18, %v2922_v17  ;;  %v3278_v22 = vld [vmem:[%s3955_s17 + $0x4] sm:$0xf]  ;;  %v3006_v23 = vld [vmem:[%s3955_s17 + $0x8] sm:$0xf0]  ;;  %v3250_v26 = vld [vmem:[%s3929_s20 + $0x64] sm:$0xf0] }
  0x23   : > { %v3009_v24 = vor.u32 %v3278_v22, %v3006_v23  ;;  %v3260_v28 = vld [vmem:[%s3929_s20 + $0xb4] sm:$0xf0]  ;;  %v2891_v29 = vor.u32 %v3250_v26, %v2890_v25  ;;  %v743_v31 = vld [vmem:[%s3955_s17 + $0x10] sm:$0xff]  ;;  %v3004_v36 = vld [vmem:[%s3955_s17] sm:$0xf]  ;;  %s3718_s9 = smov 64  }
  0x24   : > { %v2931_v30 = vor.u32 %v3260_v28, %v2930_v27  ;;  %v752_v32 = vunpack.c.h.b16 %v743_v31  ;;  %v2898_v34 = vld [vmem:[%s3929_s20 + $0x70] sm:$0xf]  ;;  %v3252_v35 = vld [vmem:[%s3929_s20 + $0x74] sm:$0xf0]  ;;  %v3279_v37 = vld [vmem:[%s3955_s17 + $0x4] sm:$0xf0]  ;;  %v751_v43 = vunpack.c.l.b16 %v743_v31 }
  0x25   : > { %3333 = vmatpush.bf16.msra.mxu1 %v3876_v6  ;;  %3334 = vmatpush.bf16.msra.mxu2 %v3876_v6  ;;  %v2899_v38 = vor.u32 %v3252_v35, %v2898_v34  ;;  %v3005_v39 = vor.u32 %v3279_v37, %v3004_v36  ;;  %v2842_v40 = vld [vmem:[%s3929_s20] sm:$0xf]  ;;  %v3238_v41 = vld [vmem:[%s3929_s20 + $0x4] sm:$0xf0]  ;;  %v2850_v48 = vld [vmem:[%s3929_s20 + $0x10] sm:$0xf] }
  0x26   : > { %576 = vmatpush.bf16.msra.mxu0 %v3876_v6  ;;  %782 = vmatpush.bf16.msra.mxu3 %v3884_v7  ;;  %v756_v33 = vpack.c.b16 %v752_v32, %v752_v32  ;;  %v2843_v42 = vor.u32 %v3238_v41, %v2842_v40  ;;  %v2906_v44 = vld [vmem:[%s3929_s20 + $0x80] sm:$0xf]  ;;  %v3254_v45 = vld [vmem:[%s3929_s20 + $0x84] sm:$0xf0]  ;;  %v755_v47 = vpack.c.b16 %v751_v43, %v751_v43  ;;  %v3240_v49 = vld [vmem:[%s3929_s20 + $0x14] sm:$0xf0] }
  0x27   : > { %v2907_v46 = vor.u32 %v3254_v45, %v2906_v44  ;;  %v2851_v50 = vor.u32 %v3240_v49, %v2850_v48  ;;  %v2914_v51 = vld [vmem:[%s3929_s20 + $0x90] sm:$0xf]  ;;  %v3256_v52 = vld [vmem:[%s3929_s20 + $0x94] sm:$0xf0]  ;;  %v2858_v54 = vld [vmem:[%s3929_s20 + $0x20] sm:$0xf] }
  0x28   : > { %v2915_v53 = vor.u32 %v3256_v52, %v2914_v51  ;;  %v3242_v55 = vld [vmem:[%s3929_s20 + $0x24] sm:$0xf0]  ;;  %v3237_v57 = vld [vmem:[%s3929_s20 + $0x4] sm:$0xf]  ;;  %v2844_v58 = vld [vmem:[%s3929_s20 + $0x8] sm:$0xf0] }
  0x29   : > { %3335 = vmatpush.bf16.msra.mxu1 %v3892_v8  ;;  %3336 = vmatpush.bf16.msra.mxu2 %v3892_v8  ;;  %v2859_v56 = vor.u32 %v3242_v55, %v2858_v54  ;;  %v2847_v59 = vor.u32 %v3237_v57, %v2844_v58  ;;  %v3239_v60 = vld [vmem:[%s3929_s20 + $0x14] sm:$0xf]  ;;  %v2852_v61 = vld [vmem:[%s3929_s20 + $0x18] sm:$0xf0]  ;;  %v2866_v62 = vld [vmem:[%s3929_s20 + $0x30] sm:$0xf] }
  0x2a   : > { %577 = vmatpush.bf16.msra.mxu0 %v3892_v8  ;;  %783 = vmatpush.bf16.msra.mxu3 %v3901_v9  ;;  %v3244_v63 = vld [vmem:[%s3929_s20 + $0x34] sm:$0xf0]  ;;  %v3245_v15 = vld [vmem:[%s3929_s20 + $0x44] sm:$0xf]  ;;  %v2876_v16 = vld [vmem:[%s3929_s20 + $0x48] sm:$0xf0] }
  0x2b   : > { %v2879_v18 = vor.u32 %v3245_v15, %v2876_v16  ;;  %v2884_v25 = vld [vmem:[%s3929_s20 + $0x58] sm:$0xf0]  ;;  %s866_s22 = scalar_select %p865_p0, 1, 0  ;;  %v3249_v35 = vld [vmem:[%s3929_s20 + $0x64] sm:$0xf] }
  0x2c   : > { %v2892_v36 = vld [vmem:[%s3929_s20 + $0x68] sm:$0xf0]  ;;  %v3251_v57 = vld [vmem:[%s3929_s20 + $0x74] sm:$0xf]  ;;  %v2900_v58 = vld [vmem:[%s3929_s20 + $0x78] sm:$0xf0] }
  0x2d   : > { %3337 = vmatpush.bf16.msra.mxu1 %v3908_v10  ;;  %3338 = vmatpush.bf16.msra.mxu2 %v3908_v10  ;;  %v867_v37 = vstv %s866_s22  ;;  %v2895_v40 = vor.u32 %v3249_v35, %v2892_v36  ;;  %s3280_s10 = smul.u32 24, %s5671_s23  ;;  %v3255_v43 = vld [vmem:[%s3929_s20 + $0x94] sm:$0xf]  ;;  %s872_s18 = sadd.s32 1, %s3700_s27 }
  0x2e   : > { %578 = vmatpush.bf16.msra.mxu0 %v3908_v10  ;;  %784 = vmatpush.bf16.msra.mxu3 %v3271_v11  ;;  %vm4051_vm0 = vcmp.eq.s32.totalorder %v867_v37, 1  ;;  %p4539_p2 = scmp.lt.s32.totalorder %s872_s18, 3  ;;  %s3349_s13 = smul.u32 48, %s3700_s27 }
  0x2f   : > { %s4091_s16 = scalar_lea.vmem %s3914_s12, %s3280_s10  ;;  %s3350_s17 = smul.u32 144, %s3704_s28 }
  0x30   : > { %v3281_v37 = vld [vmem:[%s4091_s16 + $0x4] sm:$0xf] }
  0x31   : > { %3339 = vmatpush.bf16.msra.mxu1 %v3926_v12  ;;  %3340 = vmatpush.bf16.msra.mxu2 %v3926_v12  ;;  %s2743_s21 = sadd.s32 %s3350_s17, %s3349_s13 }
  0x32   : > { %579 = vmatpush.bf16.msra.mxu0 %v3926_v12  ;;  %785 = vmatpush.bf16.msra.mxu3 %v3270_v13  ;;  %s3233_s27 = sshll.u32 %s2743_s21, 2 }
  0x33   : > { %s2745_s18 = scalar_lea.hbm %s5538_s7, %s3233_s27  ;;  %s3642_s27 = scalar_lea.hbm %s5538_s7, 1152 }
  0x34   : > { %s2748_s23 = sshll.u32 %s2745_s18, 4  ;;  %s2749_s23 = int_to_ptr.hbm [resolvable:$true] %s2748_s23 }
  0x35   : > { %3341 = vmatpush.bf16.msra.mxu1 %v3938_v14  ;;  %3342 = vmatpush.bf16.msra.mxu2 %v3938_v14 }
  0x36   : > { %786 = vmatpush.bf16.msra.mxu3 %v3269_v19  ;;  %580 = vmatpush.bf16.msra.mxu0 %v3938_v14 }
  0x38   : > { %606 = vmatmul.bf16.vlgmr.msra.gmra.mxu1 %v2883_v20  ;;  %631 = vmatmul.bf16.vlgmr.msra.gmra.mxu2 %v2923_v21 }
  0x39   : > { %642 = vmatpush.bf16.msrb.mxu1 %v3847_v2  ;;  %761 = vmatpush.bf16.msrb.mxu2 %v3835_v0 }
  0x3a   : > { %844 = vmatpush.bf16.msrb.mxu3 %v3847_v2  ;;  %581 = vmatmul.bf16.vlgmr.msra.gmra.mxu0 %v2843_v42  ;;  %v3241_v2 = vld [vmem:[%s3929_s20 + $0x24] sm:$0xf] }
  0x3b   : > { %787 = vmatmul.bf16.vlgmr.msra.gmra.mxu3 %v3009_v24  ;;  %v3247_v24 = vld [vmem:[%s3929_s20 + $0x54] sm:$0xf] }
  0x3c   : > { %v2887_v27 = vor.u32 %v3247_v24, %v2884_v25 }
  0x3d   : > { %762 = vmatpush.bf16.msrb.mxu2 %v3842_v1  ;;  %643 = vmatpush.bf16.msrb.mxu1 %v3854_v3 }
  0x3e   : > { %845 = vmatpush.bf16.msrb.mxu3 %v3854_v3  ;;  %v2860_v3 = vld [vmem:[%s3929_s20 + $0x28] sm:$0xf0] }
  0x41   : > { %763 = vmatpush.bf16.msrb.mxu2 %v3861_v4  ;;  %644 = vmatpush.bf16.msrb.mxu1 %v3869_v5 }
  0x42   : > { %846 = vmatpush.bf16.msrb.mxu3 %v3869_v5  ;;  %v3246_v5 = vld [vmem:[%s3929_s20 + $0x44] sm:$0xf0] }
  0x45   : > { %764 = vmatpush.bf16.msrb.mxu2 %v3876_v6  ;;  %645 = vmatpush.bf16.msrb.mxu1 %v3884_v7 }
  0x46   : > { %847 = vmatpush.bf16.msrb.mxu3 %v3884_v7 }
  0x48   : > { %611 = vmatmul.bf16.gmra.mxu1 %v2891_v29  ;;  %636 = vmatmul.bf16.gmra.mxu2 %v2931_v30  ;;  %v4040_v30 = vld [vmem:[%s5535_s4] ss:$0 sm:$0xff] }
  0x49   : > { %765 = vmatpush.bf16.msrb.mxu2 %v3892_v8  ;;  %646 = vmatpush.bf16.msrb.mxu1 %v3901_v9 }
  0x4a   : > { %848 = vmatpush.bf16.msrb.mxu3 %v3901_v9  ;;  %586 = vmatmul.bf16.gmra.mxu0 %v2851_v50  ;;  %v2868_v9 = vld [vmem:[%s3929_s20 + $0x38] sm:$0xf0] }
  0x4b   : > { %792 = vmatmul.bf16.gmra.mxu3 %v756_v33 }
  0x4d   : > { %766 = vmatpush.bf16.msrb.mxu2 %v3908_v10  ;;  %647 = vmatpush.bf16.msrb.mxu1 %v3271_v11 }
  0x4e   : > { %849 = vmatpush.bf16.msrb.mxu3 %v3271_v11 }
  0x51   : > { %767 = vmatpush.bf16.msrb.mxu2 %v3926_v12  ;;  %648 = vmatpush.bf16.msrb.mxu1 %v3270_v13 }
  0x52   : > { %850 = vmatpush.bf16.msrb.mxu3 %v3270_v13 }
  0x55   : > { %768 = vmatpush.bf16.msrb.mxu2 %v3938_v14  ;;  %649 = vmatpush.bf16.msrb.mxu1 %v3269_v19 }
  0x56   : > { %851 = vmatpush.bf16.msrb.mxu3 %v3269_v19 }
  0x58   : > { %616 = vmatmul.bf16.gmra.mxu1 %v2899_v38  ;;  %769 = vmatmul.bf16.vlgmr.msrb.gmra.mxu2 %v3005_v39 }
  0x59   : > { %826 = vmatpush.bf16.msra.mxu2 %v3835_v0  ;;  %v2855_v0 = vor.u32 %v3239_v60, %v2852_v61 }
  0x5a   : > { %591 = vmatmul.bf16.gmra.mxu0 %v2859_v56 }
  0x5d   : > { %827 = vmatpush.bf16.msra.mxu2 %v3842_v1  ;;  %v2867_v1 = vor.u32 %v3244_v63, %v2866_v62 }
  0x61   : > { %828 = vmatpush.bf16.msra.mxu2 %v3861_v4  ;;  %v2874_v4 = vld [vmem:[%s3929_s20 + $0x40] sm:$0xf] }
  0x62   : > { %v2875_v7 = vor.u32 %v3246_v5, %v2874_v4 }
  0x65   : > { %829 = vmatpush.bf16.msra.mxu2 %v3876_v6  ;;  %v2863_v6 = vor.u32 %v3241_v2, %v2860_v3 }
  0x68   : > { %621 = vmatmul.bf16.gmra.mxu1 %v2907_v46  ;;  %774 = vmatmul.bf16.gmra.mxu2 %v755_v47 }
  0x69   : > { %830 = vmatpush.bf16.msra.mxu2 %v3892_v8  ;;  %v3243_v8 = vld [vmem:[%s3929_s20 + $0x34] sm:$0xf] }
  0x6a   : > { %596 = vmatmul.bf16.gmra.mxu0 %v2867_v1  ;;  %v2903_v1 = vor.u32 %v3251_v57, %v2900_v58 }
  0x6d   : > { %831 = vmatpush.bf16.msra.mxu2 %v3908_v10  ;;  %v2871_v10 = vor.u32 %v3243_v8, %v2868_v9 }
  0x71   : > { %832 = vmatpush.bf16.msra.mxu2 %v3926_v12 }
  0x75   : > { %833 = vmatpush.bf16.msra.mxu2 %v3938_v14 }
  0x78   : > { %626 = vmatmul.bf16.gmra.mxu1 %v2915_v53 }
  0x7a   : > { %601 = vmatmul.bf16.gmra.mxu0 %v2875_v7 }
  0x88   : > { %650 = vmatmul.bf16.vlgmr.msrb.gmra.mxu1 %v2847_v59 }
  0x98   : > { %655 = vmatmul.bf16.gmra.mxu1 %v2855_v0 }
  0xa8   : > { %660 = vmatmul.bf16.gmra.mxu1 %v2863_v6 }
  0xb5   : > { %v4015_v11 = vpop.f32.mrf.mxu1 }
  0xb7   : > { %v582_v59 = vpop.f32.mrf.mxu0 }
  0xb8   : > { %665 = vmatmul.bf16.gmra.mxu1 %v2871_v10  ;;  %v3253_v10 = vld [vmem:[%s3929_s20 + $0x84] sm:$0xf]  ;;  %v583_v15 = vadd.f32 %v4040_v30, %v582_v59 }
  0xbb   : > { %v4017_v12 = vpop.f32.mrf.mxu2 }
  0xbd   : > { %v4019_v13 = vpop.f32.mrf.mxu1 }
  0xbe   : > { %v788_v14 = vpop.f32.mrf.mxu3 }
  0xbf   : > { %v584_v8 = vpop.f32.mrf.mxu0 }
  0xc0   : > { %v585_v25 = vadd.f32 %v4040_v30, %v584_v8 }
  0xc3   : > { %v4023_v17 = vpop.f32.mrf.mxu2 }
  0xc5   : > { %v4025_v19 = vpop.f32.mrf.mxu1 }
  0xc6   : > { %v790_v20 = vpop.f32.mrf.mxu3 }
  0xc8   : > { %670 = vmatmul.bf16.gmra.mxu1 %v2879_v18 }
  0xcb   : > { %v4027_v21 = vpop.f32.mrf.mxu2 }
  0xcd   : > { %v4029_v22 = vpop.f32.mrf.mxu1 }
  0xce   : > { %v793_v23 = vpop.f32.mrf.mxu3 }
  0xd3   : > { %v4033_v26 = vpop.f32.mrf.mxu2 }
  0xd5   : > { %v4035_v28 = vpop.f32.mrf.mxu1 }
  0xd6   : > { %v795_v29 = vpop.f32.mrf.mxu3 }
  0xd7   : > { %v3013_v29 = vld [vmem:[%s4091_s16] sm:$0xf] }
  0xd8   : > { %675 = vmatmul.bf16.gmra.mxu1 %v2887_v27 }
  0xdb   : > { %v770_v31 = vpop.f32.mrf.mxu2 }
  0xdc   : > { %v771_v32 = vadd.f32 %v4040_v30, %v770_v31  ;;  %v3282_v31 = vld [vmem:[%s4091_s16 + $0x4] sm:$0xf0] }
  0xdd   : > { %v4044_v33 = vpop.f32.mrf.mxu1  ;;  %v3014_v35 = vor.u32 %v3282_v31, %v3013_v29 }
  0xde   : > { %v789_v34 = vadd.f32 %v788_v14, %v771_v32  ;;  %v2908_v14 = vld [vmem:[%s3929_s20 + $0x88] sm:$0xf0] }
  0xdf   : > { %v2911_v16 = vor.u32 %v3253_v10, %v2908_v14  ;;  %834 = vmatmul.bf16.vlgmr.msra.gmra.mxu2 %v3014_v35 }
  0xe0   : > { %v797_v41 = vmax.f32 %v789_v34, 0.0 }
  0xe2   : > { %v869_v46 = vsel %vm4051_vm0, %v797_v41, 0.0 }
  0xe3   : > { %v772_v38 = vpop.f32.mrf.mxu2  ;;  %v911_v49 = vrot.slane %v869_v46, 7 }
  0xe4   : > { %v773_v39 = vadd.f32 %v4040_v30, %v772_v38  ;;  %v3015_v38 = vld [vmem:[%s4091_s16 + $0x8] sm:$0xf0] }
  0xe5   : > { %v4049_v42 = vpop.f32.mrf.mxu1  ;;  %v4063_v54 = vsel %vm910_vm1, 0.0, %v911_v49  ;;  %v3018_v41 = vor.u32 %v3281_v37, %v3015_v38 }
  0xe6   : > { %v791_v44 = vadd.f32 %v790_v20, %v773_v39  ;;  %v1038_v63 = vrot.slane %v4063_v54, 1  ;;  %v587_v20 = vpop.f32.mrf.mxu0 }
  0xe7   : > { %v588_v46 = vadd.f32 %v4040_v30, %v587_v20  ;;  %852 = vmatmul.bf16.vlgmr.msrb.gmra.mxu3 %v3018_v41 }
  0xe8   : > { %v798_v45 = vmax.f32 %v791_v44, 0.0  ;;  %680 = vmatmul.bf16.gmra.mxu1 %v2895_v40  ;;  %v2916_v44 = vld [vmem:[%s3929_s20 + $0x98] sm:$0xf0] }
  0xea   : > { %v870_v47 = vsel %vm4051_vm0, %v798_v45, 0.0 }
  0xeb   : > { %v775_v48 = vpop.f32.mrf.mxu2  ;;  %v912_v50 = vrot.slane %v870_v47, 7 }
  0xec   : > { %v776_v51 = vadd.f32 %v4040_v30, %v775_v48 }
  0xed   : > { %v4060_v52 = vpop.f32.mrf.mxu1  ;;  %v4066_v55 = vsel %vm910_vm1, %v911_v49, %v912_v50 }
  0xee   : > { %v794_v53 = vadd.f32 %v793_v23, %v776_v51  ;;  %v1039_v0 = vrot.slane %v4066_v55, 1  ;;  %v589_v36 = vpop.f32.mrf.mxu0 }
  0xef   : > { %v590_v29 = vadd.f32 %v4040_v30, %v589_v36 }
  0xf0   : > { %v799_v56 = vmax.f32 %v794_v53, 0.0  ;;  %v1040_v4 = vsel %vm1037_vm2, %v1038_v63, %v1039_v0 }
  0xf2   : > { %v871_v60 = vsel %vm4051_vm0, %v799_v56, 0.0 }
  0xf3   : > { %v914_v61 = vrot.slane %v871_v60, 7  ;;  %v777_v62 = vpop.f32.mrf.mxu2 }
  0xf5   : > { %v4075_v2 = vsel %vm910_vm1, %v912_v50, %v914_v61  ;;  %v4077_v3 = vpop.f32.mrf.mxu1  ;;  %v4099_v39 = vsel %vm910_vm1, %v914_v61, 0.0  ;;  %v2919_v50 = vor.u32 %v3255_v43, %v2916_v44 }
  0xf6   : > { %v1041_v5 = vrot.slane %v4075_v2, 1  ;;  %v1043_v48 = vrot.slane %v4099_v39, 1  ;;  %v592_v62 = vpop.f32.mrf.mxu0 }
  0xf8   : > { %685 = vmatmul.bf16.gmra.mxu1 %v2903_v1  ;;  %v1042_v6 = vsel %vm1037_vm2, %v1039_v0, %v1041_v5  ;;  %v1044_v58 = vsel %vm1037_vm2, %v1041_v5, %v1043_v48  ;;  %v808_v0 = vld [vmem:[%s4091_s16 + $0x10] sm:$0xff]  ;;  %s874_s16 = scalar_select %p4539_p2, 1, 0 }
  0xf9   : > { %v3425_v7 = vpack.i.bf16 %v1042_v6, %v1040_v4  ;;  %v816_v5 = vunpack.c.l.b16 %v808_v0  ;;  %v817_v14 = vunpack.c.h.b16 %v808_v0 }
  0xfb   : > { %3426 = vrot.lane.b32.xlu0 %v3425_v7, %s3718_s9  ;;  %v820_v10 = vpack.c.b16 %v816_v5, %v816_v5  ;;  %v821_v20 = vpack.c.b16 %v817_v14, %v817_v14  ;;  %v3289_v14 = vld [vmem:[%s5533_s2 + $0x30] sm:$0xff] }
  0xfd   : > { %v4085_v9 = vpop.f32.mrf.mxu1  ;;  %839 = vmatmul.bf16.gmra.mxu2 %v820_v10  ;;  %857 = vmatmul.bf16.gmra.mxu3 %v821_v20 }
 0x105   : > { %v651_v18 = vpop.f32.mrf.mxu1 }
 0x106   : > { %v652_v23 = vadd.f32 %v651_v18, %v583_v15 }
 0x108   : > { %690 = vmatmul.bf16.gmra.mxu1 %v2911_v16  ;;  %v711_v24 = vmax.f32 %v652_v23, 0.0  ;;  %v3257_v23 = vld [vmem:[%s3929_s20 + $0xa4] sm:$0xf] }
 0x10a   : > { %v916_v32 = vrot.slane %v711_v24, 7  ;;  %v2924_v24 = vld [vmem:[%s3929_s20 + $0xa8] sm:$0xf0] }
 0x10b   : > { %v2927_v31 = vor.u32 %v3257_v23, %v2924_v24  ;;  %v3288_v24 = vld [vmem:[%s5533_s2 + $0x28] sm:$0xff] }
 0x10c   : > { %v4104_v45 = vsel %vm910_vm1, 0.0, %v916_v32 }
 0x10d   : > { %v653_v27 = vpop.f32.mrf.mxu1  ;;  %v1045_v51 = vrot.slane %v4104_v45, 1 }
 0x10e   : > { %v654_v34 = vadd.f32 %v653_v27, %v585_v25  ;;  %v593_v25 = vadd.f32 %v4040_v30, %v592_v62  ;;  %v594_v27 = vpop.f32.mrf.mxu0 }
 0x10f   : > { %v595_v41 = vadd.f32 %v4040_v30, %v594_v27 }
 0x110   : > { %v712_v40 = vmax.f32 %v654_v34, 0.0 }
 0x112   : > { %v917_v47 = vrot.slane %v712_v40, 7 }
 0x114   : > { %v4109_v49 = vsel %vm910_vm1, %v916_v32, %v917_v47 }
 0x115   : > { %v656_v53 = vpop.f32.mrf.mxu1  ;;  %v1046_v56 = vrot.slane %v4109_v49, 1 }
 0x116   : > { %v657_v57 = vadd.f32 %v656_v53, %v588_v46  ;;  %v597_v40 = vpop.f32.mrf.mxu0 }
 0x117   : > { %v4115_v59 = vsel %vm1037_vm2, %v1045_v51, %v1046_v56  ;;  %v2932_v51 = vld [vmem:[%s3929_s20 + $0xb8] sm:$0xf0] }
 0x118   : > { %v713_v60 = vmax.f32 %v657_v57, 0.0  ;;  %695 = vmatmul.bf16.gmra.mxu1 %v2919_v50  ;;  %v3430_v61 = vpack.i.bf16 %v4115_v59, %v1044_v58  ;;  %v3259_v50 = vld [vmem:[%s3929_s20 + $0xb4] sm:$0xf]  ;;  %v598_v57 = vadd.f32 %v4040_v30, %v597_v40 }
 0x119   : > { %v2935_v62 = vor.u32 %v3259_v50, %v2932_v51 }
 0x11a   : > { %v919_v63 = vrot.slane %v713_v60, 7  ;;  %3431 = vrot.lane.b32.xlu0 %v3430_v61, %s3718_s9  ;;  %v3290_v60 = vld [vmem:[%s5533_s2 + $0x38] sm:$0xff] }
 0x11b   : > { %1929 = vmatpush.bf16.msrb.mxu2 %v3290_v60 }
 0x11c   : > { %v4121_v1 = vsel %vm910_vm1, %v917_v47, %v919_v63  ;;  %v4124_v4 = vsel %vm910_vm1, %v919_v63, 0.0 }
 0x11d   : > { %v1050_v6 = vrot.slane %v4124_v4, 1  ;;  %v658_v7 = vpop.f32.mrf.mxu1  ;;  %v1048_v8 = vrot.slane %v4121_v1, 1 }
 0x11e   : > { %v659_v34 = vadd.f32 %v658_v7, %v590_v29 }
 0x11f   : > { %v4129_v15 = vsel %vm1037_vm2, %v1046_v56, %v1048_v8  ;;  %v4132_v16 = vsel %vm1037_vm2, %v1048_v8, %v1050_v6  ;;  %v599_v6 = vpop.f32.mrf.mxu0  ;;  %1930 = vmatpush.bf16.msrb.mxu2 %v3289_v14 }
 0x120   : > { %v3435_v18 = vpack.i.bf16 %v4132_v16, %v4129_v15  ;;  %v714_v38 = vmax.f32 %v659_v34, 0.0  ;;  %v600_v23 = vadd.f32 %v4040_v30, %v599_v6 }
 0x122   : > { %3436 = vrot.lane.b32.xlu1 %v3435_v18, %s3718_s9  ;;  %v921_v46 = vrot.slane %v714_v38, 7 }
 0x123   : > { %1931 = vmatpush.bf16.msrb.mxu2 %v3288_v24  ;;  %v3283_v24 = vld [vmem:[%s5533_s2] sm:$0xff] }
 0x124   : > { %v4148_v53 = vsel %vm910_vm1, 0.0, %v921_v46 }
 0x125   : > { %v661_v32 = vpop.f32.mrf.mxu1  ;;  %v1052_v63 = vrot.slane %v4148_v53, 1 }
 0x126   : > { %v662_v35 = vadd.f32 %v661_v32, %v593_v25  ;;  %v3287_v32 = vld [vmem:[%s5533_s2 + $0x20] sm:$0xff] }
 0x127   : > { %1932 = vmatpush.bf16.msrb.mxu2 %v3287_v32 }
 0x128   : > { %v715_v37 = vmax.f32 %v662_v35, 0.0  ;;  %700 = vmatmul.bf16.gmra.mxu1 %v2927_v31  ;;  %v602_v31 = vpop.f32.mrf.mxu0 }
 0x129   : > { %v603_v40 = vadd.f32 %v4040_v30, %v602_v31 }
 0x12a   : > { %v922_v43 = vrot.slane %v715_v37, 7 }
 0x12c   : > { %v4143_v48 = vsel %vm910_vm1, %v921_v46, %v922_v43 }
 0x12d   : > { %v663_v44 = vpop.f32.mrf.mxu1  ;;  %v1053_v58 = vrot.slane %v4143_v48, 1 }
 0x12e   : > { %v664_v47 = vadd.f32 %v663_v44, %v595_v41 }
 0x12f   : > { %v4161_v8 = vsel %vm1037_vm2, %v1052_v63, %v1053_v58  ;;  %v3284_v63 = vld [vmem:[%s5533_s2 + $0x8] sm:$0xff] }
 0x130   : > { %v716_v36 = vmax.f32 %v664_v47, 0.0 }
 0x132   : > { %v924_v56 = vrot.slane %v716_v36, 7 }
 0x134   : > { %v4156_v61 = vsel %vm910_vm1, %v922_v43, %v924_v56  ;;  %v4180_v34 = vsel %vm910_vm1, %v924_v56, 0.0  ;;  %v3286_v43 = vld [vmem:[%s5533_s2 + $0x18] sm:$0xff] }
 0x135   : > { %v666_v0 = vpop.f32.mrf.mxu1  ;;  %v1055_v5 = vrot.slane %v4156_v61, 1  ;;  %v1057_v41 = vrot.slane %v4180_v34, 1  ;;  %1933 = vmatpush.bf16.msrb.mxu2 %v3286_v43 }
 0x136   : > { %v667_v7 = vadd.f32 %v666_v0, %v598_v57  ;;  %v3285_v57 = vld [vmem:[%s5533_s2 + $0x10] sm:$0xff] }
 0x137   : > { %v4164_v10 = vsel %vm1037_vm2, %v1053_v58, %v1055_v5  ;;  %v4196_v51 = vsel %vm1037_vm2, %v1055_v5, %v1057_v41  ;;  %v610_v41 = vadd.f32 %v4040_v30, %v4019_v13 }
 0x138   : > { %705 = vmatmul.bf16.gmra.mxu1 %v2935_v62  ;;  %v3440_v18 = vpack.i.bf16 %v4164_v10, %v4161_v8  ;;  %v717_v20 = vmax.f32 %v667_v7, 0.0 }
 0x139   : > { %1934 = vmatpush.bf16.msrb.mxu2 %v3285_v57 }
 0x13a   : > { %3441 = vrot.lane.b32.xlu1 %v3440_v18, %s3718_s9  ;;  %v926_v27 = vrot.slane %v717_v20, 7  ;;  %v604_v18 = vpop.f32.mrf.mxu0 }
 0x13c   : > { %v4183_v37 = vsel %vm910_vm1, 0.0, %v926_v27 }
 0x13d   : > { %v668_v25 = vpop.f32.mrf.mxu1  ;;  %v1059_v47 = vrot.slane %v4183_v37, 1  ;;  %1935 = vmatpush.bf16.msrb.mxu2 %v3284_v63 }
 0x13e   : > { %v669_v29 = vadd.f32 %v668_v25, %v600_v23 }
 0x140   : > { %v718_v35 = vmax.f32 %v669_v29, 0.0  ;;  %v608_v29 = vadd.f32 %v4040_v30, %v4015_v11 }
 0x141   : > { %1936 = vmatpush.bf16.msrb.mxu2 %v3283_v24 }
 0x142   : > { %v927_v38 = vrot.slane %v718_v35, 7 }
 0x144   : > { %v4191_v44 = vsel %vm910_vm1, %v926_v27, %v927_v38  ;;  %v605_v27 = vadd.f32 %v4040_v30, %v604_v18 }
 0x145   : > { %v671_v46 = vpop.f32.mrf.mxu1  ;;  %v1060_v36 = vrot.slane %v4191_v44, 1 }
 0x146   : > { %v672_v50 = vadd.f32 %v671_v46, %v603_v40 }
 0x147   : > { %v4199_v56 = vsel %vm1037_vm2, %v1059_v47, %v1060_v36 }
 0x148   : > { %5584 = vst [vmem:[#allocation6_spill] sm:$0xff] %v4199_v56  ;;  %v719_v58 = vmax.f32 %v672_v50, 0.0  ;;  %v3445_v60 = vpack.i.bf16 %v4199_v56, %v4196_v51 }
 0x14a   : > { %v929_v62 = vrot.slane %v719_v58, 7  ;;  %3446 = vrot.lane.b32.xlu2 %v3445_v60, %s3718_s9 }
 0x14c   : > { %v4211_v0 = vsel %vm910_vm1, %v927_v38, %v929_v62  ;;  %v4214_v5 = vsel %vm910_vm1, %v929_v62, 0.0  ;;  %v613_v62 = vadd.f32 %v4040_v30, %v4025_v19 }
 0x14d   : > { %v1064_v6 = vrot.slane %v4214_v5, 1  ;;  %v673_v7 = vpop.f32.mrf.mxu1  ;;  %v1062_v14 = vrot.slane %v4211_v0, 1 }
 0x14e   : > { %v674_v32 = vadd.f32 %v673_v7, %v605_v27 }
 0x14f   : > { %v4219_v20 = vsel %vm1037_vm2, %v1060_v36, %v1062_v14  ;;  %v4222_v23 = vsel %vm1037_vm2, %v1062_v14, %v1064_v6  ;;  %v4252_v14 = vld [vmem:[%s5533_s2 + $0x118] sm:$0xff] }
 0x150   : > { %5585 = vst [vmem:[#allocation7_spill] sm:$0xff] %v4219_v20  ;;  %v3450_v25 = vpack.i.bf16 %v4222_v23, %v4219_v20  ;;  %v720_v40 = vmax.f32 %v674_v32, 0.0  ;;  %2209 = vmatpush.bf16.msra.mxu2 %v4252_v14  ;;  %v3314_v32 = vld [vmem:[%s5533_s2 + $0xf8] sm:$0xff] }
 0x151   : > { %5586 = vst [vmem:[#allocation8_spill] sm:$0xff] %v4222_v23  ;;  %2136 = vmatpush.bf16.msra.mxu1 %v3314_v32 }
 0x152   : > { %3451 = vrot.lane.b32.xlu2 %v3450_v25, %s3718_s9  ;;  %v931_v47 = vrot.slane %v720_v40, 7 }
 0x154   : > { %v4239_v58 = vsel %vm910_vm1, 0.0, %v931_v47 }
 0x155   : > { %v676_v31 = vpop.f32.mrf.mxu1  ;;  %v1066_v13 = vrot.slane %v4239_v58, 1 }
 0x156   : > { %v677_v35 = vadd.f32 %v676_v31, %v608_v29  ;;  %v615_v29 = vadd.f32 %v4040_v30, %v4029_v22 }
 0x158   : > { %v721_v38 = vmax.f32 %v677_v35, 0.0 }
 0x15a   : > { %v932_v43 = vrot.slane %v721_v38, 7 }
 0x15c   : > { %v4236_v50 = vsel %vm910_vm1, %v931_v47, %v932_v43 }
 0x15d   : > { %v678_v46 = vpop.f32.mrf.mxu1  ;;  %v1067_v60 = vrot.slane %v4236_v50, 1 }
 0x15e   : > { %v679_v36 = vadd.f32 %v678_v46, %v610_v41 }
 0x15f   : > { %v4255_v24 = vsel %vm1037_vm2, %v1066_v13, %v1067_v60 }
 0x160   : > { %v722_v57 = vmax.f32 %v679_v36, 0.0  ;;  %5587 = vst [vmem:[#allocation9_spill] sm:$0xff] %v4255_v24  ;;  %v3470_v36 = vpack.i.bf16 %v4109_v49, %v4104_v45 }
 0x162   : > { %v934_v11 = vrot.slane %v722_v57, 7 }
 0x164   : > { %v4245_v63 = vsel %vm910_vm1, %v932_v43, %v934_v11  ;;  %v4270_v46 = vsel %vm910_vm1, %v934_v11, 0.0 }
 0x165   : > { %v681_v6 = vpop.f32.mrf.mxu1  ;;  %v1069_v7 = vrot.slane %v4245_v63, 1  ;;  %v1071_v11 = vrot.slane %v4270_v46, 1 }
 0x166   : > { %v682_v18 = vadd.f32 %v681_v6, %v613_v62 }
 0x167   : > { %v4258_v25 = vsel %vm1037_vm2, %v1067_v60, %v1069_v7  ;;  %v1177_v60 = vrot.slane %v4121_v1, 2 }
 0x168   : > { %5588 = vst [vmem:[#allocation10_spill] sm:$0xff] %v4258_v25  ;;  %v3455_v19 = vpack.i.bf16 %v4258_v25, %v4255_v24  ;;  %v723_v27 = vmax.f32 %v682_v18, 0.0  ;;  %v1175_v18 = vrot.slane %v4109_v49, 2  ;;  %v1188_v25 = vrot.slane %v4183_v37, 2 }
 0x16a   : > { %3456 = vrot.lane.b32.xlu0 %v3455_v19, %s3718_s9  ;;  %v936_v35 = vrot.slane %v723_v27, 7  ;;  %v618_v19 = vadd.f32 %v4040_v30, %v4035_v28 }
 0x16c   : > { %v4280_v62 = vsel %vm910_vm1, 0.0, %v936_v35 }
 0x16d   : > { %v683_v31 = vpop.f32.mrf.mxu1  ;;  %v3427_v38 = vpop.permute.xlu0 %3426 }
 0x16e   : > { %v684_v40 = vadd.f32 %v683_v31, %v615_v29  ;;  %v3429_v41 = vunpack.i.h.bf16 %v3427_v38  ;;  %v3428_v43 = vunpack.i.l.bf16 %v3427_v38  ;;  %v1174_v29 = vrot.slane %v4104_v45, 2 }
 0x16f   : > { %v1073_v31 = vrot.slane %v4280_v62, 1 }
 0x170   : > { %v724_v47 = vmax.f32 %v684_v40, 0.0  ;;  %v1473_v22 = vsel %vm1471_vm3, %v4066_v55, %v3429_v41  ;;  %v1472_v57 = vsel %vm1471_vm3, %v4063_v54, %v3428_v43  ;;  %v4294_v40 = vsel %vm1166_vm4, %v1175_v18, %v1177_v60 }
 0x171   : > { %v1550_v13 = vpack.c.bf16 %v1473_v22, %v1472_v57  ;;  %v4297_v43 = vsel %vm1037_vm2, %v1069_v7, %v1071_v11  ;;  %v1182_v7 = vrot.slane %v4143_v48, 2  ;;  %v1179_v11 = vrot.slane %v4124_v4, 2 }
 0x172   : > { %v937_v6 = vrot.slane %v724_v47, 7  ;;  %3471 = vrot.lane.b32.xlu0 %v3470_v36, %s3718_s9  ;;  %5589 = vst [vmem:[#allocation11_spill] sm:$0xff] %v4297_v43  ;;  %v3313_v47 = vld [vmem:[%s5533_s2 + $0xf0] sm:$0xff] }
 0x173   : > { %1937 = vmatmul.bf16.vlgmr.msrb.gmra.mxu2 %v1550_v13  ;;  %2137 = vmatpush.bf16.msra.mxu1 %v3313_v47 }
 0x174   : > { %v4288_v27 = vsel %vm910_vm1, %v936_v35, %v937_v6  ;;  %v4303_v35 = vsel %vm1166_vm4, %v1174_v29, %v1175_v18  ;;  %v1181_v18 = vrot.slane %v4148_v53, 2 }
 0x175   : > { %v686_v32 = vpop.f32.mrf.mxu1  ;;  %v1074_v38 = vrot.slane %v4288_v27, 1  ;;  %v3485_v57 = vpack.i.bf16 %v4294_v40, %v4303_v35 }
 0x176   : > { %v687_v41 = vadd.f32 %v686_v32, %v618_v19  ;;  %v3312_v19 = vld [vmem:[%s5533_s2 + $0xe8] sm:$0xff] }
 0x177   : > { %v4300_v28 = vsel %vm1037_vm2, %v1073_v31, %v1074_v38  ;;  %2138 = vmatpush.bf16.msra.mxu1 %v3312_v19  ;;  %v1186_v19 = vrot.slane %v4180_v34, 2 }
 0x178   : > { %5590 = vst [vmem:[#allocation12_spill] sm:$0xff] %v4300_v28  ;;  %v725_v36 = vmax.f32 %v687_v41, 0.0  ;;  %v3460_v22 = vpack.i.bf16 %v4300_v28, %v4297_v43 }
 0x17a   : > { %v939_v13 = vrot.slane %v725_v36, 7  ;;  %3461 = vrot.lane.b32.xlu1 %v3460_v22, %s3718_s9  ;;  %3486 = vrot.lane.b32.xlu0 %v3485_v57, %s3718_s9  ;;  %v4329_v36 = vsel %vm1166_vm4, %v1181_v18, %v1182_v7  ;;  %v3311_v57 = vld [vmem:[%s5533_s2 + $0xe0] sm:$0xff] }
 0x17b   : > { %2139 = vmatpush.bf16.msra.mxu1 %v3311_v57 }
 0x17c   : > { %v4321_v29 = vsel %vm910_vm1, %v937_v6, %v939_v13  ;;  %v4324_v31 = vsel %vm910_vm1, %v939_v13, 0.0  ;;  %v4338_v6 = vsel %vm1166_vm4, %v1177_v60, %v1179_v11  ;;  %v620_v13 = vadd.f32 %v4040_v30, %v4044_v33  ;;  %v3310_v33 = vld [vmem:[%s5533_s2 + $0xd8] sm:$0xff] }
 0x17d   : > { %v1078_v32 = vrot.slane %v4324_v31, 1  ;;  %v688_v41 = vpop.f32.mrf.mxu1  ;;  %v1076_v47 = vrot.slane %v4321_v29, 1  ;;  %v623_v11 = vadd.f32 %v4040_v30, %v4049_v42 }
 0x17e   : > { %v689_v60 = vadd.f32 %v688_v41, %v620_v13  ;;  %v3309_v13 = vld [vmem:[%s5533_s2 + $0xd0] sm:$0xff] }
 0x17f   : > { %v4332_v4 = vsel %vm1037_vm2, %v1074_v38, %v1076_v47  ;;  %v4335_v22 = vsel %vm1037_vm2, %v1076_v47, %v1078_v32  ;;  %v3500_v38 = vpack.i.bf16 %v4329_v36, %v4338_v6  ;;  %v1184_v32 = vrot.slane %v4156_v61, 2  ;;  %2140 = vmatpush.bf16.msra.mxu1 %v3310_v33 }
 0x180   : > { %5591 = vst [vmem:[#allocation13_spill] sm:$0xff] %v4332_v4  ;;  %v3465_v18 = vpack.i.bf16 %v4335_v22, %v4332_v4  ;;  %v726_v41 = vmax.f32 %v689_v60, 0.0 }
 0x181   : > { %5592 = vst [vmem:[#allocation14_spill] sm:$0xff] %v4335_v22  ;;  %v4359_v22 = vsel %vm1166_vm4, %v1182_v7, %v1184_v32  ;;  %v4362_v34 = vsel %vm1166_vm4, %v1184_v32, %v1186_v19  ;;  %v3308_v19 = vld [vmem:[%s5533_s2 + $0xc8] sm:$0xff]  ;;  %v625_v32 = vadd.f32 %v4040_v30, %v4060_v52 }
 0x182   : > { %3466 = vrot.lane.b32.xlu2 %v3465_v18, %s3718_s9  ;;  %3501 = vrot.lane.b32.xlu0 %v3500_v38, %s3718_s9  ;;  %5593 = vst [vmem:[#allocation15_spill] sm:$0xff] %v4362_v34  ;;  %v3480_v38 = vpack.i.bf16 %v4148_v53, %v4121_v1  ;;  %v3515_v42 = vpack.i.bf16 %v4362_v34, %v4359_v22  ;;  %v941_v7 = vrot.slane %v726_v41, 7 }
 0x183   : > { %2141 = vmatpush.bf16.msra.mxu1 %v3309_v13 }
 0x185   : > { %v691_v47 = vpop.f32.mrf.mxu1 }
 0x186   : > { %v692_v57 = vadd.f32 %v691_v47, %v623_v11 }
 0x187   : > { %2142 = vmatpush.bf16.msra.mxu1 %v3308_v19  ;;  %v1200_v19 = vrot.slane %v4270_v46, 2 }
 0x188   : > { %v727_v18 = vmax.f32 %v692_v57, 0.0 }
 0x18a   : > { %v942_v4 = vrot.slane %v727_v18, 7  ;;  %3481 = vrot.lane.b32.xlu2 %v3480_v38, %s3718_s9  ;;  %3516 = vrot.lane.b32.xlu0 %v3515_v42, %s3718_s9  ;;  %v3307_v38 = vld [vmem:[%s5533_s2 + $0xc0] sm:$0xff]  ;;  %v3495_v42 = vpack.i.bf16 %v4156_v61, %v4143_v48 }
 0x18b   : > { %2143 = vmatpush.bf16.msra.mxu1 %v3307_v38 }
 0x18c   : > { %v4379_v60 = vsel %vm910_vm1, %v941_v7, %v942_v4  ;;  %v3432_v33 = vpop.permute.xlu0 %3431 }
 0x18d   : > { %v3434_v11 = vunpack.i.h.bf16 %v3432_v33  ;;  %v3433_v47 = vunpack.i.l.bf16 %v3432_v33  ;;  %v693_v57 = vpop.f32.mrf.mxu1  ;;  %v3530_v33 = vpack.i.bf16 %v4245_v63, %v4236_v50  ;;  %v1081_v46 = vrot.slane %v4379_v60, 1 }
 0x18e   : > { %v694_v41 = vadd.f32 %v693_v57, %v625_v32  ;;  %v1198_v32 = vrot.slane %v4245_v63, 2  ;;  %v628_v57 = vadd.f32 %v4040_v30, %v4077_v3  ;;  %v4419_v3 = vld [vmem:[%s5533_s2 + $0x110] sm:$0xff] }
 0x18f   : > { %v1474_v13 = vsel %vm1471_vm3, %v4075_v2, %v3433_v47  ;;  %v1475_v18 = vsel %vm1471_vm3, %v4104_v45, %v3434_v11  ;;  %v5543_v45 = vrot.slane %v4236_v50, 2  ;;  %v4398_v11 = vsel %vm910_vm1, 0.0, %v941_v7  ;;  %2210 = vmatpush.bf16.msra.mxu2 %v4419_v3 }
 0x190   : > { %v728_v52 = vmax.f32 %v694_v41, 0.0  ;;  %v1555_v28 = vpack.c.bf16 %v1475_v18, %v1474_v13  ;;  %v4406_v13 = vpop.f32.mrf.mxu2  ;;  %v4414_v7 = vsel %vm1166_vm4, %v1198_v32, %v1200_v19 }
 0x191   : > { %v4411_v38 = vsel %vm1166_vm4, %v5543_v45, %v1198_v32  ;;  %5596 = vst [vmem:[#allocation18_spill] sm:$0xff] %v4414_v7  ;;  %v3510_v45 = vpack.i.bf16 %v4191_v44, %v4183_v37 }
 0x192   : > { %v944_v47 = vrot.slane %v728_v52, 7  ;;  %3496 = vrot.lane.b32.xlu2 %v3495_v42, %s3718_s9  ;;  %3531 = vrot.lane.b32.xlu0 %v3530_v33, %s3718_s9  ;;  %5595 = vst [vmem:[#allocation17_spill] sm:$0xff] %v4411_v38  ;;  %v3545_v43 = vpack.i.bf16 %v4414_v7, %v4411_v38 }
 0x193   : > { %1942 = vmatmul.bf16.gmra.mxu2 %v1555_v28  ;;  %v4421_v28 = vpop.f32.mrf.mxu3 }
 0x194   : > { %v4403_v41 = vsel %vm910_vm1, %v942_v4, %v944_v47  ;;  %v1080_v4 = vrot.slane %v4398_v11, 1  ;;  %v3437_v33 = vpop.permute.xlu1 %3436 }
 0x195   : > { %5594 = vst [vmem:[#allocation16_spill] sm:$0xff] %v4403_v41  ;;  %v696_v18 = vpop.f32.mrf.mxu1  ;;  %v1083_v42 = vrot.slane %v4403_v41, 1  ;;  %v3438_v24 = vunpack.i.l.bf16 %v3437_v33  ;;  %v3560_v56 = vpack.i.bf16 %v4403_v41, %v4379_v60 }
 0x196   : > { %v697_v52 = vadd.f32 %v696_v18, %v628_v57  ;;  %v4429_v19 = vsel %vm1037_vm2, %v1080_v4, %v1081_v46  ;;  %v3439_v18 = vunpack.i.h.bf16 %v3437_v33  ;;  %v630_v4 = vadd.f32 %v4040_v30, %v4085_v9 }
 0x197   : > { %5597 = vst [vmem:[#allocation19_spill] sm:$0xff] %v4429_v19  ;;  %v4432_v32 = vsel %vm1037_vm2, %v1081_v46, %v1083_v42  ;;  %v1189_v46 = vrot.slane %v4191_v44, 2 }
 0x198   : > { %5598 = vst [vmem:[#allocation20_spill] sm:$0xff] %v4432_v32  ;;  %v3475_v57 = vpack.i.bf16 %v4432_v32, %v4429_v19  ;;  %v729_v23 = vmax.f32 %v697_v52, 0.0  ;;  %v4445_v7 = vpop.f32.mrf.mxu2  ;;  %v5599_v32 = vrot.slane %v4211_v0, 2  ;;  %v1477_v9 = vsel %vm1471_vm3, %v4121_v1, %v3439_v18 }
 0x199   : > { %v1017_v19 = vsel %vm910_vm1, %v944_v47, 0.0  ;;  %v4461_v34 = vsel %vm1166_vm4, %v1188_v25, %v1189_v46  ;;  %v1212_v1 = vrot.slane %v4403_v41, 2  ;;  %v633_v25 = vadd.f32 %v4040_v30, %v4017_v12 }
 0x19a   : > { %3511 = vrot.lane.b32.xlu2 %v3510_v45, %s3718_s9  ;;  %3546 = vrot.lane.b32.xlu0 %v3545_v43, %s3718_s9  ;;  %v4451_v52 = vsel %vm1166_vm4, %v1189_v46, %v5599_v32  ;;  %v946_v43 = vrot.slane %v729_v23, 7  ;;  %5601 = vst [vmem:[#allocation22_spill] sm:$0xff] %v4461_v34  ;;  %v5558_v47 = vrot.slane %v4379_v60, 2 }
 0x19b   : > { %3476 = vrot.lane.b32.xlu1 %v3475_v57, %s3718_s9  ;;  %5600 = vst [vmem:[#allocation21_spill] sm:$0xff] %v4451_v52  ;;  %v4453_v45 = vpop.f32.mrf.mxu3  ;;  %v1476_v57 = vsel %vm1471_vm3, %v4109_v49, %v3438_v24  ;;  %v3525_v32 = vpack.i.bf16 %v4451_v52, %v4461_v34  ;;  %v1085_v24 = vrot.slane %v1017_v19, 1 }
 0x19c   : > { %v1560_v23 = vpack.c.bf16 %v1477_v9, %v1476_v57 }
 0x19d   : > { %v698_v38 = vpop.f32.mrf.mxu1 }
 0x19e   : > { %v699_v33 = vadd.f32 %v698_v38, %v630_v4  ;;  %v1214_v38 = vrot.slane %v1017_v19, 2  ;;  %v4468_v4 = vsel %vm910_vm1, 0.0, %v946_v43 }
 0x19f   : > { %v1087_v46 = vrot.slane %v4468_v4, 1 }
 0x1a0   : > { %v730_v20 = vmax.f32 %v699_v33, 0.0  ;;  %v840_v57 = vpop.f32.mrf.mxu2  ;;  %v4487_v19 = vsel %vm1166_vm4, %v1212_v1, %v1214_v38 }
 0x1a1   : > { %5603 = vst [vmem:[#allocation24_spill] sm:$0xff] %v4487_v19 }
 0x1a2   : > { %v947_v49 = vrot.slane %v730_v20, 7  ;;  %3526 = vrot.lane.b32.xlu2 %v3525_v32, %s3718_s9  ;;  %3561 = vrot.lane.b32.xlu0 %v3560_v56, %s3718_s9  ;;  %v4484_v56 = vsel %vm1166_vm4, %v5558_v47, %v1212_v1  ;;  %v4490_v32 = vsel %vm1037_vm2, %v1083_v42, %v1085_v24  ;;  %v1203_v24 = vrot.slane %v4288_v27, 2 }
 0x1a3   : > { %1947 = vmatmul.bf16.gmra.mxu2 %v1560_v23  ;;  %5602 = vst [vmem:[#allocation23_spill] sm:$0xff] %v4484_v56  ;;  %v858_v12 = vpop.f32.mrf.mxu3  ;;  %v3306_v23 = vld [vmem:[%s5533_s2 + $0xb8] sm:$0xff]  ;;  %v3575_v42 = vpack.i.bf16 %v4487_v19, %v4484_v56 }
 0x1a4   : > { %v4477_v18 = vsel %vm910_vm1, %v946_v43, %v947_v49  ;;  %5604 = vst [vmem:[#allocation25_spill] sm:$0xff] %v4490_v32  ;;  %2067 = vmatpush.bf16.msrb.mxu0 %v3306_v23 }
 0x1a5   : > { %v701_v33 = vpop.f32.mrf.mxu1  ;;  %v1088_v20 = vrot.slane %v4477_v18, 1 }
 0x1a6   : > { %v702_v9 = vadd.f32 %v701_v33, %v633_v25  ;;  %v3540_v33 = vpack.i.bf16 %v4288_v27, %v4280_v62 }
 0x1a7   : > { %v4493_v43 = vsel %vm1037_vm2, %v1087_v46, %v1088_v20  ;;  %v3298_v46 = vld [vmem:[%s5533_s2 + $0x78] sm:$0xff] }
 0x1a8   : > { %5605 = vst [vmem:[#allocation26_spill] sm:$0xff] %v4493_v43  ;;  %v731_v25 = vmax.f32 %v702_v9, 0.0  ;;  %v3490_v47 = vpack.i.bf16 %v4493_v43, %v4490_v32  ;;  %1998 = vmatpush.bf16.msra.mxu3 %v3298_v46  ;;  %v842_v43 = vpop.f32.mrf.mxu2 }
 0x1aa   : > { %v949_v1 = vrot.slane %v731_v25, 7  ;;  %3541 = vrot.lane.b32.xlu2 %v3540_v33, %s3718_s9  ;;  %3491 = vrot.lane.b32.xlu1 %v3490_v47, %s3718_s9  ;;  %v1202_v25 = vrot.slane %v4280_v62, 2 }
 0x1ab   : > { %3576 = vrot.lane.b32.xlu0 %v3575_v42, %s3718_s9  ;;  %v5606_v42 = vrot.slane %v4321_v29, 2  ;;  %v860_v32 = vpop.f32.mrf.mxu3 }
 0x1ac   : > { %v4513_v9 = vsel %vm910_vm1, %v947_v49, %v949_v1  ;;  %v4516_v38 = vsel %vm910_vm1, %v949_v1, 0.0  ;;  %v3442_v23 = vpop.permute.xlu1 %3441  ;;  %v3297_v49 = vld [vmem:[%s5533_s2 + $0x70] sm:$0xff]  ;;  %v4530_v52 = vsel %vm1166_vm4, %v1202_v25, %v1203_v24  ;;  %v841_v32 = vadd.f32 %v4040_v30, %v840_v57 }
 0x1ad   : > { %v1092_v33 = vrot.slane %v4516_v38, 1  ;;  %v703_v47 = vpop.f32.mrf.mxu1  ;;  %v4523_v19 = vsel %vm1166_vm4, %v1203_v24, %v5606_v42  ;;  %v3444_v1 = vunpack.i.h.bf16 %v3442_v23  ;;  %v3443_v56 = vunpack.i.l.bf16 %v3442_v23  ;;  %1999 = vmatpush.bf16.msra.mxu3 %v3297_v49 }
 0x1ae   : > { %v1090_v34 = vrot.slane %v4513_v9, 1  ;;  %v3555_v41 = vpack.i.bf16 %v4523_v19, %v4530_v52  ;;  %v838_v57 = vadd.f32 %v4040_v30, %v4445_v7 }
 0x1af   : > { %v1478_v42 = vsel %vm1471_vm3, %v4148_v53, %v3443_v56  ;;  %v1479_v46 = vsel %vm1471_vm3, %v4143_v48, %v3444_v1  ;;  %v836_v53 = vadd.f32 %v4040_v30, %v4406_v13  ;;  %v3296_v13 = vld [vmem:[%s5533_s2 + $0x68] sm:$0xff]  ;;  %v3305_v56 = vld [vmem:[%s5533_s2 + $0xb0] sm:$0xff]  ;;  %v875_v1 = vstv %s874_s16  ;;  %s283_s16 = sand.u32 1, %s3692_s25  }
 0x1b0   : > { %v4545_v43 = vsel %vm1037_vm2, %v1088_v20, %v1090_v34  ;;  %v4548_v24 = vsel %vm1037_vm2, %v1090_v34, %v1092_v33  ;;  %v1553_v23 = vpack.c.bf16 %v1479_v46, %v1478_v42  ;;  %v635_v20 = vadd.f32 %v4040_v30, %v4023_v17  ;;  %2068 = vmatpush.bf16.msrb.mxu0 %v3305_v56  ;;  %v3295_v17 = vld [vmem:[%s5533_s2 + $0x60] sm:$0xff]  ;;  %s3347_s12 = smul.u32 192, %s283_s16  ;;  %s2731_s10 = scalar_lea.sflag [#allocation3], %s283_s16 }
 0x1b1   : > { %v3505_v48 = vpack.i.bf16 %v4548_v24, %v4545_v43  ;;  %v638_v34 = vadd.f32 %v4040_v30, %v4027_v21  ;;  %2000 = vmatpush.bf16.msra.mxu3 %v3296_v13  ;;  %v3447_v21 = vpop.permute.xlu2 %3446  ;;  %v856_v49 = vadd.f32 %v4453_v45, %v838_v57  ;;  %v3570_v46 = vpack.i.bf16 %v4477_v18, %v4468_v4 }
 0x1b2   : > { %3556 = vrot.lane.b32.xlu2 %v3555_v41, %s3718_s9  ;;  %2144 = vmatmul.bf16.vlgmr.msra.gmra.mxu1 %v1553_v23  ;;  %v859_v41 = vadd.f32 %v858_v12, %v841_v32  ;;  %v704_v25 = vadd.f32 %v703_v47, %v635_v20  ;;  %v854_v12 = vadd.f32 %v4421_v28, %v836_v53  ;;  %v1195_v47 = vrot.slane %v4239_v58, 2 }
 0x1b3   : > { %1952 = vmatmul.bf16.gmra.mxu2 %v1553_v23  ;;  %3506 = vrot.lane.b32.xlu1 %v3505_v48, %s3718_s9  ;;  %v5570_v23 = vrot.slane %v4513_v9, 2  ;;  %v3449_v48 = vunpack.i.h.bf16 %v3447_v21  ;;  %v3448_v20 = vunpack.i.l.bf16 %v3447_v21  ;;  %v3520_v28 = vpack.i.bf16 %v4239_v58, %v4211_v0 }
 0x1b4   : > { %v864_v32 = vmax.f32 %v859_v41, 0.0  ;;  %v862_v45 = vmax.f32 %v854_v12, 0.0  ;;  %vm876_vm5 = vcmp.eq.s32.totalorder %v875_v1, 1  ;;  %v863_v53 = vmax.f32 %v856_v49, 0.0  ;;  %v4608_v12 = vld [vmem:[%s5533_s2 + $0x108] sm:$0xff]  ;;  %v3303_v1 = vld [vmem:[%s5533_s2 + $0xa0] sm:$0xff] }
 0x1b5   : > { %v706_v7 = vpop.f32.mrf.mxu1  ;;  %2001 = vmatpush.bf16.msra.mxu3 %v3295_v17  ;;  %v1217_v57 = vrot.slane %v4477_v18, 2  ;;  %v640_v41 = vadd.f32 %v4040_v30, %v4033_v26  ;;  %v1193_v13 = vrot.slane %v4214_v5, 2  ;;  %v1216_v17 = vrot.slane %v4468_v4, 2  ;;  %2211 = vmatpush.bf16.msra.mxu2 %v4608_v12 }
 0x1b6   : > { %v707_v33 = vadd.f32 %v706_v7, %v638_v34  ;;  %v732_v34 = vmax.f32 %v704_v25, 0.0  ;;  %v879_v7 = vsel %vm876_vm5, %v864_v32, 0.0  ;;  %v3294_v25 = vld [vmem:[%s5533_s2 + $0x58] sm:$0xff]  ;;  %v5609_v30 = vrot.slane %v4236_v50, 2 }
 0x1b7   : > { %v4598_v26 = vsel %vm1166_vm4, %v1217_v57, %v5570_v23  ;;  %v1481_v32 = vsel %vm1471_vm3, %v4183_v37, %v3449_v48 }
 0x1b8   : > { %v733_v42 = vmax.f32 %v707_v33, 0.0  ;;  %v3304_v33 = vld [vmem:[%s5533_s2 + $0xa8] sm:$0xff]  ;;  %5608 = vst [vmem:[#allocation27_spill] sm:$0xff] %v4598_v26  ;;  %v4603_v5 = vsel %vm1166_vm4, %v1195_v47, %v5609_v30  ;;  %v951_v49 = vrot.slane %v732_v34, 7  ;;  %v3293_v47 = vld [vmem:[%s5533_s2 + $0x50] sm:$0xff]  ;;  %v878_v30 = vsel %vm876_vm5, %v863_v53, 0.0 }
 0x1b9   : > { %2002 = vmatpush.bf16.msra.mxu3 %v3294_v25  ;;  %2069 = vmatpush.bf16.msrb.mxu0 %v3304_v33  ;;  %v4622_v34 = vsel %vm1166_vm4, %v1216_v17, %v1217_v57  ;;  %v957_v33 = vrot.slane %v878_v30, 7 }
 0x1ba   : > { %3571 = vrot.lane.b32.xlu2 %v3570_v46, %s3718_s9  ;;  %v952_v56 = vrot.slane %v733_v42, 7  ;;  %v1480_v46 = vsel %vm1471_vm3, %v4156_v61, %v3448_v20  ;;  %v3585_v48 = vpack.i.bf16 %v4598_v26, %v4622_v34  ;;  %v5610_v20 = vrot.slane %v4211_v0, 2 }
 0x1bb   : > { %3521 = vrot.lane.b32.xlu1 %v3520_v28, %s3718_s9  ;;  %v4618_v28 = vsel %vm876_vm5, %v862_v45, 0.0  ;;  %v1558_v57 = vpack.c.bf16 %v1481_v32, %v1480_v46  ;;  %v3292_v32 = vld [vmem:[%s5533_s2 + $0x48] sm:$0xff] }
 0x1bc   : > { %v4626_v61 = vsel %vm910_vm1, %v951_v49, %v952_v56  ;;  %v4633_v45 = vsel %vm1166_vm4, %v5610_v20, %v1193_v13  ;;  %v5573_v25 = vrot.slane %v4618_v28, 7 }
 0x1bd   : > { %v708_v21 = vpop.f32.mrf.mxu1  ;;  %v3535_v53 = vpack.i.bf16 %v4603_v5, %v4633_v45  ;;  %2003 = vmatpush.bf16.msra.mxu3 %v3293_v47  ;;  %2070 = vmatpush.bf16.msrb.mxu0 %v3303_v1  ;;  %v3302_v47 = vld [vmem:[%s5533_s2 + $0x98] sm:$0xff] }
 0x1be   : > { %v709_v42 = vadd.f32 %v708_v21, %v640_v41  ;;  %v959_v41 = vrot.slane %v879_v7, 7  ;;  %v4641_v7 = vsel %vm910_vm1, 0.0, %v951_v49  ;;  %v1353_v21 = vrot.slane %v4626_v61, 2 }
 0x1c0   : > { %v734_v37 = vmax.f32 %v709_v42, 0.0  ;;  %v4646_v13 = vsel %vm910_vm1, %v959_v41, 0.0  ;;  %v4657_v46 = vsel %vm910_vm1, %v957_v33, %v959_v41  ;;  %v4673_v41 = vsel %vm910_vm1, %v5573_v25, %v957_v33 }
 0x1c1   : > { %5611 = vst [vmem:[#allocation28_spill] sm:$0xff] %v4646_v13  ;;  %v1438_v20 = vrot.slane %v4646_v13, 1  ;;  %2004 = vmatpush.bf16.msra.mxu3 %v3292_v32  ;;  %v1436_v23 = vrot.slane %v4657_v46, 1  ;;  %v1322_v25 = vrot.slane %v4626_v61, 1  ;;  %2071 = vmatpush.bf16.msrb.mxu0 %v3302_v47 }
 0x1c2   : > { %v954_v17 = vrot.slane %v734_v37, 7  ;;  %3586 = vrot.lane.b32.xlu2 %v3585_v48, %s3718_s9  ;;  %2149 = vmatmul.bf16.gmra.mxu1 %v1558_v57 }
 0x1c3   : > { %1957 = vmatmul.bf16.gmra.mxu2 %v1558_v57  ;;  %3536 = vrot.lane.b32.xlu1 %v3535_v53, %s3718_s9  ;;  %v3452_v53 = vpop.permute.xlu2 %3451  ;;  %v1439_v13 = vsel %vm1037_vm2, %v1436_v23, %v1438_v20  ;;  %v5615_v20 = vrot.slane %v4379_v60, 2 }
 0x1c4   : > { %v4650_v42 = vsel %vm910_vm1, %v952_v56, %v954_v17  ;;  %v4653_v49 = vsel %vm910_vm1, %v954_v17, 0.0  ;;  %v1352_v56 = vrot.slane %v4641_v7, 2  ;;  %v3453_v1 = vunpack.i.l.bf16 %v3452_v53 }
 0x1c5   : > { %v1357_v30 = vrot.slane %v4653_v49, 2  ;;  %v3590_v37 = vpack.i.bf16 %v4650_v42, %v4626_v61  ;;  %v1355_v48 = vrot.slane %v4650_v42, 2  ;;  %v5614_v47 = vrot.slane %v4650_v42, 1 }
 0x1c6   : > { %v4686_v26 = vsel %vm1166_vm4, %v1352_v56, %v1353_v21  ;;  %v5577_v56 = vrot.slane %v4673_v41, 1 }
 0x1c7   : > { %3591 = vrot.lane.b32.xlu0 %v3590_v37, %s3718_s9  ;;  %v4679_v57 = vsel %vm1166_vm4, %v1353_v21, %v1355_v48  ;;  %v4682_v17 = vsel %vm1166_vm4, %v1355_v48, %v1357_v30  ;;  %v3291_v37 = vld [vmem:[%s5533_s2 + $0x40] sm:$0xff]  ;;  %v3301_v30 = vld [vmem:[%s5533_s2 + $0x90] sm:$0xff]  ;;  %v3550_v21 = vpack.i.bf16 %v4398_v11, %v4321_v29  ;;  %v3454_v48 = vunpack.i.h.bf16 %v3452_v53 }
 0x1c8   : > { %5612 = vst [vmem:[#allocation29_spill] sm:$0xff] %v4679_v57  ;;  %v3600_v33 = vpack.i.bf16 %v4682_v17, %v4679_v57  ;;  %v4707_v32 = vsel %vm1037_vm2, %v1322_v25, %v5614_v47  ;;  %2005 = vmatpush.bf16.msra.mxu3 %v3291_v37  ;;  %v1437_v57 = vsel %vm1037_vm2, %v5577_v56, %v1436_v23  ;;  %v1207_v37 = vrot.slane %v4324_v31, 2  ;;  %v3299_v31 = vld [vmem:[%s5533_s2 + $0x80] sm:$0xff] }
 0x1c9   : > { %5613 = vst [vmem:[#allocation30_spill] sm:$0xff] %v4682_v17  ;;  %v1321_v17 = vrot.slane %v4641_v7, 1  ;;  %2072 = vmatpush.bf16.msrb.mxu0 %v3301_v30  ;;  %v1209_v47 = vrot.slane %v4398_v11, 2  ;;  %v3615_v23 = vpack.i.bf16 %v1439_v13, %v1437_v57  ;;  %v5616_v13 = vrot.slane %v4321_v29, 2 }
 0x1ca   : > { %3601 = vrot.lane.b32.xlu2 %v3600_v33, %s3718_s9  ;;  %v3300_v33 = vld [vmem:[%s5533_s2 + $0x88] sm:$0xff]  ;;  %v1221_v30 = vrot.slane %v4516_v38, 2  ;;  %v1167_v38 = vrot.slane %v4063_v54, 2 }
 0x1cb   : > { %3551 = vrot.lane.b32.xlu1 %v3550_v21, %s3718_s9  ;;  %v4716_v53 = vsel %vm1037_vm2, %v1321_v17, %v1322_v25  ;;  %v1483_v25 = vsel %vm1471_vm3, %v4211_v0, %v3454_v48  ;;  %v4733_v17 = vsel %vm1166_vm4, %v1209_v47, %v5615_v20  ;;  %v1326_v20 = vrot.slane %v4653_v49, 1 }
 0x1cc   : > { %3343 = vmatpush.bf16.msrb.mxu3 %v4252_v14  ;;  %v3605_v56 = vpack.i.bf16 %v4707_v32, %v4716_v53  ;;  %v1482_v14 = vsel %vm1471_vm3, %v4191_v44, %v3453_v1  ;;  %v4742_v44 = vsel %vm1166_vm4, %v5616_v13, %v1207_v37  ;;  %v5617_v37 = vrot.slane %v4618_v28, 7 }
 0x1cd   : > { %2073 = vmatpush.bf16.msrb.mxu0 %v3300_v33  ;;  %v1563_v0 = vpack.c.bf16 %v1483_v25, %v1482_v14  ;;  %v3565_v1 = vpack.i.bf16 %v4733_v17, %v4742_v44  ;;  %v1168_v25 = vrot.slane %v4066_v55, 2 }
 0x1cf   : > { %3606 = vrot.lane.b32.xlu0 %v3605_v56, %s3718_s9  ;;  %v1169_v54 = vsel %vm1166_vm4, %v1167_v38, %v1168_v25 }
 0x1d0   : > { %3344 = vmatpush.bf16.msrb.mxu3 %v4419_v3  ;;  %v3580_v3 = vpack.i.bf16 %v4641_v7, %v4513_v9 }
 0x1d1   : > { %2074 = vmatpush.bf16.msrb.mxu0 %v3299_v31 }
 0x1d2   : > { %3616 = vrot.lane.b32.xlu2 %v3615_v23, %s3718_s9  ;;  %2154 = vmatmul.bf16.gmra.mxu1 %v1563_v0  ;;  %v5618_v23 = vrot.slane %v4513_v9, 2 }
 0x1d3   : > { %1962 = vmatmul.bf16.gmra.mxu2 %v1563_v0  ;;  %3566 = vrot.lane.b32.xlu1 %v3565_v1, %s3718_s9 }
 0x1d4   : > { %3345 = vmatpush.bf16.msrb.mxu3 %v4608_v12  ;;  %v4760_v12 = vsel %vm910_vm1, 0.0, %v5617_v37  ;;  %v4765_v14 = vsel %vm1166_vm4, %v5618_v23, %v1221_v30  ;;  %v5620_v30 = vrot.slane %v4673_v41, 1 }
 0x1d5   : > { %v1433_v28 = vrot.slane %v4760_v12, 1 }
 0x1db   : > { %3581 = vrot.lane.b32.xlu1 %v3580_v3, %s3718_s9 }
 0x1dc   : > { %v3457_v57 = vpop.permute.xlu0 %3456  ;;  %v3467_v31 = vpop.permute.xlu2 %3466 }
 0x1dd   : > { %v3459_v21 = vunpack.i.h.bf16 %v3457_v57  ;;  %v3458_v56 = vunpack.i.l.bf16 %v3457_v57  ;;  %v5619_v57 = vrot.slane %v4650_v42, 1 }
 0x1df   : > { %v1484_v48 = vsel %vm1471_vm3, %v4239_v58, %v3458_v56  ;;  %v1485_v33 = vsel %vm1471_vm3, %v4236_v50, %v3459_v21  ;;  %v1170_v58 = vrot.slane %v4075_v2, 2  ;;  %v3595_v50 = vpack.i.bf16 %v4686_v26, %v4765_v14 }
 0x1e0   : > { %v1567_v47 = vpack.c.bf16 %v1485_v33, %v1484_v48  ;;  %v4782_v49 = vsel %vm1037_vm2, %v5619_v57, %v1326_v20  ;;  %v1435_v21 = vsel %vm1037_vm2, %v1433_v28, %v5620_v30  ;;  %v1172_v28 = vrot.slane %v4099_v39, 2 }
 0x1e1   : > { %v1171_v55 = vsel %vm1166_vm4, %v1168_v25, %v1170_v58  ;;  %v3610_v48 = vpack.i.bf16 %v1435_v21, %v4782_v49  ;;  %v3469_v30 = vunpack.i.h.bf16 %v3467_v31  ;;  %v3468_v21 = vunpack.i.l.bf16 %v3467_v31 }
 0x1e2   : > { %2159 = vmatmul.bf16.gmra.mxu1 %v1567_v47 }
 0x1e3   : > { %1967 = vmatmul.bf16.gmra.mxu2 %v1567_v47  ;;  %3596 = vrot.lane.b32.xlu1 %v3595_v50, %s3718_s9  ;;  %v1489_v31 = vsel %vm1471_vm3, %v4321_v29, %v3469_v30 }
 0x1e4   : > { %v3472_v13 = vpop.permute.xlu0 %3471  ;;  %v3482_v38 = vpop.permute.xlu2 %3481 }
 0x1e5   : > { %v3474_v0 = vunpack.i.h.bf16 %v3472_v13  ;;  %v3473_v1 = vunpack.i.l.bf16 %v3472_v13 }
 0x1e7   : > { %v1497_v2 = vsel %vm1471_vm3, %v1171_v55, %v3474_v0  ;;  %v1496_v3 = vsel %vm1471_vm3, %v1169_v54, %v3473_v1  ;;  %v3484_v55 = vunpack.i.h.bf16 %v3482_v38 }
 0x1e8   : > { %v1551_v56 = vpack.c.bf16 %v1497_v2, %v1496_v3  ;;  %v3483_v2 = vunpack.i.l.bf16 %v3482_v38 }
 0x1ea   : > { %2006 = vmatmul.bf16.vlgmr.msra.gmra.mxu3 %v1551_v56 }
 0x1eb   : > { %3611 = vrot.lane.b32.xlu1 %v3610_v48, %s3718_s9  ;;  %s5376_s9 = scalar_lea.vmem [#allocation2], %s3347_s12  ;;  %s3636_s12 = sshra.s32 %s2749_s23, 4  ;;  %s3637_s12 = int_to_ptr.hbm [resolvable:$true] %s3636_s12 }
 0x1ec   : > { %v3462_v33 = vpop.permute.xlu1 %3461  ;;  %v3487_v23 = vpop.permute.xlu0 %3486  ;;  %s2746_s22 = sshll.u32 %s5376_s9, 4  ;;  %s3638_s13 = scalar_lea.hbm %s3637_s12, 192  ;;  %s2747_s22 = int_to_ptr.vmem [resolvable:$true] %s2746_s22 }
 0x1ed   : > { %v3464_v37 = vunpack.i.h.bf16 %v3462_v33  ;;  %v3463_v47 = vunpack.i.l.bf16 %v3462_v33  ;;  %v3489_v25 = vunpack.i.h.bf16 %v3487_v23  ;;  %v3488_v50 = vunpack.i.l.bf16 %v3487_v23  ;;  %v3203_v33 = vld [vmem:[%s5534_s3 + $0x38] sm:$0xf0]  ;;  %p3639_p4 = scmp.ne.s32.totalorder %s3637_s12, %s3638_s13  ;;  %p3643_p7 = scmp.lt.s32.totalorder %s3637_s12, %s5538_s7 }
 0x1ee   : > { %p3644_p9 = scmp.lt.s32.totalorder %s3642_s27, %s3638_s13 }
 0x1ef   : > { %v1486_v20 = vsel %vm1471_vm3, %v4245_v63, %v3463_v47  ;;  %v1487_v13 = vsel %vm1471_vm3, %v4280_v62, %v3464_v37  ;;  %v1520_v1 = vsel %vm1471_vm3, %v4115_v59, %v3488_v50  ;;  %v1521_v54 = vsel %vm1471_vm3, %v4129_v15, %v3489_v25  ;;  %v3315_v62 = vld [vmem:[%s5533_s2 + $0x100] sm:$0xff]  ;;  %p3640_p5 = pnand %p3639_p4, %p3812_p3 }
 0x1f0   : > { %v1571_v0 = vpack.c.bf16 %v1487_v13, %v1486_v20  ;;  %v1552_v3 = vpack.c.bf16 %v1521_v54, %v1520_v1  ;;  %v1173_v63 = vsel %vm1166_vm4, %v1170_v58, %v1172_v28  ;;  %v1499_v59 = vsel %vm1471_vm3, %v4303_v35, %v3484_v55  ;;  %2212 = vmatpush.bf16.msra.mxu2 %v3315_v62  ;;  %v3325_v58 = vld [vmem:[%s5534_s3 + $0x34] sm:$0xf]  ;;  %v3497_v35 = vpop.permute.xlu2 %3496  ;;  %p3645_p10 = por %p3644_p9, %p3643_p7 }
 0x1f1   : > { %v1498_v39 = vsel %vm1471_vm3, %v1173_v63, %v3483_v2  ;;  %3346 = vmatpush.bf16.msrb.mxu3 %v3315_v62  ;;  %v3206_v37 = vor.u32 %v3325_v58, %v3203_v33  ;;  %v1488_v47 = vsel %vm1471_vm3, %v4288_v27, %v3468_v21  ;;  %v3499_v25 = vunpack.i.h.bf16 %v3497_v35  ;;  %p3641_p6 = pneg %p3640_p5 }
 0x1f2   : > { %2075 = vmatmul.bf16.vlgmr.msrb.gmra.mxu0 %v1552_v3  ;;  %2164 = vmatmul.bf16.gmra.mxu1 %v1571_v0  ;;  %v1556_v57 = vpack.c.bf16 %v1499_v59, %v1498_v39  ;;  %v3498_v50 = vunpack.i.l.bf16 %v3497_v35  ;;  %v1575_v20 = vpack.c.bf16 %v1489_v31, %v1488_v47 }
 0x1f3   : > { %1972 = vmatmul.bf16.gmra.mxu2 %v1571_v0  ;;  %2473 = vmatpush.bf16.msra.mxu0 %v3206_v37  ;;  %v1501_v29 = vsel %vm1471_vm3, %v4338_v6, %v3499_v25  ;;  %v5622_v25 = vld [vmem:[#allocation7_spill] sm:$0xff]  ;;  %p3646_p11 = pnand %p3645_p10, %p3641_p6 }
 0x1f4   : > { %v3502_v15 = vpop.permute.xlu0 %3501  ;;  %v1500_v27 = vsel %vm1471_vm3, %v4294_v40, %v3498_v50 }
 0x1f5   : > { %v3504_v56 = vunpack.i.h.bf16 %v3502_v15  ;;  %v3503_v48 = vunpack.i.l.bf16 %v3502_v15 }
 0x1f6   : > { %v4819_v28 = vpop.f32.mrf.mxu2 }
 0x1f7   : > { %v1522_v23 = vsel %vm1471_vm3, %v4132_v16, %v3503_v48  ;;  %v1523_v38 = vsel %vm1471_vm3, %v4161_v8, %v3504_v56  ;;  %v1561_v16 = vpack.c.bf16 %v1501_v29, %v1500_v27 }
 0x1f8   : > { %v1557_v13 = vpack.c.bf16 %v1523_v38, %v1522_v23  ;;  %v3512_v8 = vpop.permute.xlu2 %3511  ;;  %v5621_v23 = vld [vmem:[#allocation6_spill] sm:$0xff] }
 0x1f9   : > { %v3514_v59 = vunpack.i.h.bf16 %v3512_v8  ;;  %v3513_v15 = vunpack.i.l.bf16 %v3512_v8 }
 0x1fa   : > { %2011 = vmatmul.bf16.gmra.mxu3 %v1556_v57 }
 0x1fc   : > { %v3517_v0 = vpop.permute.xlu0 %3516 }
 0x1fd   : > { %v3519_v1 = vunpack.i.h.bf16 %v3517_v0  ;;  %v3518_v54 = vunpack.i.l.bf16 %v3517_v0 }
 0x1fe   : > { %v4825_v2 = vpop.f32.mrf.mxu2 }
 0x1ff   : > { %v1524_v62 = vsel %vm1471_vm3, %v4164_v10, %v3518_v54  ;;  %v1525_v40 = vsel %vm1471_vm3, %v4196_v51, %v3519_v1  ;;  %v1502_v10 = vsel %vm1471_vm3, %v4329_v36, %v3513_v15  ;;  %v1503_v51 = vsel %vm1471_vm3, %v4359_v22, %v3514_v59 }
 0x200   : > { %v1562_v30 = vpack.c.bf16 %v1525_v40, %v1524_v62  ;;  %v1565_v48 = vpack.c.bf16 %v1503_v51, %v1502_v10  ;;  %v5624_v10 = vld [vmem:[#allocation15_spill] sm:$0xff] }
 0x202   : > { %2080 = vmatmul.bf16.gmra.mxu0 %v1557_v13  ;;  %2169 = vmatmul.bf16.gmra.mxu1 %v1575_v20 }
 0x203   : > { %1977 = vmatmul.bf16.gmra.mxu2 %v1575_v20  ;;  %v5623_v20 = vld [vmem:[#allocation16_spill] sm:$0xff] }
 0x204   : > { %v4835_v21 = vpop.permute.xlu0 %3531 }
 0x20a   : > { %2016 = vmatmul.bf16.gmra.mxu3 %v1561_v16 }
 0x20c   : > { %v4843_v37 = vpop.permute.xlu0 %3546 }
 0x20d   : > { %v3477_v55 = vpop.permute.xlu1 %3476 }
 0x20e   : > { %v3479_v3 = vunpack.i.h.bf16 %v3477_v55  ;;  %v3478_v63 = vunpack.i.l.bf16 %v3477_v55 }
 0x210   : > { %v1490_v6 = vsel %vm1471_vm3, %v4398_v11, %v3478_v63  ;;  %v1491_v39 = vsel %vm1471_vm3, %v4379_v60, %v3479_v3  ;;  %v3527_v11 = vpop.permute.xlu2 %3526  ;;  %v3323_v3 = vld [vmem:[%s5534_s3 + $0x24] sm:$0xf] }
 0x211   : > { %v1579_v57 = vpack.c.bf16 %v1491_v39, %v1490_v6  ;;  %v3529_v60 = vunpack.i.h.bf16 %v3527_v11  ;;  %v3528_v58 = vunpack.i.l.bf16 %v3527_v11  ;;  %v5625_v11 = vld [vmem:[#allocation22_spill] sm:$0xff] }
 0x212   : > { %2085 = vmatmul.bf16.gmra.mxu0 %v1562_v30 }
 0x213   : > { %1982 = vmatmul.bf16.gmra.mxu2 %v1579_v57  ;;  %2174 = vmatmul.bf16.gmra.mxu1 %v1579_v57  ;;  %v1526_v38 = vsel %vm1471_vm3, %v5621_v23, %v3528_v58  ;;  %v1527_v50 = vsel %vm1471_vm3, %v5622_v25, %v3529_v60  ;;  %v5626_v23 = vld [vmem:[#allocation8_spill] sm:$0xff]  ;;  %v5627_v25 = vld [vmem:[#allocation9_spill] sm:$0xff] }
 0x214   : > { %v1566_v0 = vpack.c.bf16 %v1527_v50, %v1526_v38  ;;  %v4857_v54 = vpop.permute.xlu0 %3561 }
 0x216   : > { %v4841_v56 = vpop.f32.mrf.mxu2 }
 0x21a   : > { %2021 = vmatmul.bf16.gmra.mxu3 %v1565_v48 }
 0x21c   : > { %v3492_v33 = vpop.permute.xlu1 %3491 }
 0x21d   : > { %v3494_v35 = vunpack.i.h.bf16 %v3492_v33  ;;  %v3493_v47 = vunpack.i.l.bf16 %v3492_v33  ;;  %v4871_v57 = vpop.permute.xlu0 %3576 }
 0x21e   : > { %v4845_v31 = vpop.f32.mrf.mxu2 }
 0x21f   : > { %v1492_v13 = vsel %vm1471_vm3, %v5623_v20, %v3493_v47  ;;  %v1493_v27 = vsel %vm1471_vm3, %v4468_v4, %v3494_v35  ;;  %v3195_v4 = vld [vmem:[%s5534_s3 + $0x28] sm:$0xf0] }
 0x220   : > { %v1583_v29 = vpack.c.bf16 %v1493_v27, %v1492_v13  ;;  %v3198_v63 = vor.u32 %v3323_v3, %v3195_v4  ;;  %v3534_v13 = vunpack.i.h.bf16 %v4835_v21  ;;  %v3533_v27 = vunpack.i.l.bf16 %v4835_v21 }
 0x221   : > { %v1554_v4 = vpack.c.bf16 %v4359_v22, %v4329_v36  ;;  %v3549_v21 = vunpack.i.h.bf16 %v4843_v37  ;;  %v5629_v22 = vld [vmem:[#allocation10_spill] sm:$0xff] }
 0x222   : > { %2090 = vmatmul.bf16.gmra.mxu0 %v1566_v0  ;;  %v1507_v3 = vsel %vm1471_vm3, %v4633_v45, %v3534_v13  ;;  %v1559_v13 = vpack.c.bf16 %v5625_v11, %v5624_v10 }
 0x223   : > { %1987 = vmatmul.bf16.gmra.mxu2 %v1583_v29  ;;  %2179 = vmatmul.bf16.gmra.mxu1 %v1583_v29 }
 0x224   : > { %2474 = vmatpush.bf16.msra.mxu0 %v3198_v63 }
 0x225   : > { %v3507_v16 = vpop.permute.xlu1 %3506 }
 0x226   : > { %v4855_v1 = vpop.f32.mrf.mxu2  ;;  %v3509_v8 = vunpack.i.h.bf16 %v3507_v16  ;;  %v3508_v55 = vunpack.i.l.bf16 %v3507_v16 }
 0x228   : > { %v1494_v6 = vsel %vm1471_vm3, %v4477_v18, %v3508_v55  ;;  %v1495_v39 = vsel %vm1471_vm3, %v4513_v9, %v3509_v8  ;;  %v3542_v18 = vpop.permute.xlu2 %3541  ;;  %v5628_v8 = vld [vmem:[#allocation21_spill] sm:$0xff] }
 0x229   : > { %v1587_v30 = vpack.c.bf16 %v1495_v39, %v1494_v6  ;;  %v1506_v55 = vsel %vm1471_vm3, %v5628_v8, %v3533_v27 }
 0x22a   : > { %v1573_v39 = vpack.c.bf16 %v1507_v3, %v1506_v55 }
 0x22d   : > { %v3522_v62 = vpop.permute.xlu1 %3521 }
 0x22e   : > { %v4865_v40 = vpop.f32.mrf.mxu2  ;;  %v3524_v59 = vunpack.i.h.bf16 %v3522_v62  ;;  %v3523_v15 = vunpack.i.l.bf16 %v3522_v62 }
 0x230   : > { %v1504_v51 = vsel %vm1471_vm3, %v5624_v10, %v3523_v15  ;;  %v1505_v48 = vsel %vm1471_vm3, %v5625_v11, %v3524_v59  ;;  %v3557_v16 = vpop.permute.xlu2 %3556  ;;  %v3548_v59 = vunpack.i.l.bf16 %v4843_v37  ;;  %v4931_v10 = vpop.f32.mrf.mxu1 }
 0x231   : > { %v1569_v60 = vpack.c.bf16 %v1505_v48, %v1504_v51  ;;  %v3559_v55 = vunpack.i.h.bf16 %v3557_v16  ;;  %v3558_v3 = vunpack.i.l.bf16 %v3557_v16 }
 0x233   : > { %1992 = vmatmul.bf16.gmra.mxu2 %v1587_v30  ;;  %2026 = vmatmul.bf16.gmra.mxu3 %v1569_v60  ;;  %v1530_v60 = vsel %vm1471_vm3, %v5629_v22, %v3548_v59 }
 0x234   : > { %2184 = vmatmul.bf16.gmra.mxu1 %v1587_v30 }
 0x235   : > { %v3537_v58 = vpop.permute.xlu1 %3536 }
 0x236   : > { %v4877_v33 = vpop.f32.mrf.mxu2  ;;  %v3539_v9 = vunpack.i.h.bf16 %v3537_v58  ;;  %v3538_v35 = vunpack.i.l.bf16 %v3537_v58  ;;  %v5630_v58 = vld [vmem:[#allocation11_spill] sm:$0xff] }
 0x237   : > { %v1531_v37 = vsel %vm1471_vm3, %v5630_v58, %v3549_v21 }
 0x238   : > { %v1528_v38 = vsel %vm1471_vm3, %v5626_v23, %v3538_v35  ;;  %v1529_v50 = vsel %vm1471_vm3, %v5627_v25, %v3539_v9  ;;  %v4908_v9 = vpop.permute.xlu2 %3571  ;;  %v1574_v35 = vpack.c.bf16 %v1531_v37, %v1530_v60  ;;  %v3544_v23 = vunpack.i.h.bf16 %v3542_v18 }
 0x239   : > { %v4879_v47 = vpop.permute.xlu0 %3591  ;;  %v1570_v20 = vpack.c.bf16 %v1529_v50, %v1528_v38  ;;  %v3543_v38 = vunpack.i.l.bf16 %v3542_v18  ;;  %v5631_v50 = vld [vmem:[#allocation17_spill] sm:$0xff] }
 0x23b   : > { %2095 = vmatmul.bf16.gmra.mxu0 %v1570_v20  ;;  %v1508_v25 = vsel %vm1471_vm3, %v4603_v5, %v3543_v38  ;;  %v1509_v20 = vsel %vm1471_vm3, %v5631_v50, %v3544_v23  ;;  %v5634_v23 = vld [vmem:[#allocation18_spill] sm:$0xff] }
 0x23c   : > { %v1577_v27 = vpack.c.bf16 %v1509_v20, %v1508_v25 }
 0x23d   : > { %v3552_v29 = vpop.permute.xlu1 %3551 }
 0x23e   : > { %v4887_v0 = vpop.f32.mrf.mxu2  ;;  %v3554_v11 = vunpack.i.h.bf16 %v3552_v29  ;;  %v3553_v16 = vunpack.i.l.bf16 %v3552_v29 }
 0x240   : > { %v1510_v29 = vsel %vm1471_vm3, %v5634_v23, %v3553_v16  ;;  %v1511_v38 = vsel %vm1471_vm3, %v4530_v52, %v3554_v11  ;;  %v3564_v16 = vunpack.i.h.bf16 %v4857_v54 }
 0x241   : > { %v3607_v63 = vpop.permute.xlu0 %3606 }
 0x242   : > { %v3609_v62 = vunpack.i.h.bf16 %v3607_v63  ;;  %v3608_v6 = vunpack.i.l.bf16 %v3607_v63 }
 0x243   : > { %3163 = vmatmul.msk.bf16.vlgmr.msra.gmra.mxu2 %vm1471_vm3, %v1554_v4  ;;  %2031 = vmatmul.bf16.gmra.mxu3 %v1573_v39  ;;  %v4920_v4 = vpop.permute.xlu2 %3586  ;;  %v5633_v39 = vld [vmem:[#allocation13_spill] sm:$0xff] }
 0x244   : > { %v1544_v15 = vsel %vm1471_vm3, %v4641_v7, %v3608_v6  ;;  %v1545_v30 = vsel %vm1471_vm3, %v4626_v61, %v3609_v62  ;;  %v5632_v62 = vld [vmem:[#allocation12_spill] sm:$0xff]  ;;  %v1533_v21 = vsel %vm1471_vm3, %v5633_v39, %v3559_v55 }
 0x245   : > { %v1591_v51 = vpack.c.bf16 %v1545_v30, %v1544_v15  ;;  %v3567_v48 = vpop.permute.xlu1 %3566  ;;  %v1532_v6 = vsel %vm1471_vm3, %v5632_v62, %v3558_v3  ;;  %v3321_v15 = vld [vmem:[%s5534_s3 + $0x14] sm:$0xf]  ;;  %v3187_v30 = vld [vmem:[%s5534_s3 + $0x18] sm:$0xf0] }
 0x246   : > { %v4902_v36 = vpop.f32.mrf.mxu2  ;;  %v1578_v59 = vpack.c.bf16 %v1533_v21, %v1532_v6  ;;  %v3190_v22 = vor.u32 %v3321_v15, %v3187_v30  ;;  %v3569_v3 = vunpack.i.h.bf16 %v3567_v48  ;;  %v3568_v62 = vunpack.i.l.bf16 %v3567_v48  ;;  %v4954_v6 = vpop.f32.mrf.mxu1  ;;  %v5635_v21 = vld [vmem:[#allocation14_spill] sm:$0xff] }
 0x247   : > { %2189 = vmatmul.bf16.gmra.mxu1 %v1591_v51  ;;  %v3563_v15 = vunpack.i.l.bf16 %v4857_v54 }
 0x248   : > { %2475 = vmatpush.bf16.msra.mxu0 %v3190_v22 }
 0x24b   : > { %2100 = vmatmul.bf16.gmra.mxu0 %v1574_v35  ;;  %v4939_v51 = vpop.permute.xlu2 %3601 }
 0x24d   : > { %v4910_v7 = vpop.permute.xlu1 %3581 }
 0x24e   : > { %v4912_v61 = vpop.f32.mrf.mxu2 }
 0x253   : > { %3164 = vmatmul.msk.bf16.gmra.mxu2 %vm1471_vm3, %v1559_v13  ;;  %2036 = vmatmul.bf16.gmra.mxu3 %v1577_v27  ;;  %v1564_v13 = vpack.c.bf16 %v4633_v45, %v5628_v8  ;;  %v1581_v27 = vpack.c.bf16 %v1511_v38, %v1510_v29  ;;  %v4965_v45 = vld [vmem:[%s5536_s5] ss:$0 sm:$0xff]  ;;  %v3617_v8 = vpop.permute.xlu2 %3616  ;;  %v4975_v38 = vpop.f32.mrf.mxu1 }
 0x254   : > { %v3619_v30 = vunpack.i.h.bf16 %v3617_v8  ;;  %v3618_v22 = vunpack.i.l.bf16 %v3617_v8 }
 0x255   : > { %v4923_v18 = vpop.permute.xlu1 %3596 }
 0x256   : > { %v4925_v63 = vpop.f32.mrf.mxu2  ;;  %v1548_v54 = vsel %vm1471_vm3, %v4673_v41, %v3618_v22  ;;  %v1944_v22 = vadd.f32 %v4965_v45, %v4841_v56  ;;  %v3589_v56 = vunpack.i.h.bf16 %v4920_v4 }
 0x25b   : > { %2105 = vmatmul.bf16.gmra.mxu0 %v1578_v59  ;;  %v5636_v59 = vld [vmem:[#allocation19_spill] sm:$0xff] }
 0x25c   : > { %v1535_v11 = vsel %vm1471_vm3, %v5636_v59, %v3569_v3 }
 0x25d   : > { %v3612_v60 = vpop.permute.xlu1 %3611 }
 0x25e   : > { %v4941_v58 = vpop.f32.mrf.mxu2  ;;  %v3614_v37 = vunpack.i.h.bf16 %v3612_v60  ;;  %v3613_v35 = vunpack.i.l.bf16 %v3612_v60  ;;  %v1939_v60 = vadd.f32 %v4965_v45, %v4819_v28  ;;  %v1549_v28 = vsel %vm1471_vm3, %v4657_v46, %v3619_v30 }
 0x25f   : > { %v1599_v3 = vpack.c.bf16 %v1549_v28, %v1548_v54  ;;  %v3573_v30 = vunpack.i.l.bf16 %v4908_v9  ;;  %v5639_v54 = vld [vmem:[#allocation23_spill] sm:$0xff] }
 0x260   : > { %v1546_v25 = vsel %vm1471_vm3, %v4650_v42, %v3613_v35  ;;  %v1547_v20 = vsel %vm1471_vm3, %v4760_v12, %v3614_v37  ;;  %v1534_v42 = vsel %vm1471_vm3, %v5635_v21, %v3568_v62  ;;  %v3579_v62 = vunpack.i.h.bf16 %v4871_v57 }
 0x261   : > { %v1595_v55 = vpack.c.bf16 %v1547_v20, %v1546_v25  ;;  %v1582_v48 = vpack.c.bf16 %v1535_v11, %v1534_v42  ;;  %v1512_v25 = vsel %vm1471_vm3, %v4523_v19, %v3563_v15  ;;  %v1513_v20 = vsel %vm1471_vm3, %v4742_v44, %v3564_v16  ;;  %v5637_v11 = vld [vmem:[#allocation20_spill] sm:$0xff]  ;;  %v5002_v16 = vpop.f32.mrf.mxu1 }
 0x262   : > { %v3578_v21 = vunpack.i.l.bf16 %v4871_v57  ;;  %v3574_v57 = vunpack.i.h.bf16 %v4908_v9  ;;  %v1572_v9 = vpack.c.bf16 %v4530_v52, %v5634_v23  ;;  %v1539_v52 = vsel %vm1471_vm3, %v4545_v43, %v3589_v56 }
 0x263   : > { %3165 = vmatmul.msk.bf16.gmra.mxu2 %vm1471_vm3, %v1564_v13  ;;  %2041 = vmatmul.bf16.gmra.mxu3 %v1581_v27  ;;  %v1568_v27 = vpack.c.bf16 %v5631_v50, %v4603_v5  ;;  %v1576_v56 = vpack.c.bf16 %v4742_v44, %v4523_v19 }
 0x264   : > { %2194 = vmatmul.bf16.gmra.mxu1 %v1595_v55  ;;  %v1585_v55 = vpack.c.bf16 %v1513_v20, %v1512_v25  ;;  %v1536_v8 = vsel %vm1471_vm3, %v5637_v11, %v3578_v21  ;;  %v1514_v20 = vsel %vm1471_vm3, %v4733_v17, %v3573_v30  ;;  %v1515_v28 = vsel %vm1471_vm3, %v5639_v54, %v3574_v57  ;;  %v3319_v30 = vld [vmem:[%s5534_s3 + $0x4] sm:$0xf] }
 0x265   : > { %v1949_v57 = vadd.f32 %v4965_v45, %v4855_v1 }
 0x266   : > { %v4956_v39 = vpop.f32.mrf.mxu2 }
 0x26b   : > { %2110 = vmatmul.bf16.gmra.mxu0 %v1582_v48  ;;  %v5638_v48 = vld [vmem:[#allocation25_spill] sm:$0xff] }
 0x26c   : > { %v1537_v5 = vsel %vm1471_vm3, %v5638_v48, %v3579_v62  ;;  %v5022_v62 = vpop.f32.mrf.mxu1 }
 0x26d   : > { %v2007_v37 = vpop.f32.mrf.mxu3  ;;  %v1586_v15 = vpack.c.bf16 %v1537_v5, %v1536_v8  ;;  %v5640_v8 = vld [vmem:[#allocation26_spill] sm:$0xff] }
 0x26e   : > { %v4971_v35 = vpop.f32.mrf.mxu2  ;;  %v4973_v29 = vadd.f32 %v2007_v37, %v1939_v60 }
 0x26f   : > { %v4985_v13 = vpop.f32.mrf.mxu0 }
 0x273   : > { %3166 = vmatmul.msk.bf16.gmra.mxu2 %vm1471_vm3, %v1568_v27  ;;  %2046 = vmatmul.bf16.gmra.mxu3 %v1585_v55  ;;  %v1589_v55 = vpack.c.bf16 %v1515_v28, %v1514_v20 }
 0x274   : > { %2199 = vmatmul.bf16.gmra.mxu1 %v1599_v3  ;;  %v3588_v3 = vunpack.i.l.bf16 %v4920_v4  ;;  %v3584_v4 = vunpack.i.h.bf16 %v4910_v7  ;;  %v5045_v43 = vpop.f32.mrf.mxu1 }
 0x275   : > { %v4992_v42 = vpop.f32.mrf.mxu3 }
 0x276   : > { %v4994_v59 = vpop.f32.mrf.mxu2  ;;  %v1538_v48 = vsel %vm1471_vm3, %v5640_v8, %v3588_v3  ;;  %v3599_v8 = vunpack.i.h.bf16 %v4923_v18 }
 0x277   : > { %v5000_v50 = vpop.f32.mrf.mxu0  ;;  %v1590_v5 = vpack.c.bf16 %v1539_v52, %v1538_v48  ;;  %v3598_v48 = vunpack.i.l.bf16 %v4923_v18  ;;  %v3594_v18 = vunpack.i.h.bf16 %v4879_v47 }
 0x278   : > { %v1541_v19 = vsel %vm1471_vm3, %v4716_v53, %v3599_v8  ;;  %v3604_v8 = vunpack.i.h.bf16 %v4939_v51 }
 0x279   : > { %v1519_v53 = vsel %vm1471_vm3, %v4765_v14, %v3594_v18 }
 0x27b   : > { %2115 = vmatmul.bf16.gmra.mxu0 %v1586_v15  ;;  %v3583_v15 = vunpack.i.l.bf16 %v4910_v7  ;;  %v5642_v7 = vld [vmem:[#allocation24_spill] sm:$0xff] }
 0x27d   : > { %v2012_v60 = vpop.f32.mrf.mxu3  ;;  %v1516_v1 = vsel %vm1471_vm3, %v5642_v7, %v3583_v15 }
 0x27e   : > { %v5008_v37 = vpop.f32.mrf.mxu2  ;;  %v5010_v25 = vadd.f32 %v2012_v60, %v1944_v22  ;;  %v3179_v22 = vld [vmem:[%s5534_s3 + $0x8] sm:$0xf0] }
 0x27f   : > { %v5016_v27 = vpop.f32.mrf.mxu0  ;;  %v3182_v20 = vor.u32 %v3319_v30, %v3179_v22  ;;  %v3593_v30 = vunpack.i.l.bf16 %v4879_v47  ;;  %v1954_v22 = vadd.f32 %v4965_v45, %v4877_v33  ;;  %v1580_v47 = vpack.c.bf16 %v5639_v54, %v4733_v17 }
 0x281   : > { %2476 = vmatpush.bf16.msra.mxu0 %v3182_v20 }
 0x283   : > { %3167 = vmatmul.msk.bf16.gmra.mxu2 %vm1471_vm3, %v1572_v9  ;;  %2051 = vmatmul.bf16.gmra.mxu3 %v1589_v55  ;;  %v1517_v55 = vsel %vm1471_vm3, %v4622_v34, %v3584_v4  ;;  %v1540_v4 = vsel %vm1471_vm3, %v4548_v24, %v3598_v48  ;;  %v5644_v24 = vld [vmem:[#allocation27_spill] sm:$0xff]  ;;  %v3603_v48 = vunpack.i.l.bf16 %v4939_v51  ;;  %v1543_v51 = vsel %vm1471_vm3, %v4782_v49, %v3604_v8  ;;  %v3322_v49 = vld [vmem:[%s5534_s3 + $0x14] sm:$0xf0] }
 0x284   : > { %v1593_v3 = vpack.c.bf16 %v1517_v55, %v1516_v1  ;;  %v1594_v44 = vpack.c.bf16 %v1541_v19, %v1540_v4  ;;  %v3201_v4 = vld [vmem:[%s5534_s3 + $0x30] sm:$0xf]  ;;  %v3326_v19 = vld [vmem:[%s5534_s3 + $0x34] sm:$0xf0]  ;;  %v5578_v8 = vrot.slane %v4673_v41, 2 }
 0x285   : > { %v5025_v21 = vpop.f32.mrf.mxu3  ;;  %v1542_v54 = vsel %vm1471_vm3, %v4707_v32, %v3603_v48  ;;  %v3185_v32 = vld [vmem:[%s5534_s3 + $0x10] sm:$0xf] }
 0x286   : > { %v5027_v11 = vpop.f32.mrf.mxu2  ;;  %v3186_v48 = vor.u32 %v3322_v49, %v3185_v32 }
 0x287   : > { %v5033_v23 = vpop.f32.mrf.mxu0 }
 0x28b   : > { %2120 = vmatmul.bf16.gmra.mxu0 %v1590_v5 }
 0x28d   : > { %v2017_v60 = vpop.f32.mrf.mxu3 }
 0x28e   : > { %v5047_v28 = vpop.f32.mrf.mxu2  ;;  %v5049_v9 = vadd.f32 %v2017_v60, %v1949_v57  ;;  %v5066_v57 = vpop.f32.mrf.mxu1 }
 0x28f   : > { %5641 = vst [vmem:[#allocation6_spill] sm:$0xff] %v5047_v28  ;;  %v5059_v52 = vpop.f32.mrf.mxu0 }
 0x293   : > { %3168 = vmatmul.msk.bf16.gmra.mxu2 %vm1471_vm3, %v1576_v56  ;;  %2056 = vmatmul.bf16.gmra.mxu3 %v1593_v3  ;;  %v1518_v56 = vsel %vm1471_vm3, %v5644_v24, %v3593_v30  ;;  %v3193_v30 = vld [vmem:[%s5534_s3 + $0x20] sm:$0xf] }
 0x294   : > { %v1597_v33 = vpack.c.bf16 %v1519_v53, %v1518_v56  ;;  %v1461_v53 = vrot.slane %v4657_v46, 2 }
 0x295   : > { %v5062_v5 = vpop.f32.mrf.mxu3 }
 0x296   : > { %v5064_v15 = vpop.f32.mrf.mxu2  ;;  %v5086_v3 = vpop.f32.mrf.mxu1  ;;  %v1462_v46 = vsel %vm1166_vm4, %v5578_v8, %v1461_v53 }
 0x297   : > { %v5076_v60 = vpop.f32.mrf.mxu0 }
 0x29b   : > { %2125 = vmatmul.bf16.gmra.mxu0 %v1594_v44  ;;  %v3202_v44 = vor.u32 %v3326_v19, %v3201_v4 }
 0x29d   : > { %v2022_v20 = vpop.f32.mrf.mxu3  ;;  %2404 = vmatpush.bf16.msra.mxu3 %v3202_v44 }
 0x29e   : > { %v5078_v1 = vpop.f32.mrf.mxu2  ;;  %v5080_v55 = vadd.f32 %v2022_v20, %v1954_v22  ;;  %v3324_v22 = vld [vmem:[%s5534_s3 + $0x24] sm:$0xf0]  ;;  %v1598_v20 = vpack.c.bf16 %v1543_v51, %v1542_v54  ;;  %v5115_v4 = vpop.f32.mrf.mxu1 }
 0x29f   : > { %5643 = vst [vmem:[#allocation7_spill] sm:$0xff] %v5078_v1  ;;  %v5101_v17 = vpop.f32.mrf.mxu0  ;;  %v3194_v56 = vor.u32 %v3324_v22, %v3193_v30  ;;  %v1584_v30 = vpack.c.bf16 %v4622_v34, %v5642_v7  ;;  %v3177_v22 = vld [vmem:[%s5534_s3] sm:$0xf]  ;;  %v1959_v34 = vadd.f32 %v4965_v45, %v4902_v36  ;;  %v1941_v36 = vadd.f32 %v4965_v45, %v4825_v2 }
 0x2a1   : > { %2405 = vmatpush.bf16.msra.mxu3 %v3194_v56 }
 0x2a3   : > { %3169 = vmatmul.msk.bf16.gmra.mxu2 %vm1471_vm3, %v1580_v47  ;;  %2061 = vmatmul.bf16.gmra.mxu3 %v1597_v33  ;;  %v5645_v47 = vld [vmem:[#allocation28_spill] sm:$0xff] }
 0x2a4   : > { %v1463_v33 = vrot.slane %v5645_v47, 2 }
 0x2a5   : > { %v5130_v54 = vpop.f32.mrf.mxu3  ;;  %2406 = vmatpush.bf16.msra.mxu3 %v3186_v48 }
 0x2a6   : > { %v5099_v18 = vpop.f32.mrf.mxu2  ;;  %v1464_v44 = vsel %vm1166_vm4, %v1461_v53, %v1463_v33  ;;  %v5144_v53 = vpop.f32.mrf.mxu1 }
 0x2a7   : > { %v5132_v51 = vpop.f32.mrf.mxu0  ;;  %v1600_v56 = vpack.c.bf16 %v1464_v44, %v1462_v46 }
 0x2ab   : > { %2130 = vmatmul.bf16.gmra.mxu0 %v1598_v20  ;;  %v3320_v20 = vld [vmem:[%s5534_s3 + $0x4] sm:$0xf0] }
 0x2ac   : > { %v3178_v47 = vor.u32 %v3320_v20, %v3177_v22  ;;  %v1588_v22 = vpack.c.bf16 %v4765_v14, %v5644_v24  ;;  %v2010_v20 = vadd.f32 %v4992_v42, %v1941_v36 }
 0x2ae   : > { %v5124_v19 = vpop.f32.mrf.mxu2  ;;  %2407 = vmatpush.bf16.msra.mxu3 %v3178_v47  ;;  %v5156_v46 = vpop.f32.mrf.mxu1 }
 0x2af   : > { %5646 = vst [vmem:[#allocation16_spill] sm:$0xff] %v5124_v19  ;;  %v2079_v19 = vadd.f32 %v5000_v50, %v2010_v20  ;;  %v1946_v50 = vadd.f32 %v4965_v45, %v4845_v31  ;;  %v2082_v31 = vadd.f32 %v5016_v27, %v5010_v25 }
 0x2b1   : > { %v2148_v42 = vadd.f32 %v4954_v6, %v2079_v19  ;;  %v2015_v6 = vadd.f32 %v5025_v21, %v1946_v50  ;;  %v1458_v21 = vrot.slane %v4760_v12, 2 }
 0x2b3   : > { %3170 = vmatmul.msk.bf16.gmra.mxu2 %vm1471_vm3, %v1584_v30  ;;  %3174 = vmatmul.msk.bf16.vlgmr.msrb.gmra.mxu3 %vm1471_vm3, %v1600_v56  ;;  %v1964_v56 = vadd.f32 %v4965_v45, %v4925_v63 }
 0x2b6   : > { %v5148_v7 = vpop.f32.mrf.mxu2  ;;  %v2027_v33 = vpop.f32.mrf.mxu3 }
 0x2b7   : > { %v5150_v32 = vadd.f32 %v2027_v33, %v1959_v34  ;;  %v2077_v34 = vadd.f32 %v4985_v13, %v4973_v29  ;;  %v5175_v14 = vpop.f32.mrf.mxu1 }
 0x2b8   : > { %v5152_v49 = vpop.f32.mrf.mxu0 }
 0x2b9   : > { %v2146_v2 = vadd.f32 %v4931_v10, %v2077_v34 }
 0x2be   : > { %v5154_v48 = vpop.f32.mrf.mxu2  ;;  %v5158_v44 = vpop.f32.mrf.mxu3 }
 0x2bf   : > { %v5187_v20 = vpop.f32.mrf.mxu1 }
 0x2c0   : > { %v5160_v30 = vpop.f32.mrf.mxu0 }
 0x2c3   : > { %3171 = vmatmul.msk.bf16.gmra.mxu2 %vm1471_vm3, %v1588_v22 }
 0x2c6   : > { %v2214_v47 = vpop.f32.mrf.mxu2  ;;  %v2032_v33 = vpop.f32.mrf.mxu3 }
 0x2c7   : > { %v5172_v8 = vadd.f32 %v2032_v33, %v1964_v56  ;;  %v2215_v22 = vadd.f32 %v2214_v47, %v2146_v2  ;;  %v5647_v33 = vld [vmem:[#allocation29_spill] sm:$0xff]  ;;  %v2151_v2 = vadd.f32 %v4975_v38, %v2082_v31  ;;  %v1951_v38 = vadd.f32 %v4965_v45, %v4865_v40 }
 0x2c8   : > { %v5177_v24 = vpop.f32.mrf.mxu0  ;;  %v5648_v10 = vpack.c.bf16 %v5647_v33, %v4686_v26  ;;  %v2084_v26 = vadd.f32 %v5033_v23, %v2015_v6  ;;  %v5650_v23 = vld [vmem:[#allocation30_spill] sm:$0xff] }
 0x2c9   : > { %v2274_v28 = vmax.f32 %v2215_v22, 0.0  ;;  %v5207_v22 = vpop.f32.mrf.mxu1 }
 0x2ce   : > { %v2216_v36 = vpop.f32.mrf.mxu2  ;;  %v5181_v63 = vpop.f32.mrf.mxu3 }
 0x2cf   : > { %v2217_v1 = vadd.f32 %v2216_v36, %v2148_v42  ;;  %v5649_v36 = vrot.slane %v4673_v41, 2  ;;  %v2020_v41 = vadd.f32 %v5062_v5, %v1951_v38 }
 0x2d0   : > { %v5183_v13 = vpop.f32.mrf.mxu0 }
 0x2d1   : > { %v2275_v29 = vmax.f32 %v2217_v1, 0.0  ;;  %v1969_v1 = vadd.f32 %v4965_v45, %v4956_v39  ;;  %v2153_v39 = vadd.f32 %v5002_v16, %v2084_v26  ;;  %v1460_v25 = vsel %vm1166_vm4, %v1458_v21, %v5649_v36  ;;  %v5228_v31 = vpop.f32.mrf.mxu1 }
 0x2d2   : > { %v1974_v16 = vadd.f32 %v4965_v45, %v4994_v59  ;;  %v2089_v26 = vadd.f32 %v5076_v60, %v2020_v41  ;;  %v1956_v60 = vadd.f32 %v4965_v45, %v4887_v0 }
 0x2d3   : > { %v2298_v56 = vpack.c.bf16 %v2275_v29, %v2274_v28  ;;  %3172 = vmatmul.msk.bf16.gmra.mxu2 %vm1471_vm3, %v5648_v10 }
 0x2d5   : > { %3207 = vmatmul.msk.bf16.vlgmr.msra.gmra.mxu3 %vm1471_vm3, %v2298_v56  ;;  %3219 = vmatmul.msk.bf16.vlgmr.msra.gmra.mxu0 %vm1471_vm3, %v2298_v56  ;;  %v1596_v56 = vpack.c.bf16 %v1460_v25, %v5650_v23  ;;  %v2025_v23 = vadd.f32 %v5130_v54, %v1956_v60 }
 0x2d6   : > { %v2219_v19 = vpop.f32.mrf.mxu2  ;;  %v2037_v47 = vpop.f32.mrf.mxu3 }
 0x2d7   : > { %v5200_v28 = vadd.f32 %v2037_v47, %v1969_v1  ;;  %v2220_v42 = vadd.f32 %v2219_v19, %v2151_v2  ;;  %v2087_v19 = vadd.f32 %v5059_v52, %v5049_v9  ;;  %v2094_v38 = vadd.f32 %v5132_v51, %v2025_v23 }
 0x2d8   : > { %v5203_v34 = vpop.f32.mrf.mxu0  ;;  %v1961_v51 = vadd.f32 %v4965_v45, %v4912_v61 }
 0x2d9   : > { %v2276_v33 = vmax.f32 %v2220_v42, 0.0  ;;  %v2156_v5 = vadd.f32 %v5022_v62, %v2087_v19  ;;  %v2158_v42 = vadd.f32 %v5045_v43, %v2089_v26  ;;  %v5239_v25 = vpop.f32.mrf.mxu1  ;;  %v1979_v62 = vadd.f32 %v4965_v45, %v5027_v11 }
 0x2de   : > { %v2221_v27 = vpop.f32.mrf.mxu2  ;;  %v5213_v29 = vpop.f32.mrf.mxu3 }
 0x2df   : > { %v2222_v50 = vadd.f32 %v2221_v27, %v2153_v39 }
 0x2e0   : > { %v5216_v12 = vpop.f32.mrf.mxu0 }
 0x2e1   : > { %v2277_v10 = vmax.f32 %v2222_v50, 0.0 }
 0x2e3   : > { %v2299_v6 = vpack.c.bf16 %v2277_v10, %v2276_v33  ;;  %3173 = vmatmul.msk.bf16.gmra.mxu2 %vm1471_vm3, %v1596_v56  ;;  %v2092_v56 = vadd.f32 %v5101_v17, %v5080_v55 }
 0x2e5   : > { %3208 = vmatmul.msk.bf16.gmra.mxu3 %vm1471_vm3, %v2299_v6  ;;  %3220 = vmatmul.msk.bf16.gmra.mxu0 %vm1471_vm3, %v2299_v6  ;;  %v5257_v6 = vpop.f32.mrf.mxu1  ;;  %v2161_v54 = vadd.f32 %v5066_v57, %v2092_v56  ;;  %v1984_v57 = vadd.f32 %v4965_v45, %v5064_v15 }
 0x2e6   : > { %v2224_v1 = vpop.f32.mrf.mxu2  ;;  %v2042_v47 = vpop.f32.mrf.mxu3 }
 0x2e7   : > { %v5230_v40 = vadd.f32 %v2042_v47, %v1974_v16  ;;  %v2225_v2 = vadd.f32 %v2224_v1, %v2156_v5  ;;  %v2163_v16 = vadd.f32 %v5086_v3, %v2094_v38  ;;  %v2102_v38 = vadd.f32 %v5177_v24, %v5172_v8 }
 0x2e8   : > { %v5233_v21 = vpop.f32.mrf.mxu0 }
 0x2e9   : > { %v2278_v9 = vmax.f32 %v2225_v2, 0.0  ;;  %v2030_v2 = vadd.f32 %v5158_v44, %v1961_v51 }
 0x2eb   : > { %v2099_v61 = vadd.f32 %v5160_v30, %v2030_v2  ;;  %v1966_v30 = vadd.f32 %v4965_v45, %v4941_v58  ;;  %v1971_v2 = vadd.f32 %v4965_v45, %v4971_v35 }
 0x2ed   : > { %v5267_v5 = vpop.f32.mrf.mxu1 }
 0x2ee   : > { %v2226_v39 = vpop.f32.mrf.mxu2  ;;  %v5237_v59 = vpop.f32.mrf.mxu3 }
 0x2ef   : > { %v2227_v36 = vadd.f32 %v2226_v39, %v2158_v42  ;;  %v2097_v42 = vadd.f32 %v5152_v49, %v5150_v32 }
 0x2f0   : > { %v5241_v27 = vpop.f32.mrf.mxu0 }
 0x2f1   : > { %v2279_v52 = vmax.f32 %v2227_v36, 0.0  ;;  %v2166_v44 = vadd.f32 %v5115_v4, %v2097_v42  ;;  %v1989_v4 = vadd.f32 %v4965_v45, %v5099_v18  ;;  %v2107_v42 = vadd.f32 %v5203_v34, %v5200_v28 }
 0x2f2   : > { %v1976_v28 = vadd.f32 %v4965_v45, %v5008_v37 }
 0x2f3   : > { %v2300_v50 = vpack.c.bf16 %v2279_v52, %v2278_v9 }
 0x2f5   : > { %3209 = vmatmul.msk.bf16.gmra.mxu3 %vm1471_vm3, %v2300_v50  ;;  %3221 = vmatmul.msk.bf16.gmra.mxu0 %vm1471_vm3, %v2300_v50  ;;  %v5282_v52 = vpop.f32.mrf.mxu1  ;;  %v2168_v50 = vadd.f32 %v5144_v53, %v2099_v61 }
 0x2f6   : > { %v2229_v43 = vpop.f32.mrf.mxu2  ;;  %v2047_v33 = vpop.f32.mrf.mxu3 }
 0x2f7   : > { %v5252_v10 = vadd.f32 %v2047_v33, %v1979_v62  ;;  %v2230_v41 = vadd.f32 %v2229_v43, %v2161_v54  ;;  %v2035_v33 = vadd.f32 %v5181_v63, %v1966_v30  ;;  %v2171_v63 = vadd.f32 %v5156_v46, %v2102_v38 }
 0x2f8   : > { %v5255_v0 = vpop.f32.mrf.mxu0  ;;  %v1994_v46 = vadd.f32 %v4965_v45, %v5148_v7 }
 0x2f9   : > { %v2280_v47 = vmax.f32 %v2230_v41, 0.0  ;;  %v2104_v58 = vadd.f32 %v5183_v13, %v2035_v33  ;;  %v2045_v33 = vadd.f32 %v5237_v59, %v1976_v28 }
 0x2fb   : > { %v2114_v37 = vadd.f32 %v5241_v27, %v2045_v33 }
 0x2fd   : > { %v5298_v54 = vpop.f32.mrf.mxu1 }
 0x2fe   : > { %v2231_v1 = vpop.f32.mrf.mxu2  ;;  %v5261_v11 = vpop.f32.mrf.mxu3 }
 0x2ff   : > { %v2232_v19 = vadd.f32 %v2231_v1, %v2163_v16 }
 0x300   : > { %v5263_v17 = vpop.f32.mrf.mxu0 }
 0x301   : > { %v2281_v55 = vmax.f32 %v2232_v19, 0.0 }
 0x303   : > { %v2301_v26 = vpack.c.bf16 %v2281_v55, %v2280_v47  ;;  %v2173_v47 = vadd.f32 %v5175_v14, %v2104_v58 }
 0x305   : > { %3210 = vmatmul.msk.bf16.gmra.mxu3 %vm1471_vm3, %v2301_v26  ;;  %3222 = vmatmul.msk.bf16.gmra.mxu0 %vm1471_vm3, %v2301_v26  ;;  %v5307_v18 = vpop.f32.mrf.mxu1 }
 0x306   : > { %v2234_v3 = vpop.f32.mrf.mxu2  ;;  %v2052_v39 = vpop.f32.mrf.mxu3 }
 0x307   : > { %v5276_v36 = vadd.f32 %v2052_v39, %v1984_v57  ;;  %v2235_v60 = vadd.f32 %v2234_v3, %v2166_v44  ;;  %v2040_v3 = vadd.f32 %v5213_v29, %v1971_v2 }
 0x308   : > { %v5279_v9 = vpop.f32.mrf.mxu0 }
 0x309   : > { %v2282_v43 = vmax.f32 %v2235_v60, 0.0  ;;  %v2109_v35 = vadd.f32 %v5216_v12, %v2040_v3  ;;  %v2176_v60 = vadd.f32 %v5187_v20, %v2107_v42  ;;  %v1996_v12 = vadd.f32 %v4965_v45, %v5154_v48 }
 0x30a   : > { %v2122_v33 = vadd.f32 %v5279_v9, %v5276_v36 }
 0x30d   : > { %v5323_v44 = vpop.f32.mrf.mxu1 }
 0x30e   : > { %v2236_v23 = vpop.f32.mrf.mxu2  ;;  %v5285_v15 = vpop.f32.mrf.mxu3 }
 0x30f   : > { %v2237_v62 = vadd.f32 %v2236_v23, %v2168_v50  ;;  %v2178_v23 = vadd.f32 %v5207_v22, %v2109_v35 }
 0x310   : > { %v5287_v49 = vpop.f32.mrf.mxu0 }
 0x311   : > { %v2283_v32 = vmax.f32 %v2237_v62, 0.0 }
 0x313   : > { %v2302_v56 = vpack.c.bf16 %v2283_v32, %v2282_v43 }
 0x315   : > { %3211 = vmatmul.msk.bf16.gmra.mxu3 %vm1471_vm3, %v2302_v56  ;;  %3223 = vmatmul.msk.bf16.gmra.mxu0 %vm1471_vm3, %v2302_v56  ;;  %v2200_v34 = vpop.f32.mrf.mxu1 }
 0x316   : > { %v2239_v53 = vpop.f32.mrf.mxu2  ;;  %v2057_v41 = vpop.f32.mrf.mxu3 }
 0x317   : > { %v5300_v16 = vadd.f32 %v2057_v41, %v1989_v4  ;;  %v2240_v19 = vadd.f32 %v2239_v53, %v2171_v63  ;;  %v2112_v4 = vadd.f32 %v5233_v21, %v5230_v40 }
 0x318   : > { %v5303_v1 = vpop.f32.mrf.mxu0 }
 0x319   : > { %v2284_v24 = vmax.f32 %v2240_v19, 0.0  ;;  %v2181_v63 = vadd.f32 %v5228_v31, %v2112_v4 }
 0x31d   : > { %v2202_v19 = vpop.f32.mrf.mxu1 }
 0x31e   : > { %v2241_v55 = vpop.f32.mrf.mxu2  ;;  %v5309_v51 = vpop.f32.mrf.mxu3 }
 0x31f   : > { %v2242_v8 = vadd.f32 %v2241_v55, %v2173_v47  ;;  %v2183_v47 = vadd.f32 %v5239_v25, %v2114_v37  ;;  %v2191_v37 = vadd.f32 %v5282_v52, %v2122_v33 }
 0x320   : > { %v5313_v13 = vpop.f32.mrf.mxu0 }
 0x321   : > { %v2285_v26 = vmax.f32 %v2242_v8, 0.0 }
 0x323   : > { %v2303_v57 = vpack.c.bf16 %v2285_v26, %v2284_v24 }
 0x325   : > { %3212 = vmatmul.msk.bf16.gmra.mxu3 %vm1471_vm3, %v2303_v57  ;;  %3224 = vmatmul.msk.bf16.gmra.mxu0 %vm1471_vm3, %v2303_v57 }
 0x326   : > { %v2244_v14 = vpop.f32.mrf.mxu2  ;;  %v2062_v39 = vpop.f32.mrf.mxu3 }
 0x327   : > { %v2063_v61 = vadd.f32 %v2062_v39, %v1994_v46  ;;  %v2245_v29 = vadd.f32 %v2244_v14, %v2176_v60  ;;  %v5651_v14 = vld [vmem:[#allocation6_spill] sm:$0xff] }
 0x328   : > { %v2131_v50 = vpop.f32.mrf.mxu0  ;;  %v1981_v27 = vadd.f32 %v4965_v45, %v5651_v14 }
 0x329   : > { %v2286_v7 = vmax.f32 %v2245_v29, 0.0  ;;  %v2132_v41 = vadd.f32 %v2131_v50, %v2063_v61  ;;  %v2117_v61 = vadd.f32 %v5255_v0, %v5252_v10  ;;  %v297_v0 = vld [vmem:[%s3929_s20] sm:$0xff] }
 0x32a   : > { %v2050_v39 = vadd.f32 %v5261_v11, %v1981_v27  ;;  %v2318_v11 = vld [vmem:[%s5537_s6] sm:$0x3] }
 0x32b   : > { %v2201_v48 = vadd.f32 %v2200_v34, %v2132_v41  ;;  %v2186_v60 = vadd.f32 %v5257_v6, %v2117_v61  ;;  %v2539_v34 = vunpack.c.h.bf16 %v297_v0 }
 0x32c   : > { %v2119_v35 = vadd.f32 %v5263_v17, %v2050_v39 }
 0x32e   : > { %v2246_v62 = vpop.f32.mrf.mxu2  ;;  %v2064_v43 = vpop.f32.mrf.mxu3  ;;  %v2188_v50 = vadd.f32 %v5267_v5, %v2119_v35 }
 0x32f   : > { %v2247_v32 = vadd.f32 %v2246_v62, %v2178_v23  ;;  %v2065_v20 = vadd.f32 %v2064_v43, %v1996_v12 }
 0x330   : > { %v2133_v53 = vpop.f32.mrf.mxu0 }
 0x331   : > { %v2287_v30 = vmax.f32 %v2247_v32, 0.0  ;;  %v2134_v58 = vadd.f32 %v2133_v53, %v2065_v20  ;;  %v2538_v20 = vunpack.c.l.bf16 %v297_v0 }
 0x333   : > { %v2304_v56 = vpack.c.bf16 %v2287_v30, %v2286_v7  ;;  %v2203_v24 = vadd.f32 %v2202_v19, %v2134_v58  ;;  %v5354_v7 = vperm.slane %v2318_v11, 1  ;;  %v5652_v30 = vld [vmem:[#allocation7_spill] sm:$0xff] }
 0x334   : > { %v1986_v10 = vadd.f32 %v4965_v45, %v5652_v30 }
 0x335   : > { %3213 = vmatmul.msk.bf16.gmra.mxu3 %vm1471_vm3, %v2304_v56  ;;  %3225 = vmatmul.msk.bf16.gmra.mxu0 %vm1471_vm3, %v2304_v56  ;;  %v5363_v56 = vperm.slane %v2318_v11, 0 }
 0x336   : > { %v2249_v22 = vpop.f32.mrf.mxu2  ;;  %v2269_v38 = vpop.f32.mrf.mxu3  ;;  %v2055_v5 = vadd.f32 %v5285_v15, %v1986_v10 }
 0x337   : > { %v2250_v59 = vadd.f32 %v2249_v22, %v2181_v63  ;;  %v2270_v55 = vadd.f32 %v2269_v38, %v2201_v48  ;;  %v298_v38 = vld [vmem:[%s3929_s20 + $0x8] sm:$0xff] }
 0x338   : > { %v2124_v22 = vadd.f32 %v5287_v49, %v2055_v5  ;;  %v2541_v63 = vunpack.c.h.bf16 %v298_v38 }
 0x339   : > { %v2288_v40 = vmax.f32 %v2250_v59, 0.0  ;;  %v2296_v3 = vmax.f32 %v2270_v55, 0.0 }
 0x33a   : > { %v2193_v48 = vadd.f32 %v5298_v54, %v2124_v22 }
 0x33e   : > { %v2251_v8 = vpop.f32.mrf.mxu2  ;;  %v2271_v2 = vpop.f32.mrf.mxu3 }
 0x33f   : > { %v2252_v26 = vadd.f32 %v2251_v8, %v2183_v47  ;;  %v2272_v57 = vadd.f32 %v2271_v2, %v2203_v24  ;;  %v2540_v8 = vunpack.c.l.bf16 %v298_v38 }
 0x341   : > { %v2289_v21 = vmax.f32 %v2252_v26, 0.0  ;;  %v2297_v46 = vmax.f32 %v2272_v57, 0.0  ;;  %v5653_v57 = vld [vmem:[#allocation16_spill] sm:$0xff] }
 0x343   : > { %v2305_v42 = vpack.c.bf16 %v2289_v21, %v2288_v40  ;;  %v5341_v31 = vpack.c.bf16 %v2297_v46, %v2296_v3  ;;  %v1991_v40 = vadd.f32 %v4965_v45, %v5653_v57  ;;  %v299_v21 = vld [vmem:[%s3929_s20 + $0x10] sm:$0xff]  ;;  %v2127_v45 = vadd.f32 %v5303_v1, %v5300_v16 }
 0x344   : > { %v2543_v61 = vunpack.c.h.bf16 %v299_v21 }
 0x345   : > { %3214 = vmatmul.msk.bf16.gmra.mxu3 %vm1471_vm3, %v2305_v42  ;;  %3226 = vmatmul.msk.bf16.gmra.mxu0 %vm1471_vm3, %v2305_v42  ;;  %v2060_v27 = vadd.f32 %v5309_v51, %v1991_v40 }
 0x346   : > { %v2254_v25 = vpop.f32.mrf.mxu2 }
 0x347   : > { %v2255_v29 = vadd.f32 %v2254_v25, %v2186_v60 }
 0x349   : > { %v2290_v43 = vmax.f32 %v2255_v29, 0.0  ;;  %v2542_v29 = vunpack.c.l.bf16 %v299_v21  ;;  %v303_v21 = vld [vmem:[%s3929_s20 + $0x30] sm:$0xff] }
 0x34e   : > { %v2256_v23 = vpop.f32.mrf.mxu2 }
 0x34f   : > { %v2257_v62 = vadd.f32 %v2256_v23, %v2188_v50  ;;  %v2129_v50 = vadd.f32 %v5313_v13, %v2060_v27 }
 0x351   : > { %v2291_v32 = vmax.f32 %v2257_v62, 0.0  ;;  %v300_v62 = vld [vmem:[%s3929_s20 + $0x18] sm:$0xff]  ;;  %v2198_v0 = vadd.f32 %v5323_v44, %v2129_v50 }
 0x352   : > { %v2478_v17 = vpop.f32.mrf.mxu0  ;;  %v2545_v10 = vunpack.c.h.bf16 %v300_v62 }
 0x353   : > { %v2306_v6 = vpack.c.bf16 %v2291_v32, %v2290_v43  ;;  %v2479_v28 = vadd.f32 %v2478_v17, %v5354_v7  ;;  %v2196_v32 = vadd.f32 %v5307_v18, %v2127_v45 }
 0x355   : > { %3215 = vmatmul.msk.bf16.gmra.mxu3 %vm1471_vm3, %v2306_v6  ;;  %3227 = vmatmul.msk.bf16.gmra.mxu0 %vm1471_vm3, %v2306_v6  ;;  %v2587_v53 = vadd.f32 %v2539_v34, %v2479_v28  ;;  %v2544_v34 = vunpack.c.l.bf16 %v300_v62 }
 0x356   : > { %v2259_v12 = vpop.f32.mrf.mxu2 }
 0x357   : > { %v2635_v19 = vmax.f32 %v2587_v53, 0.0  ;;  %v2260_v36 = vadd.f32 %v2259_v12, %v2191_v37 }
 0x358   : > { %v2409_v4 = vpop.f32.mrf.mxu3 }
 0x359   : > { %v2410_v15 = vadd.f32 %v2409_v4, %v5363_v56  ;;  %v2292_v26 = vmax.f32 %v2260_v36, 0.0  ;;  %v301_v4 = vld [vmem:[%s3929_s20 + $0x20] sm:$0xff] }
 0x35a   : > { %v2480_v41 = vpop.f32.mrf.mxu0 }
 0x35b   : > { %v2586_v58 = vadd.f32 %v2538_v20, %v2410_v15  ;;  %v2481_v49 = vadd.f32 %v2480_v41, %v5354_v7 }
 0x35d   : > { %v2634_v9 = vmax.f32 %v2586_v58, 0.0  ;;  %v2589_v52 = vadd.f32 %v2541_v63, %v2481_v49  ;;  %v2547_v58 = vunpack.c.h.bf16 %v301_v4  ;;  %v302_v49 = vld [vmem:[%s3929_s20 + $0x28] sm:$0xff] }
 0x35e   : > { %v2261_v59 = vpop.f32.mrf.mxu2 }
 0x35f   : > { %v2682_v47 = vpack.c.bf16 %v2635_v19, %v2634_v9  ;;  %v2262_v55 = vadd.f32 %v2261_v59, %v2193_v48  ;;  %v2637_v42 = vmax.f32 %v2589_v52, 0.0  ;;  %v2546_v48 = vunpack.c.l.bf16 %v301_v4 }
 0x360   : > { %v2411_v24 = vpop.f32.mrf.mxu3 }
 0x361   : > { %2706 = vst [vmem:[%s5376_s9] sm:$0xff] %v2682_v47  ;;  %v2293_v2 = vmax.f32 %v2262_v55, 0.0  ;;  %v2412_v54 = vadd.f32 %v2411_v24, %v5363_v56 }
 0x362   : > { %v2483_v3 = vpop.f32.mrf.mxu0 }
 0x363   : > { %v2307_v46 = vpack.c.bf16 %v2293_v2, %v2292_v26  ;;  %v2588_v14 = vadd.f32 %v2540_v8, %v2412_v54  ;;  %v2484_v25 = vadd.f32 %v2483_v3, %v5354_v7  ;;  %v2549_v26 = vunpack.c.h.bf16 %v302_v49 }
 0x364   : > { %v2548_v2 = vunpack.c.l.bf16 %v302_v49 }
 0x365   : > { %v2636_v39 = vmax.f32 %v2588_v14, 0.0  ;;  %3216 = vmatmul.msk.bf16.gmra.mxu3 %vm1471_vm3, %v2307_v46  ;;  %3228 = vmatmul.msk.bf16.gmra.mxu0 %vm1471_vm3, %v2307_v46  ;;  %v2591_v51 = vadd.f32 %v2543_v61, %v2484_v25  ;;  %v2550_v61 = vunpack.c.l.bf16 %v303_v21 }
 0x366   : > { %v2264_v35 = vpop.f32.mrf.mxu2 }
 0x367   : > { %v2683_v60 = vpack.c.bf16 %v2637_v42, %v2636_v39  ;;  %v2639_v16 = vmax.f32 %v2591_v51, 0.0  ;;  %v2265_v1 = vadd.f32 %v2264_v35, %v2196_v32  ;;  %v2551_v39 = vunpack.c.h.bf16 %v303_v21 }
 0x368   : > { %v2414_v23 = vpop.f32.mrf.mxu3 }
 0x369   : > { %2707 = vst [vmem:[%s5376_s9 + $0x8] sm:$0xff] %v2683_v60  ;;  %v2415_v11 = vadd.f32 %v2414_v23, %v5363_v56  ;;  %v2294_v33 = vmax.f32 %v2265_v1, 0.0 }
 0x36a   : > { %v2485_v43 = vpop.f32.mrf.mxu0 }
 0x36b   : > { %v2590_v30 = vadd.f32 %v2542_v29, %v2415_v11  ;;  %v2486_v13 = vadd.f32 %v2485_v43, %v5354_v7  ;;  %v304_v29 = vld [vmem:[%s3929_s20 + $0x38] sm:$0xff] }
 0x36c   : > { %v2553_v43 = vunpack.c.h.bf16 %v304_v29 }
 0x36d   : > { %v2638_v17 = vmax.f32 %v2590_v30, 0.0  ;;  %v2593_v20 = vadd.f32 %v2545_v10, %v2486_v13 }
 0x36e   : > { %v2266_v6 = vpop.f32.mrf.mxu2 }
 0x36f   : > { %v2684_v5 = vpack.c.bf16 %v2639_v16, %v2638_v17  ;;  %v2267_v28 = vadd.f32 %v2266_v6, %v2198_v0  ;;  %v2641_v38 = vmax.f32 %v2593_v20, 0.0  ;;  %v305_v16 = vld [vmem:[%s3929_s20 + $0x40] sm:$0xff] }
 0x370   : > { %v2416_v12 = vpop.f32.mrf.mxu3 }
 0x371   : > { %2708 = vst [vmem:[%s5376_s9 + $0x10] sm:$0xff] %v2684_v5  ;;  %v2295_v18 = vmax.f32 %v2267_v28, 0.0  ;;  %v2417_v22 = vadd.f32 %v2416_v12, %v5363_v56  ;;  %v2555_v28 = vunpack.c.h.bf16 %v305_v16  ;;  %v2554_v12 = vunpack.c.l.bf16 %v305_v16 }
 0x372   : > { %v2488_v44 = vpop.f32.mrf.mxu0 }
 0x373   : > { %v2308_v53 = vpack.c.bf16 %v2295_v18, %v2294_v33  ;;  %v2592_v15 = vadd.f32 %v2544_v34, %v2417_v22  ;;  %v2489_v37 = vadd.f32 %v2488_v44, %v5354_v7  ;;  %v306_v22 = vld [vmem:[%s3929_s20 + $0x48] sm:$0xff] }
 0x375   : > { %v2640_v41 = vmax.f32 %v2592_v15, 0.0  ;;  %3217 = vmatmul.msk.bf16.gmra.mxu3 %vm1471_vm3, %v2308_v53  ;;  %3229 = vmatmul.msk.bf16.gmra.mxu0 %vm1471_vm3, %v2308_v53  ;;  %v2595_v36 = vadd.f32 %v2547_v58, %v2489_v37  ;;  %v2556_v58 = vunpack.c.l.bf16 %v306_v22 }
 0x377   : > { %v2685_v63 = vpack.c.bf16 %v2641_v38, %v2640_v41  ;;  %v2643_v55 = vmax.f32 %v2595_v36, 0.0  ;;  %v2557_v41 = vunpack.c.h.bf16 %v306_v22  ;;  %v307_v36 = vld [vmem:[%s3929_s20 + $0x50] sm:$0xff] }
 0x378   : > { %v2419_v19 = vpop.f32.mrf.mxu3 }
 0x379   : > { %2709 = vst [vmem:[%s5376_s9 + $0x18] sm:$0xff] %v2685_v63  ;;  %v2420_v9 = vadd.f32 %v2419_v19, %v5363_v56 }
 0x37a   : > { %v2490_v59 = vpop.f32.mrf.mxu0 }
 0x37b   : > { %v2594_v47 = vadd.f32 %v2546_v48, %v2420_v9  ;;  %v2491_v24 = vadd.f32 %v2490_v59, %v5354_v7 }
 0x37d   : > { %v2642_v8 = vmax.f32 %v2594_v47, 0.0  ;;  %v2597_v57 = vadd.f32 %v2549_v26, %v2491_v24  ;;  %v2558_v26 = vunpack.c.l.bf16 %v307_v36 }
 0x37f   : > { %v2686_v52 = vpack.c.bf16 %v2643_v55, %v2642_v8  ;;  %v2645_v14 = vmax.f32 %v2597_v57, 0.0  ;;  %v2559_v8 = vunpack.c.h.bf16 %v307_v36  ;;  %v308_v57 = vld [vmem:[%s3929_s20 + $0x58] sm:$0xff] }
 0x380   : > { %v2421_v54 = vpop.f32.mrf.mxu3 }
 0x381   : > { %2710 = vst [vmem:[%s5376_s9 + $0x20] sm:$0xff] %v2686_v52  ;;  %v2422_v40 = vadd.f32 %v2421_v54, %v5363_v56 }
 0x382   : > { %v2493_v3 = vpop.f32.mrf.mxu0 }
 0x383   : > { %v2596_v46 = vadd.f32 %v2548_v2, %v2422_v40  ;;  %v2494_v42 = vadd.f32 %v2493_v3, %v5354_v7 }
 0x385   : > { %v2644_v27 = vmax.f32 %v2596_v46, 0.0  ;;  %3218 = vmatmul.msk.bf16.gmra.mxu3 %vm1471_vm3, %v5341_v31  ;;  %3230 = vmatmul.msk.bf16.gmra.mxu0 %vm1471_vm3, %v5341_v31  ;;  %v2599_v45 = vadd.f32 %v2551_v39, %v2494_v42  ;;  %v2552_v31 = vunpack.c.l.bf16 %v304_v29  ;;  %v2560_v39 = vunpack.c.l.bf16 %v308_v57 }
 0x387   : > { %v2687_v25 = vpack.c.bf16 %v2645_v14, %v2644_v27  ;;  %v2647_v51 = vmax.f32 %v2599_v45, 0.0  ;;  %v2561_v27 = vunpack.c.h.bf16 %v308_v57  ;;  %v309_v45 = vld [vmem:[%s3929_s20 + $0x60] sm:$0xff] }
 0x388   : > { %v2424_v35 = vpop.f32.mrf.mxu3 }
 0x389   : > { %2711 = vst [vmem:[%s5376_s9 + $0x28] sm:$0xff] %v2687_v25  ;;  %v2425_v60 = vadd.f32 %v2424_v35, %v5363_v56 }
 0x38a   : > { %v2495_v50 = vpop.f32.mrf.mxu0 }
 0x38b   : > { %v2598_v23 = vadd.f32 %v2550_v61, %v2425_v60  ;;  %v2496_v62 = vadd.f32 %v2495_v50, %v5354_v7 }
 0x38d   : > { %v2646_v11 = vmax.f32 %v2598_v23, 0.0  ;;  %v2601_v10 = vadd.f32 %v2553_v43, %v2496_v62  ;;  %v2562_v43 = vunpack.c.l.bf16 %v309_v45 }
 0x38f   : > { %v2688_v32 = vpack.c.bf16 %v2647_v51, %v2646_v11  ;;  %v2649_v13 = vmax.f32 %v2601_v10, 0.0  ;;  %v2563_v11 = vunpack.c.h.bf16 %v309_v45  ;;  %v310_v10 = vld [vmem:[%s3929_s20 + $0x68] sm:$0xff] }
 0x390   : > { %v2426_v30 = vpop.f32.mrf.mxu3 }
 0x391   : > { %2712 = vst [vmem:[%s5376_s9 + $0x30] sm:$0xff] %v2688_v32  ;;  %v2427_v0 = vadd.f32 %v2426_v30, %v5363_v56 }
 0x392   : > { %v2498_v1 = vpop.f32.mrf.mxu0 }
 0x393   : > { %v2600_v17 = vadd.f32 %v2552_v31, %v2427_v0  ;;  %v2499_v5 = vadd.f32 %v2498_v1, %v5354_v7 }
 0x395   : > { %v2648_v6 = vmax.f32 %v2600_v17, 0.0  ;;  %v2603_v20 = vadd.f32 %v2555_v28, %v2499_v5  ;;  %v2564_v28 = vunpack.c.l.bf16 %v310_v10 }
 0x397   : > { %v2689_v34 = vpack.c.bf16 %v2649_v13, %v2648_v6  ;;  %v2651_v53 = vmax.f32 %v2603_v20, 0.0  ;;  %v2565_v6 = vunpack.c.h.bf16 %v310_v10  ;;  %v311_v20 = vld [vmem:[%s3929_s20 + $0x70] sm:$0xff] }
 0x398   : > { %v2429_v33 = vpop.f32.mrf.mxu3 }
 0x399   : > { %2713 = vst [vmem:[%s5376_s9 + $0x38] sm:$0xff] %v2689_v34  ;;  %v2430_v18 = vadd.f32 %v2429_v33, %v5363_v56 }
 0x39a   : > { %v2500_v4 = vpop.f32.mrf.mxu0 }
 0x39b   : > { %v2602_v44 = vadd.f32 %v2554_v12, %v2430_v18  ;;  %v2501_v38 = vadd.f32 %v2500_v4, %v5354_v7 }
 0x39d   : > { %v2650_v15 = vmax.f32 %v2602_v44, 0.0  ;;  %v2605_v48 = vadd.f32 %v2557_v41, %v2501_v38  ;;  %v2566_v41 = vunpack.c.l.bf16 %v311_v20 }
 0x39f   : > { %v2690_v37 = vpack.c.bf16 %v2651_v53, %v2650_v15  ;;  %v2653_v59 = vmax.f32 %v2605_v48, 0.0  ;;  %v2567_v15 = vunpack.c.h.bf16 %v311_v20  ;;  %v312_v48 = vld [vmem:[%s3929_s20 + $0x78] sm:$0xff] }
 0x3a0   : > { %v2431_v63 = vpop.f32.mrf.mxu3 }
 0x3a1   : > { %2714 = vst [vmem:[%s5376_s9 + $0x40] sm:$0xff] %v2690_v37  ;;  %v2432_v19 = vadd.f32 %v2431_v63, %v5363_v56 }
 0x3a2   : > { %v2503_v9 = vpop.f32.mrf.mxu0 }
 0x3a3   : > { %v2604_v49 = vadd.f32 %v2556_v58, %v2432_v19  ;;  %v2504_v55 = vadd.f32 %v2503_v9, %v5354_v7 }
 0x3a5   : > { %v2652_v47 = vmax.f32 %v2604_v49, 0.0  ;;  %v2607_v2 = vadd.f32 %v2559_v8, %v2504_v55  ;;  %v2568_v8 = vunpack.c.l.bf16 %v312_v48 }
 0x3a7   : > { %v2691_v24 = vpack.c.bf16 %v2653_v59, %v2652_v47  ;;  %v2655_v3 = vmax.f32 %v2607_v2, 0.0  ;;  %v2569_v47 = vunpack.c.h.bf16 %v312_v48  ;;  %v313_v2 = vld [vmem:[%s3929_s20 + $0x80] sm:$0xff] }
 0x3a8   : > { %v2434_v52 = vpop.f32.mrf.mxu3 }
 0x3a9   : > { %2715 = vst [vmem:[%s5376_s9 + $0x48] sm:$0xff] %v2691_v24  ;;  %v2435_v54 = vadd.f32 %v2434_v52, %v5363_v56 }
 0x3aa   : > { %v2505_v40 = vpop.f32.mrf.mxu0 }
 0x3ab   : > { %v2606_v21 = vadd.f32 %v2558_v26, %v2435_v54  ;;  %v2506_v14 = vadd.f32 %v2505_v40, %v5354_v7 }
 0x3ad   : > { %v2654_v46 = vmax.f32 %v2606_v21, 0.0  ;;  %v2609_v61 = vadd.f32 %v2561_v27, %v2506_v14  ;;  %v2570_v27 = vunpack.c.l.bf16 %v313_v2 }
 0x3af   : > { %v2692_v42 = vpack.c.bf16 %v2655_v3, %v2654_v46  ;;  %v2657_v50 = vmax.f32 %v2609_v61, 0.0  ;;  %v2571_v46 = vunpack.c.h.bf16 %v313_v2  ;;  %v314_v61 = vld [vmem:[%s3929_s20 + $0x88] sm:$0xff] }
 0x3b0   : > { %v2436_v25 = vpop.f32.mrf.mxu3 }
 0x3b1   : > { %2716 = vst [vmem:[%s5376_s9 + $0x50] sm:$0xff] %v2692_v42  ;;  %v2437_v35 = vadd.f32 %v2436_v25, %v5363_v56 }
 0x3b2   : > { %v2508_v60 = vpop.f32.mrf.mxu0 }
 0x3b3   : > { %v2608_v29 = vadd.f32 %v2560_v39, %v2437_v35  ;;  %v2509_v51 = vadd.f32 %v2508_v60, %v5354_v7 }
 0x3b5   : > { %v2656_v23 = vmax.f32 %v2608_v29, 0.0  ;;  %v2611_v31 = vadd.f32 %v2563_v11, %v2509_v51  ;;  %v2572_v11 = vunpack.c.l.bf16 %v314_v61 }
 0x3b7   : > { %v2693_v62 = vpack.c.bf16 %v2657_v50, %v2656_v23  ;;  %v2659_v1 = vmax.f32 %v2611_v31, 0.0  ;;  %v2573_v23 = vunpack.c.h.bf16 %v314_v61  ;;  %v315_v31 = vld [vmem:[%s3929_s20 + $0x90] sm:$0xff] }
 0x3b8   : > { %v2439_v32 = vpop.f32.mrf.mxu3 }
 0x3b9   : > { %2717 = vst [vmem:[%s5376_s9 + $0x58] sm:$0xff] %v2693_v62  ;;  %v2440_v30 = vadd.f32 %v2439_v32, %v5363_v56 }
 0x3ba   : > { %v2510_v0 = vpop.f32.mrf.mxu0 }
 0x3bb   : > { %v2610_v16 = vadd.f32 %v2562_v43, %v2440_v30  ;;  %v2511_v13 = vadd.f32 %v2510_v0, %v5354_v7 }
 0x3bd   : > { %v2658_v17 = vmax.f32 %v2610_v16, 0.0  ;;  %v2613_v12 = vadd.f32 %v2565_v6, %v2511_v13  ;;  %v2574_v6 = vunpack.c.l.bf16 %v315_v31 }
 0x3bf   : > { %v2694_v5 = vpack.c.bf16 %v2659_v1, %v2658_v17  ;;  %v2661_v4 = vmax.f32 %v2613_v12, 0.0  ;;  %v2575_v17 = vunpack.c.h.bf16 %v315_v31  ;;  %v316_v12 = vld [vmem:[%s3929_s20 + $0x98] sm:$0xff] }
 0x3c0   : > { %v2441_v34 = vpop.f32.mrf.mxu3 }
 0x3c1   : > { %2718 = vst [vmem:[%s5376_s9 + $0x60] sm:$0xff] %v2694_v5  ;;  %v2442_v33 = vadd.f32 %v2441_v34, %v5363_v56 }
 0x3c2   : > { %v2513_v18 = vpop.f32.mrf.mxu0 }
 0x3c3   : > { %v2612_v22 = vadd.f32 %v2564_v28, %v2442_v33  ;;  %v2514_v53 = vadd.f32 %v2513_v18, %v5354_v7 }
 0x3c5   : > { %v2660_v44 = vmax.f32 %v2612_v22, 0.0  ;;  %v2615_v58 = vadd.f32 %v2567_v15, %v2514_v53  ;;  %v2576_v15 = vunpack.c.l.bf16 %v316_v12 }
 0x3c7   : > { %v2695_v38 = vpack.c.bf16 %v2661_v4, %v2660_v44  ;;  %v2663_v9 = vmax.f32 %v2615_v58, 0.0  ;;  %v2577_v44 = vunpack.c.h.bf16 %v316_v12  ;;  %v317_v58 = vld [vmem:[%s3929_s20 + $0xa0] sm:$0xff] }
 0x3c8   : > { %v2444_v37 = vpop.f32.mrf.mxu3 }
 0x3c9   : > { %2719 = vst [vmem:[%s5376_s9 + $0x68] sm:$0xff] %v2695_v38  ;;  %v2445_v63 = vadd.f32 %v2444_v37, %v5363_v56 }
 0x3ca   : > { %v2515_v19 = vpop.f32.mrf.mxu0 }
 0x3cb   : > { %v2614_v36 = vadd.f32 %v2566_v41, %v2445_v63  ;;  %v2516_v59 = vadd.f32 %v2515_v19, %v5354_v7 }
 0x3cd   : > { %v2662_v49 = vmax.f32 %v2614_v36, 0.0  ;;  %v2617_v26 = vadd.f32 %v2569_v47, %v2516_v59  ;;  %v2578_v47 = vunpack.c.l.bf16 %v317_v58 }
 0x3cf   : > { %v2696_v55 = vpack.c.bf16 %v2663_v9, %v2662_v49  ;;  %v2665_v40 = vmax.f32 %v2617_v26, 0.0  ;;  %v2579_v49 = vunpack.c.h.bf16 %v317_v58  ;;  %v318_v26 = vld [vmem:[%s3929_s20 + $0xa8] sm:$0xff] }
 0x3d0   : > { %v2446_v24 = vpop.f32.mrf.mxu3 }
 0x3d1   : > { %2720 = vst [vmem:[%s5376_s9 + $0x70] sm:$0xff] %v2696_v55  ;;  %v2447_v52 = vadd.f32 %v2446_v24, %v5363_v56 }
 0x3d2   : > { %v2518_v54 = vpop.f32.mrf.mxu0 }
 0x3d3   : > { %v2616_v57 = vadd.f32 %v2568_v8, %v2447_v52  ;;  %v2519_v3 = vadd.f32 %v2518_v54, %v5354_v7 }
 0x3d5   : > { %v2664_v21 = vmax.f32 %v2616_v57, 0.0  ;;  %v2619_v39 = vadd.f32 %v2571_v46, %v2519_v3  ;;  %v2580_v46 = vunpack.c.l.bf16 %v318_v26 }
 0x3d7   : > { %v2697_v14 = vpack.c.bf16 %v2665_v40, %v2664_v21  ;;  %v2667_v60 = vmax.f32 %v2619_v39, 0.0  ;;  %v2581_v21 = vunpack.c.h.bf16 %v318_v26  ;;  %v319_v39 = vld [vmem:[%s3929_s20 + $0xb0] sm:$0xff] }
 0x3d8   : > { %v2449_v42 = vpop.f32.mrf.mxu3 }
 0x3d9   : > { %2721 = vst [vmem:[%s5376_s9 + $0x78] sm:$0xff] %v2697_v14  ;;  %v2450_v25 = vadd.f32 %v2449_v42, %v5363_v56 }
 0x3da   : > { %v2520_v35 = vpop.f32.mrf.mxu0 }
 0x3db   : > { %v2618_v45 = vadd.f32 %v2570_v27, %v2450_v25  ;;  %v2521_v50 = vadd.f32 %v2520_v35, %v5354_v7 }
 0x3dd   : > { %v2666_v29 = vmax.f32 %v2618_v45, 0.0  ;;  %v2621_v43 = vadd.f32 %v2573_v23, %v2521_v50  ;;  %v2582_v23 = vunpack.c.l.bf16 %v319_v39 }
 0x3df   : > { %v2698_v51 = vpack.c.bf16 %v2667_v60, %v2666_v29  ;;  %v2669_v0 = vmax.f32 %v2621_v43, 0.0  ;;  %v2583_v29 = vunpack.c.h.bf16 %v319_v39  ;;  %v320_v43 = vld [vmem:[%s3929_s20 + $0xb8] sm:$0xff] }
 0x3e0   : > { %v2451_v62 = vpop.f32.mrf.mxu3 }
 0x3e1   : > { %2722 = vst [vmem:[%s5376_s9 + $0x80] sm:$0xff] %v2698_v51  ;;  %v2452_v32 = vadd.f32 %v2451_v62, %v5363_v56 }
 0x3e2   : > { %v2523_v30 = vpop.f32.mrf.mxu0 }
 0x3e3   : > { %v2620_v10 = vadd.f32 %v2572_v11, %v2452_v32  ;;  %v2524_v1 = vadd.f32 %v2523_v30, %v5354_v7 }
 0x3e5   : > { %v2668_v16 = vmax.f32 %v2620_v10, 0.0  ;;  %v2623_v28 = vadd.f32 %v2575_v17, %v2524_v1  ;;  %v2584_v17 = vunpack.c.l.bf16 %v320_v43 }
 0x3e7   : > { %v2699_v13 = vpack.c.bf16 %v2669_v0, %v2668_v16  ;;  %v2671_v18 = vmax.f32 %v2623_v28, 0.0  ;;  %v2585_v16 = vunpack.c.h.bf16 %v320_v43 }
 0x3e8   : > { %v2454_v5 = vpop.f32.mrf.mxu3 }
 0x3e9   : > { %2723 = vst [vmem:[%s5376_s9 + $0x88] sm:$0xff] %v2699_v13  ;;  %v2455_v34 = vadd.f32 %v2454_v5, %v5363_v56 }
 0x3ea   : > { %v2525_v33 = vpop.f32.mrf.mxu0 }
 0x3eb   : > { %v2622_v20 = vadd.f32 %v2574_v6, %v2455_v34  ;;  %v2526_v4 = vadd.f32 %v2525_v33, %v5354_v7 }
 0x3ed   : > { %v2670_v22 = vmax.f32 %v2622_v20, 0.0  ;;  %v2625_v41 = vadd.f32 %v2577_v44, %v2526_v4 }
 0x3ef   : > { %v2700_v53 = vpack.c.bf16 %v2671_v18, %v2670_v22  ;;  %v2673_v19 = vmax.f32 %v2625_v41, 0.0 }
 0x3f0   : > { %v2456_v38 = vpop.f32.mrf.mxu3 }
 0x3f1   : > { %2724 = vst [vmem:[%s5376_s9 + $0x90] sm:$0xff] %v2700_v53  ;;  %v2457_v37 = vadd.f32 %v2456_v38, %v5363_v56 }
 0x3f2   : > { %v2528_v63 = vpop.f32.mrf.mxu0 }
 0x3f3   : > { %v2624_v48 = vadd.f32 %v2576_v15, %v2457_v37  ;;  %v2529_v9 = vadd.f32 %v2528_v63, %v5354_v7 }
 0x3f5   : > { %v2672_v36 = vmax.f32 %v2624_v48, 0.0  ;;  %v2627_v8 = vadd.f32 %v2579_v49, %v2529_v9 }
 0x3f7   : > { %v2701_v59 = vpack.c.bf16 %v2673_v19, %v2672_v36  ;;  %v2675_v54 = vmax.f32 %v2627_v8, 0.0 }
 0x3f8   : > { %v2459_v55 = vpop.f32.mrf.mxu3 }
 0x3f9   : > { %2725 = vst [vmem:[%s5376_s9 + $0x98] sm:$0xff] %v2701_v59  ;;  %v2460_v24 = vadd.f32 %v2459_v55, %v5363_v56 }
 0x3fa   : > { %v2530_v52 = vpop.f32.mrf.mxu0 }
 0x3fb   : > { %v2626_v2 = vadd.f32 %v2578_v47, %v2460_v24  ;;  %v2531_v40 = vadd.f32 %v2530_v52, %v5354_v7 }
 0x3fd   : > { %v2674_v57 = vmax.f32 %v2626_v2, 0.0  ;;  %v2629_v27 = vadd.f32 %v2581_v21, %v2531_v40 }
 0x3ff   : > { %v2702_v3 = vpack.c.bf16 %v2675_v54, %v2674_v57  ;;  %v2677_v35 = vmax.f32 %v2629_v27, 0.0 }
 0x400   : > { %v2461_v14 = vpop.f32.mrf.mxu3 }
 0x401   : > { %2726 = vst [vmem:[%s5376_s9 + $0xa0] sm:$0xff] %v2702_v3  ;;  %v2462_v42 = vadd.f32 %v2461_v14, %v5363_v56 }
 0x402   : > { %v2533_v25 = vpop.f32.mrf.mxu0 }
 0x403   : > { %v2628_v61 = vadd.f32 %v2580_v46, %v2462_v42  ;;  %v2534_v60 = vadd.f32 %v2533_v25, %v5354_v7 }
 0x405   : > { %v2676_v45 = vmax.f32 %v2628_v61, 0.0  ;;  %v2631_v11 = vadd.f32 %v2583_v29, %v2534_v60 }
 0x407   : > { %v2703_v50 = vpack.c.bf16 %v2677_v35, %v2676_v45  ;;  %v2679_v30 = vmax.f32 %v2631_v11, 0.0 }
 0x408   : > { %v2464_v51 = vpop.f32.mrf.mxu3 }
 0x409   : > { %2727 = vst [vmem:[%s5376_s9 + $0xa8] sm:$0xff] %v2703_v50  ;;  %v2465_v62 = vadd.f32 %v2464_v51, %v5363_v56 }
 0x40a   : > { %v2535_v32 = vpop.f32.mrf.mxu0 }
 0x40b   : > { %v2630_v31 = vadd.f32 %v2582_v23, %v2465_v62  ;;  %v2536_v0 = vadd.f32 %v2535_v32, %v5354_v7 }
 0x40d   : > { %v2678_v10 = vmax.f32 %v2630_v31, 0.0  ;;  %v2633_v6 = vadd.f32 %v2585_v16, %v2536_v0 }
 0x40f   : > { %v2704_v1 = vpack.c.bf16 %v2679_v30, %v2678_v10  ;;  %v2681_v7 = vmax.f32 %v2633_v6, 0.0 }
 0x410   : > { %v2466_v13 = vpop.f32.mrf.mxu3 }
 0x411   : > { %2728 = vst [vmem:[%s5376_s9 + $0xb0] sm:$0xff] %v2704_v1  ;;  %v2467_v5 = vadd.f32 %v2466_v13, %v5363_v56 }
 0x413   : > { %v2632_v28 = vadd.f32 %v2584_v17, %v2467_v5 }
 0x415   : > { %v2680_v34 = vmax.f32 %v2632_v28, 0.0 }
 0x417   : > { %v2705_v12 = vpack.c.bf16 %v2681_v7, %v2680_v34 }
 0x419   : > { %2729 = vst [vmem:[%s5376_s9 + $0xb8] sm:$0xff] %v2705_v12 }
 0x41a   : > { %3649 = shalt.err (!%p3646_p11)
}
 0x41b   : > { %s3719_s16 = smov 128   ;;  %s3720_s9 = smov 8  }
 0x41c   : > { %3351 = dma.vmem_to_hbm [thread:$0]  (%p3812_p3), %s2747_s22, 3072, %s2749_s23, %s2731_s10, %s3719_s16, %s3719_s16, %s3720_s9  }
 0x41d PF: > { %p3357_p12 = scmp.ge.s32.totalorder %s3716_s8, 2  ;;  %s2763_s18 = sand.u32 1, %s3688_s24  }
 0x41e   : > { %s2764_s17 = scalar_lea.sflag [#allocation3], %s2763_s18 }
 0x41f   : > { %p3354_p13 = pnand %p3357_p12, %p3821_p8 }
 0x421   : > { %p3355_p0 = pneg %p3354_p13 }
 0x423   : > { %3683 = dma.done.wait (%p3355_p0), %s2764_s17, 3072  }
 0x424   : > { %3685 = vsyncadd (%p3355_p0), %s2764_s17, 4294964224  ;;  %s20_s8 = sadd.s32 1, %s3716_s8   ;;  %s5654_s14 = sld [smem:[#allocation5_spill]] }
 0x425   : > { %p17_p1 = scmp.ge.s32.totalorder %s20_s8, 8   ;;  %s5655_s24 = smov %s3692_s25 }
 0x426   : > { %s5656_s25 = smov %s3696_s26  ;;  %s5657_s26 = smov %s3830_s19 }
 0x427   : > { %s5658_s27 = smov %s3708_s29  ;;  %s5659_s28 = smov %s3712_s30 }
 0x428   : > { %s5660_s29 = smov %s5663_s11  ;;  %19 = sbr.rel (!%p17_p1) target bundleno = 5 (0x5), region = 86 }
 0x42a   : > { %s5661_s30 = smov %s5654_s14 }
 0x42d   :  { %2770 = vsyncpa [#allocation3], 1 }
 0x42e   :  { %2772 = vsyncpa [#allocation3 + $0x1], 1 }

</bundles_post_ra>
